<compile_context>
chip_gen: v5e
topology: v5e:2x2
jax: 0.10.0
libtpu: 0.0.40
codegen_flags: <defaults>
</compile_context>

<pallas_src>
import jax
import jax.numpy as jnp
from jax.experimental import pallas as pl
from jax.experimental.pallas import tpu as pltpu


_SQRT_HALF = 0.7071067811865476
_HAS_BUFFERED = hasattr(pl, "Buffered")


# ---------------------------------------------------------------------------
# GELU (exact, erf-based — matches PyTorch nn.GELU() default in DINOHead)
# ---------------------------------------------------------------------------
def _erf(z):
    # Abramowitz & Stegun 7.1.26 polynomial (|err| <= 1.5e-7), built only from
    # ops with guaranteed Mosaic lowerings.  The divide is routed to the EUP
    # (approx reciprocal) so the VALU slot does not pay for it.
    a1, a2, a3, a4, a5 = (0.254829592, -0.284496736, 1.421413741,
                          -1.453152027, 1.061405429)
    p = 0.3275911
    s = jnp.where(z >= 0.0, 1.0, -1.0)
    az = jnp.abs(z)
    t = pl.reciprocal(1.0 + p * az, approx=True)          # EUP slot
    poly = ((((a5 * t + a4) * t + a3) * t + a2) * t + a1) * t
    return s * (1.0 - poly * jnp.exp(-az * az))            # exp -> EUP slot


def _gelu(x):
    # Kept in f32: safe on v5e (no bf16 VPU/EUP) and accurate; on v6e/v7x the
    # transcendental parts already sit on the EUP slot.
    return 0.5 * x * (1.0 + _erf(x * _SQRT_HALF))


# ---------------------------------------------------------------------------
# Kernel
# ---------------------------------------------------------------------------
def simgcd_proj_kernel(x_ref, w1_ref, b1_ref, w2_ref, b2_ref, w3_ref, b3_ref,
                       o_ref):
    # x arrives f32; cast to bf16 on the VPU right before the MXU (cheap and
    # hidden under the matmul), f32 accumulation, f32 epilogue math.
    x = x_ref[...].astype(jnp.bfloat16)
    h = jnp.dot(x, w1_ref[...],
                preferred_element_type=jnp.float32) + b1_ref[...]
    h = _gelu(h)
    h = jnp.dot(h.astype(jnp.bfloat16), w2_ref[...],
                preferred_element_type=jnp.float32) + b2_ref[...]
    h = _gelu(h)
    p = jnp.dot(h.astype(jnp.bfloat16), w3_ref[...],
                preferred_element_type=jnp.float32) + b3_ref[...]
    o_ref[...] = p.astype(o_ref.dtype)


# ---------------------------------------------------------------------------
# Wrapper helpers
# ---------------------------------------------------------------------------
def _round_up(v, m):
    return (v + m - 1) // m * m


def _vmem_capacity_bytes():
    # Hardware query; the conservative fallback (v7x per-core VMEM) only
    # affects tile-size heuristics, never correctness.
    try:
        return int(pltpu.get_tpu_info().vmem_capacity_bytes)
    except Exception:
        return 64 << 20


def _pick_bm(B, vmem_cap):
    # One grid step for small/medium batches: weights are grid-invariant, so
    # extra steps are pure per-step overhead (and on v7x "parallel" sharding
    # would duplicate the weight DMA across both TensorCores for negligible
    # compute saving).  Large batches tile at 512 (128 MiB chips) / 256 (v7x).
    big = 512 if vmem_cap >= (96 << 20) else 256
    if B <= big:
        return max(8, _round_up(B, 8))
    return big


def _vmem_limit_bytes(bm, d_in, hidden, nb, vmem_cap, single_buffer_weights):
    wmul = 1 if single_buffer_weights else 2
    weights = wmul * 2 * (d_in * hidden + hidden * hidden + hidden * nb)  # bf16
    biases = wmul * 4 * (2 * hidden + nb)                                  # f32
    io = 2 * (bm * d_in * 4 + bm * nb * 4)        # f32 x/out tiles, 2-deep
    acts = 3 * bm * max(d_in, hidden, nb) * 4     # live f32 activations
    need = weights + biases + io + acts + (8 << 20)
    cap = max(vmem_cap - (16 << 20), 32 << 20)    # leave the compiler headroom
    return int(min(max(need, 24 << 20), cap))


def _build_proj_call(Bp, bm, d_in, hidden, nb, out_dtype, vmem_cap,
                     single_buffer):
    # Grid-invariant weights AND biases: same block every step; single-buffer
    # them when the API is available so they occupy VMEM once instead of twice.
    inv_kw = {"pipeline_mode": pl.Buffered(1)} if single_buffer else {}
    inv = lambda i: (0, 0)

    n_weight_elems = d_in * hidden + hidden * hidden + hidden * nb
    cost = pl.CostEstimate(
        flops=2 * Bp * n_weight_elems,
        transcendentals=2 * Bp * hidden,               # one exp per GELU elem
        bytes_accessed=(Bp * d_in * 4 + Bp * nb * 4    # x in, proj out (f32)
                        + 2 * n_weight_elems           # bf16 weights
                        + 4 * (2 * hidden + nb)),      # f32 biases
    )

    return pl.pallas_call(
        simgcd_proj_kernel,
        out_shape=jax.ShapeDtypeStruct((Bp, nb), out_dtype),
        grid_spec=pltpu.PrefetchScalarGridSpec(
            num_scalar_prefetch=0,
            grid=(Bp // bm,),
            in_specs=[
                pl.BlockSpec((bm, d_in), lambda i: (i, 0)),        # x tile
                pl.BlockSpec((d_in, hidden), inv, **inv_kw),       # w1
                pl.BlockSpec((1, hidden), inv, **inv_kw),          # b1
                pl.BlockSpec((hidden, hidden), inv, **inv_kw),     # w2
                pl.BlockSpec((1, hidden), inv, **inv_kw),          # b2
                pl.BlockSpec((hidden, nb), inv, **inv_kw),         # w3
                pl.BlockSpec((1, nb), inv, **inv_kw),              # b3
            ],
            out_specs=pl.BlockSpec((bm, nb), lambda i: (i, 0)),
        ),
        compiler_params=pltpu.CompilerParams(
            dimension_semantics=("parallel",),
            vmem_limit_bytes=_vmem_limit_bytes(bm, d_in, hidden, nb, vmem_cap,
                                               single_buffer),
        ),
        cost_estimate=cost,
    )


def prepare_params(params):
    """One-time, off-hot-path parameter prep.

    Converts weights to bf16 (MXU operands), keeps biases in f32 for the f32
    epilogue, and lane-pads the last layer so output stores are lane-dense
    (multiple of 128).  Call once and reuse across invocations.
    """
    w1 = jnp.asarray(params["w1"], jnp.bfloat16)
    w2 = jnp.asarray(params["w2"], jnp.bfloat16)
    w3 = jnp.asarray(params["w3"], jnp.bfloat16)
    b1 = jnp.asarray(params["b1"], jnp.float32).reshape(1, -1)
    b2 = jnp.asarray(params["b2"], jnp.float32).reshape(1, -1)
    b3 = jnp.asarray(params["b3"], jnp.float32).reshape(1, -1)
    bottleneck = w3.shape[1]
    nb = _round_up(bottleneck, 128)
    if nb != bottleneck:
        w3 = jnp.pad(w3, ((0, 0), (0, nb - bottleneck)))
        b3 = jnp.pad(b3, ((0, 0), (0, nb - bottleneck)))
    return {"w1": w1, "b1": b1, "w2": w2, "b2": b2, "w3": w3, "b3": b3,
            "bottleneck": int(bottleneck)}


def output_proj_simgcd(x, prepared, *, bm=None):
    """Pallas forward of OutputProjSimGCD: returns only `proj` [B, bottleneck].

    x        : [B, D_in] float32 backbone features
    prepared : output of prepare_params()
    """
    B, d_in = x.shape
    hidden = prepared["w1"].shape[1]
    nb = prepared["w3"].shape[1]          # lane-padded bottleneck
    bottleneck = prepared["bottleneck"]

    vmem_cap = _vmem_capacity_bytes()
    if bm is None:
        bm = _pick_bm(B, vmem_cap)
    bm = max(8, _round_up(bm, 8))
    Bp = _round_up(B, bm)

    xf = x.astype(jnp.float32)            # kernel casts to bf16 on the VPU
    if Bp != B:
        xf = jnp.pad(xf, ((0, Bp - B), (0, 0)))

    args = (xf, prepared["w1"], prepared["b1"], prepared["w2"],
            prepared["b2"], prepared["w3"], prepared["b3"])

    if _HAS_BUFFERED:
        try:
            out = _build_proj_call(Bp, bm, d_in, hidden, nb, jnp.float32,
                                   vmem_cap, True)(*args)
        except Exception as e:
            # Narrow fallback: only swallow a rejection of pipeline_mode /
            # Buffered(1); anything else (VMEM OOM, lowering bugs) re-raises.
            msg = str(e).lower()
            if not any(k in msg for k in ("pipeline_mode", "pipeline mode",
                                          "buffer")):
                raise
            out = _build_proj_call(Bp, bm, d_in, hidden, nb, jnp.float32,
                                   vmem_cap, False)(*args)
    else:
        out = _build_proj_call(Bp, bm, d_in, hidden, nb, jnp.float32,
                               vmem_cap, False)(*args)

    return out[:B, :bottleneck]


# ---------------------------------------------------------------------------
# Reference + test
# ---------------------------------------------------------------------------
def _reference(x, params):
    h = jax.nn.gelu(x @ params["w1"] + params["b1"], approximate=False)
    h = jax.nn.gelu(h @ params["w2"] + params["b2"], approximate=False)
    return h @ params["w3"] + params["b3"]


def _init_params(key, d_in, hidden, bottleneck):
    ks = jax.random.split(key, 6)
    scale = 0.02
    return {
        "w1": scale * jax.random.normal(ks[0], (d_in, hidden), jnp.float32),
        "b1": scale * jax.random.normal(ks[1], (1, hidden), jnp.float32),
        "w2": scale * jax.random.normal(ks[2], (hidden, hidden), jnp.float32),
        "b2": scale * jax.random.normal(ks[3], (1, hidden), jnp.float32),
        "w3": scale * jax.random.normal(ks[4], (hidden, bottleneck), jnp.float32),
        "b3": scale * jax.random.normal(ks[5], (1, bottleneck), jnp.float32),
    }


if __name__ == "__main__":
    key = jax.random.PRNGKey(0)
    kx, kp = jax.random.split(key)

    # Small-but-representative shapes: exercises batch padding and the
    # output-lane padding (192 -> 256).
    B, D_IN, HIDDEN, BOTTLENECK = 24, 256, 512, 192

    x = jax.random.normal(kx, (B, D_IN), jnp.float32)
    params = _init_params(kp, D_IN, HIDDEN, BOTTLENECK)
    prepared = prepare_params(params)          # one-time bf16 weight prep

    ref = _reference(x, params)

    # Default path: single grid step (weights fetched exactly once).
    proj = jax.block_until_ready(output_proj_simgcd(x, prepared))
    assert proj.shape == (B, BOTTLENECK)
    err1 = float(jnp.max(jnp.abs(proj - ref)))
    assert jnp.allclose(proj, ref, atol=1e-2, rtol=2e-2), f"max |err| = {err1}"

    # Forced multi-step path: exercises the batch pipeline and batch padding
    # (bm=16 -> Bp=32, two grid steps).
    proj2 = jax.block_until_ready(output_proj_simgcd(x, prepared, bm=16))
    assert proj2.shape == (B, BOTTLENECK)
    err2 = float(jnp.max(jnp.abs(proj2 - ref)))
    assert jnp.allclose(proj2, ref, atol=1e-2, rtol=2e-2), f"max |err| = {err2}"

    print("KERNEL_OK")
</pallas_src>

<mosaic_0001>
module attributes {stable_mosaic.version = 11 : i64} {
  func.func @simgcd_proj_kernel(%arg0: i32, %arg1: memref<24x256xf32, #tpu.memory_space<vmem>>, %arg2: memref<256x512xbf16, #tpu.memory_space<vmem>>, %arg3: memref<1x512xf32, #tpu.memory_space<vmem>>, %arg4: memref<512x512xbf16, #tpu.memory_space<vmem>>, %arg5: memref<1x512xf32, #tpu.memory_space<vmem>>, %arg6: memref<512x256xbf16, #tpu.memory_space<vmem>>, %arg7: memref<1x256xf32, #tpu.memory_space<vmem>>, %arg8: memref<24x256xf32, #tpu.memory_space<vmem>>) attributes {dimension_semantics = [#tpu.dimension_semantics<parallel>], iteration_bounds = array<i64: 1>, scalar_prefetch = 0 : i64, scratch_operands = 0 : i64, tpu.core_type = #tpu.core_type<tc>, window_params = [{transform_indices = @transform_0, window_bounds = array<i64: 24, 256>}, {pipeline_mode = #tpu.pipeline_mode<synchronous>, transform_indices = @transform_1, window_bounds = array<i64: 256, 512>}, {pipeline_mode = #tpu.pipeline_mode<synchronous>, transform_indices = @transform_2, window_bounds = array<i64: 1, 512>}, {pipeline_mode = #tpu.pipeline_mode<synchronous>, transform_indices = @transform_3, window_bounds = array<i64: 512, 512>}, {pipeline_mode = #tpu.pipeline_mode<synchronous>, transform_indices = @transform_4, window_bounds = array<i64: 1, 512>}, {pipeline_mode = #tpu.pipeline_mode<synchronous>, transform_indices = @transform_5, window_bounds = array<i64: 512, 256>}, {pipeline_mode = #tpu.pipeline_mode<synchronous>, transform_indices = @transform_6, window_bounds = array<i64: 1, 256>}, {transform_indices = @transform_7, window_bounds = array<i64: 24, 256>}]} {
    %c0 = arith.constant 0 : index
    %c0_0 = arith.constant 0 : index
    %0 = vector.load %arg1[%c0, %c0_0] : memref<24x256xf32, #tpu.memory_space<vmem>>, vector<24x256xf32>
    %1 = arith.truncf %0 : vector<24x256xf32> to vector<24x256xbf16>
    %c0_1 = arith.constant 0 : index
    %c0_2 = arith.constant 0 : index
    %2 = vector.load %arg2[%c0_1, %c0_2] : memref<256x512xbf16, #tpu.memory_space<vmem>>, vector<256x512xbf16>
    %cst = arith.constant dense<0.000000e+00> : vector<24x512xf32>
    %3 = tpu.matmul %1, %2, %cst {dimension_numbers = #tpu.dot_dimension_numbers<[1], [0], [0], [1], [0, 0, 1, 1], [], []>} : vector<24x256xbf16>, vector<256x512xbf16>, vector<24x512xf32> -> vector<24x512xf32>
    %c0_3 = arith.constant 0 : index
    %c0_4 = arith.constant 0 : index
    %4 = vector.load %arg3[%c0_3, %c0_4] : memref<1x512xf32, #tpu.memory_space<vmem>>, vector<1x512xf32>
    %5 = vector.broadcast %4 : vector<1x512xf32> to vector<24x512xf32>
    %6 = arith.addf %3, %5 : vector<24x512xf32>
    %cst_5 = arith.constant 5.000000e-01 : f32
    %7 = vector.broadcast %cst_5 : f32 to vector<24x512xf32>
    %8 = arith.mulf %7, %6 : vector<24x512xf32>
    %cst_6 = arith.constant 0.707106769 : f32
    %9 = vector.broadcast %cst_6 : f32 to vector<24x512xf32>
    %10 = arith.mulf %6, %9 : vector<24x512xf32>
    %cst_7 = arith.constant 0.000000e+00 : f32
    %11 = vector.broadcast %cst_7 : f32 to vector<24x512xf32>
    %12 = arith.cmpf oge, %10, %11 : vector<24x512xf32>
    %cst_8 = arith.constant 1.000000e+00 : f32
    %cst_9 = arith.constant -1.000000e+00 : f32
    %13 = vector.broadcast %cst_8 : f32 to vector<24x512xf32>
    %14 = vector.broadcast %cst_9 : f32 to vector<24x512xf32>
    %15 = arith.select %12, %13, %14 : vector<24x512xi1>, vector<24x512xf32>
    %16 = math.absf %10 : vector<24x512xf32>
    %cst_10 = arith.constant 0.327591091 : f32
    %17 = vector.broadcast %cst_10 : f32 to vector<24x512xf32>
    %18 = arith.mulf %17, %16 : vector<24x512xf32>
    %cst_11 = arith.constant 1.000000e+00 : f32
    %19 = vector.broadcast %cst_11 : f32 to vector<24x512xf32>
    %20 = arith.addf %19, %18 : vector<24x512xf32>
    %21 = tpu.reciprocal %20 {approx = true} : vector<24x512xf32> -> vector<24x512xf32>
    %cst_12 = arith.constant 1.06140542 : f32
    %22 = vector.broadcast %cst_12 : f32 to vector<24x512xf32>
    %23 = arith.mulf %22, %21 : vector<24x512xf32>
    %cst_13 = arith.constant -1.45315206 : f32
    %24 = vector.broadcast %cst_13 : f32 to vector<24x512xf32>
    %25 = arith.addf %23, %24 : vector<24x512xf32>
    %26 = arith.mulf %25, %21 : vector<24x512xf32>
    %cst_14 = arith.constant 1.42141378 : f32
    %27 = vector.broadcast %cst_14 : f32 to vector<24x512xf32>
    %28 = arith.addf %26, %27 : vector<24x512xf32>
    %29 = arith.mulf %28, %21 : vector<24x512xf32>
    %cst_15 = arith.constant -0.284496725 : f32
    %30 = vector.broadcast %cst_15 : f32 to vector<24x512xf32>
    %31 = arith.addf %29, %30 : vector<24x512xf32>
    %32 = arith.mulf %31, %21 : vector<24x512xf32>
    %cst_16 = arith.constant 0.254829586 : f32
    %33 = vector.broadcast %cst_16 : f32 to vector<24x512xf32>
    %34 = arith.addf %32, %33 : vector<24x512xf32>
    %35 = arith.mulf %34, %21 : vector<24x512xf32>
    %cst_17 = arith.constant 0.000000e+00 : f32
    %36 = vector.broadcast %cst_17 : f32 to vector<24x512xf32>
    %37 = arith.subf %36, %16 : vector<24x512xf32>
    %38 = arith.mulf %37, %16 : vector<24x512xf32>
    %39 = math.exp %38 : vector<24x512xf32>
    %40 = arith.mulf %35, %39 : vector<24x512xf32>
    %cst_18 = arith.constant 1.000000e+00 : f32
    %41 = vector.broadcast %cst_18 : f32 to vector<24x512xf32>
    %42 = arith.subf %41, %40 : vector<24x512xf32>
    %43 = arith.mulf %15, %42 : vector<24x512xf32>
    %cst_19 = arith.constant 1.000000e+00 : f32
    %44 = vector.broadcast %cst_19 : f32 to vector<24x512xf32>
    %45 = arith.addf %44, %43 : vector<24x512xf32>
    %46 = arith.mulf %8, %45 : vector<24x512xf32>
    %47 = arith.truncf %46 : vector<24x512xf32> to vector<24x512xbf16>
    %c0_20 = arith.constant 0 : index
    %c0_21 = arith.constant 0 : index
    %48 = vector.load %arg4[%c0_20, %c0_21] : memref<512x512xbf16, #tpu.memory_space<vmem>>, vector<512x512xbf16>
    %cst_22 = arith.constant dense<0.000000e+00> : vector<24x512xf32>
    %49 = tpu.matmul %47, %48, %cst_22 {dimension_numbers = #tpu.dot_dimension_numbers<[1], [0], [0], [1], [0, 0, 1, 1], [], []>} : vector<24x512xbf16>, vector<512x512xbf16>, vector<24x512xf32> -> vector<24x512xf32>
    %c0_23 = arith.constant 0 : index
    %c0_24 = arith.constant 0 : index
    %50 = vector.load %arg5[%c0_23, %c0_24] : memref<1x512xf32, #tpu.memory_space<vmem>>, vector<1x512xf32>
    %51 = vector.broadcast %50 : vector<1x512xf32> to vector<24x512xf32>
    %52 = arith.addf %49, %51 : vector<24x512xf32>
    %cst_25 = arith.constant 5.000000e-01 : f32
    %53 = vector.broadcast %cst_25 : f32 to vector<24x512xf32>
    %54 = arith.mulf %53, %52 : vector<24x512xf32>
    %cst_26 = arith.constant 0.707106769 : f32
    %55 = vector.broadcast %cst_26 : f32 to vector<24x512xf32>
    %56 = arith.mulf %52, %55 : vector<24x512xf32>
    %cst_27 = arith.constant 0.000000e+00 : f32
    %57 = vector.broadcast %cst_27 : f32 to vector<24x512xf32>
    %58 = arith.cmpf oge, %56, %57 : vector<24x512xf32>
    %cst_28 = arith.constant 1.000000e+00 : f32
    %cst_29 = arith.constant -1.000000e+00 : f32
    %59 = vector.broadcast %cst_28 : f32 to vector<24x512xf32>
    %60 = vector.broadcast %cst_29 : f32 to vector<24x512xf32>
    %61 = arith.select %58, %59, %60 : vector<24x512xi1>, vector<24x512xf32>
    %62 = math.absf %56 : vector<24x512xf32>
    %cst_30 = arith.constant 0.327591091 : f32
    %63 = vector.broadcast %cst_30 : f32 to vector<24x512xf32>
    %64 = arith.mulf %63, %62 : vector<24x512xf32>
    %cst_31 = arith.constant 1.000000e+00 : f32
    %65 = vector.broadcast %cst_31 : f32 to vector<24x512xf32>
    %66 = arith.addf %65, %64 : vector<24x512xf32>
    %67 = tpu.reciprocal %66 {approx = true} : vector<24x512xf32> -> vector<24x512xf32>
    %cst_32 = arith.constant 1.06140542 : f32
    %68 = vector.broadcast %cst_32 : f32 to vector<24x512xf32>
    %69 = arith.mulf %68, %67 : vector<24x512xf32>
    %cst_33 = arith.constant -1.45315206 : f32
    %70 = vector.broadcast %cst_33 : f32 to vector<24x512xf32>
    %71 = arith.addf %69, %70 : vector<24x512xf32>
    %72 = arith.mulf %71, %67 : vector<24x512xf32>
    %cst_34 = arith.constant 1.42141378 : f32
    %73 = vector.broadcast %cst_34 : f32 to vector<24x512xf32>
    %74 = arith.addf %72, %73 : vector<24x512xf32>
    %75 = arith.mulf %74, %67 : vector<24x512xf32>
    %cst_35 = arith.constant -0.284496725 : f32
    %76 = vector.broadcast %cst_35 : f32 to vector<24x512xf32>
    %77 = arith.addf %75, %76 : vector<24x512xf32>
    %78 = arith.mulf %77, %67 : vector<24x512xf32>
    %cst_36 = arith.constant 0.254829586 : f32
    %79 = vector.broadcast %cst_36 : f32 to vector<24x512xf32>
    %80 = arith.addf %78, %79 : vector<24x512xf32>
    %81 = arith.mulf %80, %67 : vector<24x512xf32>
    %cst_37 = arith.constant 0.000000e+00 : f32
    %82 = vector.broadcast %cst_37 : f32 to vector<24x512xf32>
    %83 = arith.subf %82, %62 : vector<24x512xf32>
    %84 = arith.mulf %83, %62 : vector<24x512xf32>
    %85 = math.exp %84 : vector<24x512xf32>
    %86 = arith.mulf %81, %85 : vector<24x512xf32>
    %cst_38 = arith.constant 1.000000e+00 : f32
    %87 = vector.broadcast %cst_38 : f32 to vector<24x512xf32>
    %88 = arith.subf %87, %86 : vector<24x512xf32>
    %89 = arith.mulf %61, %88 : vector<24x512xf32>
    %cst_39 = arith.constant 1.000000e+00 : f32
    %90 = vector.broadcast %cst_39 : f32 to vector<24x512xf32>
    %91 = arith.addf %90, %89 : vector<24x512xf32>
    %92 = arith.mulf %54, %91 : vector<24x512xf32>
    %93 = arith.truncf %92 : vector<24x512xf32> to vector<24x512xbf16>
    %c0_40 = arith.constant 0 : index
    %c0_41 = arith.constant 0 : index
    %94 = vector.load %arg6[%c0_40, %c0_41] : memref<512x256xbf16, #tpu.memory_space<vmem>>, vector<512x256xbf16>
    %cst_42 = arith.constant dense<0.000000e+00> : vector<24x256xf32>
    %95 = tpu.matmul %93, %94, %cst_42 {dimension_numbers = #tpu.dot_dimension_numbers<[1], [0], [0], [1], [0, 0, 1, 1], [], []>} : vector<24x512xbf16>, vector<512x256xbf16>, vector<24x256xf32> -> vector<24x256xf32>
    %c0_43 = arith.constant 0 : index
    %c0_44 = arith.constant 0 : index
    %96 = vector.load %arg7[%c0_43, %c0_44] : memref<1x256xf32, #tpu.memory_space<vmem>>, vector<1x256xf32>
    %97 = vector.broadcast %96 : vector<1x256xf32> to vector<24x256xf32>
    %98 = arith.addf %95, %97 : vector<24x256xf32>
    %c0_45 = arith.constant 0 : index
    %c0_46 = arith.constant 0 : index
    %99 = vector.load %arg8[%c0_45, %c0_46] : memref<24x256xf32, #tpu.memory_space<vmem>>, vector<24x256xf32>
    tpu.vector_store %arg8[%c0_45, %c0_46], %98 {strides = array<i32>} : memref<24x256xf32, #tpu.memory_space<vmem>>, vector<24x256xf32>,
    return
  }
  func.func @transform_0(%arg0: i32) -> (i32, i32) {
    %c0_i32 = arith.constant 0 : i32
    %c0_i32_0 = arith.constant 0 : i32
    return %arg0, %c0_i32 : i32, i32
  }
  func.func @transform_1(%arg0: i32) -> (i32, i32) {
    %c0_i32 = arith.constant 0 : i32
    %c0_i32_0 = arith.constant 0 : i32
    %c0_i32_1 = arith.constant 0 : i32
    return %c0_i32, %c0_i32_0 : i32, i32
  }
  func.func @transform_2(%arg0: i32) -> (i32, i32) {
    %c0_i32 = arith.constant 0 : i32
    %c0_i32_0 = arith.constant 0 : i32
    %c0_i32_1 = arith.constant 0 : i32
    return %c0_i32, %c0_i32_0 : i32, i32
  }
  func.func @transform_3(%arg0: i32) -> (i32, i32) {
    %c0_i32 = arith.constant 0 : i32
    %c0_i32_0 = arith.constant 0 : i32
    %c0_i32_1 = arith.constant 0 : i32
    return %c0_i32, %c0_i32_0 : i32, i32
  }
  func.func @transform_4(%arg0: i32) -> (i32, i32) {
    %c0_i32 = arith.constant 0 : i32
    %c0_i32_0 = arith.constant 0 : i32
    %c0_i32_1 = arith.constant 0 : i32
    return %c0_i32, %c0_i32_0 : i32, i32
  }
  func.func @transform_5(%arg0: i32) -> (i32, i32) {
    %c0_i32 = arith.constant 0 : i32
    %c0_i32_0 = arith.constant 0 : i32
    %c0_i32_1 = arith.constant 0 : i32
    return %c0_i32, %c0_i32_0 : i32, i32
  }
  func.func @transform_6(%arg0: i32) -> (i32, i32) {
    %c0_i32 = arith.constant 0 : i32
    %c0_i32_0 = arith.constant 0 : i32
    %c0_i32_1 = arith.constant 0 : i32
    return %c0_i32, %c0_i32_0 : i32, i32
  }
  func.func @transform_7(%arg0: i32) -> (i32, i32) {
    %c0_i32 = arith.constant 0 : i32
    %c0_i32_0 = arith.constant 0 : i32
    return %arg0, %c0_i32 : i32, i32
  }
}

</mosaic_0001>

<bundles_post_ra>
// kernel: tpu_custom_call.1
= control target key start
LH: loop header
LB: loop body
LE: loop exit
PB: predicated region body
PF: predicated region fallthrough
CT: control target
= control target key end

     0   :  { %12 = vsyncpa [#allocation3], 0  ;;  %s5342_s0 = inlined_call_operand.hbm [shape: f32[24,256], index: 0, kind: input, shape index: {}]   ;;  %s5343_s1 = inlined_call_operand.hbm [shape: bf16[256,512], index: 1, kind: input, shape index: {}]   ;;  %s5344_s2 = inlined_call_operand.hbm [shape: f32[1,512], index: 2, kind: input, shape index: {}]   ;;  %s5345_s3 = inlined_call_operand.hbm [shape: bf16[512,512], index: 3, kind: input, shape index: {}]   ;;  %s5346_s4 = inlined_call_operand.hbm [shape: f32[1,512], index: 4, kind: input, shape index: {}]   ;;  %s5347_s5 = inlined_call_operand.hbm [shape: bf16[512,256], index: 5, kind: input, shape index: {}]   ;;  %s5348_s6 = inlined_call_operand.vmem [shape: f32[1,256], index: 6, kind: input, shape index: {}]   ;;  %s5349_s7 = inlined_call_operand.hbm [shape: f32[24,256], index: 7, kind: output, shape index: {}]  }
   0x1   :  { %13 = vsyncpa [#allocation6], 0 }
   0x2   :  { %14 = vsyncpa [#allocation9], 0 }
   0x3   :  { %15 = vsyncpa [#allocation12], 0 }
   0x4   :  { %16 = vsyncpa [#allocation4], 0  ;;  %s34_s26 = sshll.u32 %s5343_s1, 4  ;;  %s4499_s27 = smov [#allocation5]   ;;  %s35_s26 = int_to_ptr.hbm [resolvable:$true] %s34_s26 }
   0x5   :  { %s36_s28 = sshll.u32 %s4499_s27, 4  ;;  %s58_s8 = sshll.u32 %s5345_s3, 4  ;;  %s37_s28 = int_to_ptr.vmem [resolvable:$true] %s36_s28  ;;  %s59_s8 = int_to_ptr.hbm [resolvable:$true] %s58_s8 }
   0x6   :  { %s4500_s9 = smov 256   ;;  %s4501_s10 = smov 16  }
   0x7   :  { %42 = dma.hbm_to_vmem [thread:$0]  %s35_s26, 8192, %s37_s28, [#allocation6], %s4500_s9, %s4500_s9, %s4501_s10  }
   0x8   :  { %s4502_s11 = smov [#allocation8]   ;;  %s21_s1 = sshll.u32 %s5342_s0, 4  ;;  %s22_s1 = int_to_ptr.hbm [resolvable:$true] %s21_s1 }
   0x9   :  { %s60_s12 = sshll.u32 %s4502_s11, 4  ;;  %s48_s16 = sshll.u32 %s5344_s2, 4  ;;  %s61_s12 = int_to_ptr.vmem [resolvable:$true] %s60_s12  ;;  %s49_s16 = int_to_ptr.hbm [resolvable:$true] %s48_s16 }
   0xa   :  { %66 = dma.hbm_to_vmem [thread:$0]  %s59_s8, 16384, %s61_s12, [#allocation9], %s4500_s9, %s4500_s9, %s4501_s10  }
   0xb   :  { %s4503_s17 = smov [#allocation2]   ;;  %s4504_s19 = smov [#allocation7]  }
   0xc   :  { %s23_s18 = sshll.u32 %s4503_s17, 4  ;;  %s50_s0 = sshll.u32 %s4504_s19, 4  ;;  %s24_s18 = int_to_ptr.vmem [resolvable:$true] %s23_s18  ;;  %s51_s0 = int_to_ptr.vmem [resolvable:$true] %s50_s0 }
   0xd   :  { %29 = dma.hbm_to_vmem [thread:$0]  %s22_s1, 768, %s24_s18, [#allocation3], %s4500_s9, %s4500_s9, %s4501_s10  }
   0xe   :  { %s72_s22 = sshll.u32 %s5346_s4, 4  ;;  %s82_s2 = sshll.u32 %s5347_s5, 4  ;;  %s73_s22 = int_to_ptr.hbm [resolvable:$true] %s72_s22  ;;  %s83_s2 = int_to_ptr.hbm [resolvable:$true] %s82_s2 }
   0xf   :  { %53 = dma.hbm_to_vmem [thread:$0]  %s49_s16, 64, %s51_s0, [#allocation6]  }
  0x10   :  { %s4505_s25 = smov [#allocation10]   ;;  %s4506_s27 = smov [#allocation11]  }
  0x11   :  { %s74_s26 = sshll.u32 %s4505_s25, 4  ;;  %s84_s28 = sshll.u32 %s4506_s27, 4  ;;  %s75_s26 = int_to_ptr.vmem [resolvable:$true] %s74_s26  ;;  %s85_s28 = int_to_ptr.vmem [resolvable:$true] %s84_s28 }
  0x12   :  { %77 = dma.hbm_to_vmem [thread:$0]  %s73_s22, 64, %s75_s26, [#allocation9]  }
  0x13   :  { %s4507_s29 = smov 128   ;;  %s4508_s30 = smov 8  }
  0x14   :  { %90 = dma.hbm_to_vmem [thread:$0]  %s83_s2, 8192, %s85_s28, [#allocation12], %s4507_s29, %s4507_s29, %s4508_s30  }
  0x15   :  { %4489 = dma.done.wait [#allocation3], 768  }
  0x16   :  { %4490 = vsyncadd [#allocation3], 4294966528 }
  0x17   :  { %4491 = dma.done.wait [#allocation6], 8256  }
  0x18   :  { %4492 = vsyncadd [#allocation6], 4294959040 }
  0x19   :  { %4493 = dma.done.wait [#allocation9], 16448  }
  0x1a   :  { %4494 = vsyncadd [#allocation9], 4294950848 }
  0x1b   :  { %4495 = dma.done.wait [#allocation12], 8192  }
  0x1c   :  { %4496 = vsyncadd [#allocation12], 4294959104  ;;  %v3047_v0 = vld [vmem:[#allocation5 + $0xe0] sm:$0xf]  ;;  %v3987_v1 = vld [vmem:[#allocation5 + $0xec] sm:$0xf0] }
  0x1d   :  { %v3175_v2 = vld [vmem:[#allocation5 + $0x1e0] sm:$0xf]  ;;  %v3048_v3 = vor.u32 %v3987_v1, %v3047_v0  ;;  %v4019_v4 = vld [vmem:[#allocation5 + $0x1ec] sm:$0xf0]  ;;  %v3985_v5 = vld [vmem:[#allocation5 + $0xe4] sm:$0xf] }
  0x1e   :  { %v3049_v6 = vld [vmem:[#allocation5 + $0xf0] sm:$0xf0]  ;;  %v3176_v7 = vor.u32 %v4019_v4, %v3175_v2  ;;  %v4017_v9 = vld [vmem:[#allocation5 + $0x1e4] sm:$0xf]  ;;  %v3031_v11 = vld [vmem:[#allocation5 + $0xc0] sm:$0xf] }
  0x1f   :  { %v3052_v8 = vor.u32 %v3985_v5, %v3049_v6  ;;  %v3177_v10 = vld [vmem:[#allocation5 + $0x1f0] sm:$0xf0]  ;;  %521 = vmatpush.bf16.msra.mxu0 %v3048_v3  ;;  %v3983_v13 = vld [vmem:[#allocation5 + $0xcc] sm:$0xf0]  ;;  %v3159_v14 = vld [vmem:[#allocation5 + $0x1c0] sm:$0xf] }
  0x20   :  { %v3180_v12 = vor.u32 %v4017_v9, %v3177_v10  ;;  %v4015_v15 = vld [vmem:[#allocation5 + $0x1cc] sm:$0xf0]  ;;  %539 = vmatpush.bf16.msra.mxu1 %v3176_v7  ;;  %v3032_v16 = vor.u32 %v3983_v13, %v3031_v11  ;;  %v3981_v18 = vld [vmem:[#allocation5 + $0xc4] sm:$0xf]  ;;  %v3033_v19 = vld [vmem:[#allocation5 + $0xd0] sm:$0xf0] }
  0x21   :  { %557 = vmatpush.bf16.msra.mxu2 %v3052_v8  ;;  %v3160_v17 = vor.u32 %v4015_v15, %v3159_v14  ;;  %v4013_v20 = vld [vmem:[#allocation5 + $0x1c4] sm:$0xf]  ;;  %v3036_v21 = vor.u32 %v3981_v18, %v3033_v19  ;;  %v3161_v22 = vld [vmem:[#allocation5 + $0x1d0] sm:$0xf0]  ;;  %v3015_v23 = vld [vmem:[#allocation5 + $0xa0] sm:$0xf] }
  0x22   :  { %575 = vmatpush.bf16.msra.mxu3 %v3180_v12  ;;  %v3979_v24 = vld [vmem:[#allocation5 + $0xac] sm:$0xf0]  ;;  %v3164_v25 = vor.u32 %v4013_v20, %v3161_v22  ;;  %v3143_v26 = vld [vmem:[#allocation5 + $0x1a0] sm:$0xf]  ;;  %v3977_v28 = vld [vmem:[#allocation5 + $0xa4] sm:$0xf] }
  0x23   :  { %v4011_v27 = vld [vmem:[#allocation5 + $0x1ac] sm:$0xf0]  ;;  %522 = vmatpush.bf16.msra.mxu0 %v3032_v16  ;;  %v3016_v29 = vor.u32 %v3979_v24, %v3015_v23  ;;  %v3017_v30 = vld [vmem:[#allocation5 + $0xb0] sm:$0xf0]  ;;  %v4009_v31 = vld [vmem:[#allocation5 + $0x1a4] sm:$0xf] }
  0x24   :  { %v3145_v32 = vld [vmem:[#allocation5 + $0x1b0] sm:$0xf0]  ;;  %540 = vmatpush.bf16.msra.mxu1 %v3160_v17  ;;  %v3144_v33 = vor.u32 %v4011_v27, %v3143_v26  ;;  %v3020_v34 = vor.u32 %v3977_v28, %v3017_v30  ;;  %v2999_v35 = vld [vmem:[#allocation5 + $0x80] sm:$0xf]  ;;  %v3975_v36 = vld [vmem:[#allocation5 + $0x8c] sm:$0xf0] }
  0x25   :  { %558 = vmatpush.bf16.msra.mxu2 %v3036_v21  ;;  %v3127_v37 = vld [vmem:[#allocation5 + $0x180] sm:$0xf]  ;;  %v3148_v38 = vor.u32 %v4009_v31, %v3145_v32  ;;  %v4007_v39 = vld [vmem:[#allocation5 + $0x18c] sm:$0xf0]  ;;  %v3973_v40 = vld [vmem:[#allocation5 + $0x84] sm:$0xf]  ;;  %v3000_v44 = vor.u32 %v3975_v36, %v2999_v35 }
  0x26   :  { %576 = vmatpush.bf16.msra.mxu3 %v3164_v25  ;;  %v3001_v41 = vld [vmem:[#allocation5 + $0x90] sm:$0xf0]  ;;  %v4005_v42 = vld [vmem:[#allocation5 + $0x184] sm:$0xf]  ;;  %v3128_v45 = vor.u32 %v4007_v39, %v3127_v37  ;;  %v2983_v47 = vld [vmem:[#allocation5 + $0x60] sm:$0xf] }
  0x27   :  { %v3129_v43 = vld [vmem:[#allocation5 + $0x190] sm:$0xf0]  ;;  %523 = vmatpush.bf16.msra.mxu0 %v3016_v29  ;;  %v3004_v46 = vor.u32 %v3973_v40, %v3001_v41  ;;  %v3971_v48 = vld [vmem:[#allocation5 + $0x6c] sm:$0xf0]  ;;  %v3111_v49 = vld [vmem:[#allocation5 + $0x160] sm:$0xf] }
  0x28   :  { %541 = vmatpush.bf16.msra.mxu1 %v3144_v33  ;;  %v3132_v50 = vor.u32 %v4005_v42, %v3129_v43  ;;  %v4003_v51 = vld [vmem:[#allocation5 + $0x16c] sm:$0xf0]  ;;  %v3969_v52 = vld [vmem:[#allocation5 + $0x64] sm:$0xf]  ;;  %v2985_v53 = vld [vmem:[#allocation5 + $0x70] sm:$0xf0]  ;;  %v2984_v56 = vor.u32 %v3971_v48, %v2983_v47 }
  0x29   :  { %559 = vmatpush.bf16.msra.mxu2 %v3020_v34  ;;  %v4001_v54 = vld [vmem:[#allocation5 + $0x164] sm:$0xf]  ;;  %v3113_v55 = vld [vmem:[#allocation5 + $0x170] sm:$0xf0]  ;;  %v3112_v57 = vor.u32 %v4003_v51, %v3111_v49  ;;  %v2988_v58 = vor.u32 %v3969_v52, %v2985_v53  ;;  %v2967_v59 = vld [vmem:[#allocation5 + $0x40] sm:$0xf] }
  0x2a   :  { %577 = vmatpush.bf16.msra.mxu3 %v3148_v38  ;;  %v3967_v60 = vld [vmem:[#allocation5 + $0x4c] sm:$0xf0]  ;;  %v3095_v61 = vld [vmem:[#allocation5 + $0x140] sm:$0xf]  ;;  %v3116_v62 = vor.u32 %v4001_v54, %v3113_v55  ;;  %v3965_v0 = vld [vmem:[#allocation5 + $0x44] sm:$0xf] }
  0x2b   :  { %524 = vmatpush.bf16.msra.mxu0 %v3000_v44  ;;  %v3999_v63 = vld [vmem:[#allocation5 + $0x14c] sm:$0xf0]  ;;  %v2969_v1 = vld [vmem:[#allocation5 + $0x50] sm:$0xf0]  ;;  %v3997_v2 = vld [vmem:[#allocation5 + $0x144] sm:$0xf]  ;;  %v2968_v4 = vor.u32 %v3967_v60, %v2967_v59 }
  0x2c   :  { %542 = vmatpush.bf16.msra.mxu1 %v3128_v45  ;;  %v3097_v3 = vld [vmem:[#allocation5 + $0x150] sm:$0xf0]  ;;  %v3096_v5 = vor.u32 %v3999_v63, %v3095_v61  ;;  %v2972_v6 = vor.u32 %v3965_v0, %v2969_v1  ;;  %v2951_v7 = vld [vmem:[#allocation5 + $0x20] sm:$0xf]  ;;  %v3963_v8 = vld [vmem:[#allocation5 + $0x2c] sm:$0xf0] }
  0x2d   :  { %560 = vmatpush.bf16.msra.mxu2 %v3004_v46  ;;  %v3079_v9 = vld [vmem:[#allocation5 + $0x120] sm:$0xf]  ;;  %v3100_v10 = vor.u32 %v3997_v2, %v3097_v3  ;;  %v3995_v11 = vld [vmem:[#allocation5 + $0x12c] sm:$0xf0]  ;;  %v3961_v12 = vld [vmem:[#allocation5 + $0x24] sm:$0xf]  ;;  %v2952_v16 = vor.u32 %v3963_v8, %v2951_v7 }
  0x2e   :  { %578 = vmatpush.bf16.msra.mxu3 %v3132_v50  ;;  %v2953_v13 = vld [vmem:[#allocation5 + $0x30] sm:$0xf0]  ;;  %v3993_v14 = vld [vmem:[#allocation5 + $0x124] sm:$0xf]  ;;  %v2935_v17 = vld [vmem:[#allocation5] sm:$0xf]  ;;  %v3080_v19 = vor.u32 %v3995_v11, %v3079_v9 }
  0x2f   :  { %525 = vmatpush.bf16.msra.mxu0 %v2984_v56  ;;  %v3081_v15 = vld [vmem:[#allocation5 + $0x130] sm:$0xf0]  ;;  %v3959_v18 = vld [vmem:[#allocation5 + $0xc] sm:$0xf0]  ;;  %v2956_v20 = vor.u32 %v3961_v12, %v2953_v13  ;;  %v3063_v21 = vld [vmem:[#allocation5 + $0x100] sm:$0xf] }
  0x30   :  { %543 = vmatpush.bf16.msra.mxu1 %v3112_v57  ;;  %v3991_v22 = vld [vmem:[#allocation5 + $0x10c] sm:$0xf0]  ;;  %v3957_v23 = vld [vmem:[#allocation5 + $0x4] sm:$0xf]  ;;  %v3084_v24 = vor.u32 %v3993_v14, %v3081_v15  ;;  %v2937_v25 = vld [vmem:[#allocation5 + $0x10] sm:$0xf0]  ;;  %v2936_v31 = vor.u32 %v3959_v18, %v2935_v17 }
  0x31   :  { %561 = vmatpush.bf16.msra.mxu2 %v2988_v58  ;;  %v3989_v26 = vld [vmem:[#allocation5 + $0x104] sm:$0xf]  ;;  %v3065_v27 = vld [vmem:[#allocation5 + $0x110] sm:$0xf0]  ;;  %v3986_v29 = vld [vmem:[#allocation5 + $0xec] sm:$0xf]  ;;  %v3064_v35 = vor.u32 %v3991_v22, %v3063_v21  ;;  %v2940_v36 = vor.u32 %v3957_v23, %v2937_v25 }
  0x32   :  { %579 = vmatpush.bf16.msra.mxu3 %v3116_v62  ;;  %v117_v28 = vld [vmem:[#allocation2] sm:$0xff]  ;;  %v3057_v30 = vld [vmem:[#allocation5 + $0xf8] sm:$0xf0]  ;;  %v119_v32 = vld [vmem:[#allocation2 + $0x10] sm:$0xff]  ;;  %v3068_v39 = vor.u32 %v3989_v26, %v3065_v27  ;;  %s2917_s13 = sshll.u32 %s5349_s7, 4  ;;  %s2918_s13 = int_to_ptr.hbm [resolvable:$true] %s2917_s13 }
  0x33   :  { %526 = vmatpush.bf16.msra.mxu0 %v2968_v4  ;;  %v3183_v33 = vld [vmem:[#allocation5 + $0x1e8] sm:$0xf]  ;;  %v4020_v34 = vld [vmem:[#allocation5 + $0x1f4] sm:$0xf0]  ;;  %v3060_v40 = vor.u32 %v3986_v29, %v3057_v30  ;;  %v4018_v43 = vld [vmem:[#allocation5 + $0x1ec] sm:$0xf]  ;;  %v4578_v44 = vpack.c.bf16 %v119_v32, %v117_v28 }
  0x34   :  { %544 = vmatpush.bf16.msra.mxu1 %v3096_v5  ;;  %v118_v37 = vld [vmem:[#allocation2 + $0x8] sm:$0xff]  ;;  %v120_v38 = vld [vmem:[#allocation2 + $0x18] sm:$0xff]  ;;  %v3184_v45 = vor.u32 %v4020_v34, %v3183_v33  ;;  %v121_v22 = vld [vmem:[#allocation2 + $0x20] sm:$0xff] }
  0x35   :  { %562 = vmatpush.bf16.msra.mxu2 %v2972_v6  ;;  %v3055_v41 = vld [vmem:[#allocation5 + $0xe8] sm:$0xf]  ;;  %v3988_v42 = vld [vmem:[#allocation5 + $0xf4] sm:$0xf0]  ;;  %v3185_v46 = vld [vmem:[#allocation5 + $0x1f8] sm:$0xf0]  ;;  %v4580_v49 = vpack.c.bf16 %v120_v38, %v118_v37  ;;  %v4586_v32 = vpack.c.bf16 %v121_v22, %v121_v22 }
  0x36   :  { %580 = vmatpush.bf16.msra.mxu3 %v3100_v10  ;;  %v3982_v47 = vld [vmem:[#allocation5 + $0xcc] sm:$0xf]  ;;  %v3041_v48 = vld [vmem:[#allocation5 + $0xd8] sm:$0xf0]  ;;  %v3167_v50 = vld [vmem:[#allocation5 + $0x1c8] sm:$0xf]  ;;  %v3056_v52 = vor.u32 %v3988_v42, %v3055_v41  ;;  %v3188_v53 = vor.u32 %v4018_v43, %v3185_v46 }
  0x37   :  { %527 = vmatpush.bf16.msra.mxu0 %v2952_v16  ;;  %v4016_v51 = vld [vmem:[#allocation5 + $0x1d4] sm:$0xf0]  ;;  %v3044_v54 = vor.u32 %v3982_v47, %v3041_v48  ;;  %v3039_v55 = vld [vmem:[#allocation5 + $0xc8] sm:$0xf]  ;;  %v4014_v57 = vld [vmem:[#allocation5 + $0x1cc] sm:$0xf] }
  0x38   :  { %545 = vmatpush.bf16.msra.mxu1 %v3080_v19  ;;  %v3984_v56 = vld [vmem:[#allocation5 + $0xd4] sm:$0xf0]  ;;  %v3168_v58 = vor.u32 %v4016_v51, %v3167_v50  ;;  %v3169_v59 = vld [vmem:[#allocation5 + $0x1d8] sm:$0xf0]  ;;  %v3978_v60 = vld [vmem:[#allocation5 + $0xac] sm:$0xf] }
  0x39   :  { %563 = vmatpush.bf16.msra.mxu2 %v2956_v20  ;;  %v3025_v61 = vld [vmem:[#allocation5 + $0xb8] sm:$0xf0]  ;;  %v3151_v62 = vld [vmem:[#allocation5 + $0x1a8] sm:$0xf]  ;;  %v4012_v63 = vld [vmem:[#allocation5 + $0x1b4] sm:$0xf0]  ;;  %v3040_v0 = vor.u32 %v3984_v56, %v3039_v55  ;;  %v3172_v1 = vor.u32 %v4014_v57, %v3169_v59 }
  0x3a   :  { %581 = vmatpush.bf16.msra.mxu3 %v3084_v24  ;;  %v3028_v2 = vor.u32 %v3978_v60, %v3025_v61  ;;  %v3023_v3 = vld [vmem:[#allocation5 + $0xa8] sm:$0xf]  ;;  %v3980_v4 = vld [vmem:[#allocation5 + $0xb4] sm:$0xf0]  ;;  %v4010_v5 = vld [vmem:[#allocation5 + $0x1ac] sm:$0xf]  ;;  %v3152_v6 = vor.u32 %v4012_v63, %v3151_v62 }
  0x3b   :  { %528 = vmatpush.bf16.msra.mxu0 %v2936_v31  ;;  %v3153_v7 = vld [vmem:[#allocation5 + $0x1b8] sm:$0xf0]  ;;  %v3974_v8 = vld [vmem:[#allocation5 + $0x8c] sm:$0xf]  ;;  %v3135_v10 = vld [vmem:[#allocation5 + $0x188] sm:$0xf]  ;;  %v3024_v12 = vor.u32 %v3980_v4, %v3023_v3 }
  0x3c   :  { %546 = vmatpush.bf16.msra.mxu1 %v3064_v35  ;;  %v3009_v9 = vld [vmem:[#allocation5 + $0x98] sm:$0xf0]  ;;  %v4008_v11 = vld [vmem:[#allocation5 + $0x194] sm:$0xf0]  ;;  %v3156_v13 = vor.u32 %v4010_v5, %v3153_v7  ;;  %v3007_v15 = vld [vmem:[#allocation5 + $0x88] sm:$0xf] }
  0x3d   :  { %564 = vmatpush.bf16.msra.mxu2 %v2940_v36  ;;  %v3012_v14 = vor.u32 %v3974_v8, %v3009_v9  ;;  %v3976_v16 = vld [vmem:[#allocation5 + $0x94] sm:$0xf0]  ;;  %v4006_v17 = vld [vmem:[#allocation5 + $0x18c] sm:$0xf]  ;;  %v3136_v18 = vor.u32 %v4008_v11, %v3135_v10  ;;  %v3137_v19 = vld [vmem:[#allocation5 + $0x198] sm:$0xf0] }
  0x3e   :  { %582 = vmatpush.bf16.msra.mxu3 %v3068_v39  ;;  %529 = vmatmul.bf16.vlgmr.msra.gmra.mxu0 %v4578_v44  ;;  %v3970_v20 = vld [vmem:[#allocation5 + $0x6c] sm:$0xf]  ;;  %v2993_v21 = vld [vmem:[#allocation5 + $0x78] sm:$0xf0]  ;;  %v3119_v23 = vld [vmem:[#allocation5 + $0x168] sm:$0xf]  ;;  %v3008_v25 = vor.u32 %v3976_v16, %v3007_v15  ;;  %v3140_v27 = vor.u32 %v4006_v17, %v3137_v19 }
  0x3f   :  { %547 = vmatmul.bf16.vlgmr.msra.gmra.mxu1 %v4580_v49  ;;  %593 = vmatpush.bf16.msrb.mxu0 %v3056_v52  ;;  %v4004_v24 = vld [vmem:[#allocation5 + $0x174] sm:$0xf0]  ;;  %v2996_v28 = vor.u32 %v3970_v20, %v2993_v21  ;;  %v2991_v29 = vld [vmem:[#allocation5 + $0x68] sm:$0xf]  ;;  %v4002_v31 = vld [vmem:[#allocation5 + $0x16c] sm:$0xf] }
  0x40   :  { %611 = vmatpush.bf16.msrb.mxu1 %v3184_v45  ;;  %565 = vmatmul.bf16.vlgmr.msra.gmra.mxu2 %v4578_v44  ;;  %v122_v26 = vld [vmem:[#allocation2 + $0x28] sm:$0xff]  ;;  %v3120_v33 = vor.u32 %v4004_v24, %v3119_v23  ;;  %v3966_v35 = vld [vmem:[#allocation5 + $0x4c] sm:$0xf]  ;;  %v3103_v38 = vld [vmem:[#allocation5 + $0x148] sm:$0xf] }
  0x41   :  { %629 = vmatpush.bf16.msrb.mxu2 %v3060_v40  ;;  %583 = vmatmul.bf16.vlgmr.msra.gmra.mxu3 %v4580_v49  ;;  %v3972_v30 = vld [vmem:[#allocation5 + $0x74] sm:$0xf0]  ;;  %v3121_v34 = vld [vmem:[#allocation5 + $0x178] sm:$0xf0]  ;;  %v4588_v37 = vpack.c.bf16 %v122_v26, %v122_v26  ;;  %v2975_v43 = vld [vmem:[#allocation5 + $0x48] sm:$0xf] }
  0x42   :  { %647 = vmatpush.bf16.msrb.mxu3 %v3188_v53  ;;  %v2977_v36 = vld [vmem:[#allocation5 + $0x58] sm:$0xf0]  ;;  %v4000_v39 = vld [vmem:[#allocation5 + $0x154] sm:$0xf0]  ;;  %v2992_v40 = vor.u32 %v3972_v30, %v2991_v29  ;;  %v3124_v41 = vor.u32 %v4002_v31, %v3121_v34  ;;  %v3998_v46 = vld [vmem:[#allocation5 + $0x14c] sm:$0xf] }
  0x43   :  { %594 = vmatpush.bf16.msrb.mxu0 %v3040_v0  ;;  %v2980_v42 = vor.u32 %v3966_v35, %v2977_v36  ;;  %v3968_v45 = vld [vmem:[#allocation5 + $0x54] sm:$0xf0]  ;;  %v3104_v47 = vor.u32 %v4000_v39, %v3103_v38  ;;  %v3105_v48 = vld [vmem:[#allocation5 + $0x158] sm:$0xf0]  ;;  %v3962_v50 = vld [vmem:[#allocation5 + $0x2c] sm:$0xf] }
  0x44   :  { %612 = vmatpush.bf16.msrb.mxu1 %v3168_v58  ;;  %v2961_v51 = vld [vmem:[#allocation5 + $0x38] sm:$0xf0]  ;;  %v3087_v52 = vld [vmem:[#allocation5 + $0x128] sm:$0xf]  ;;  %v3996_v53 = vld [vmem:[#allocation5 + $0x134] sm:$0xf0]  ;;  %v3108_v55 = vor.u32 %v3998_v46, %v3105_v48 }
  0x45   :  { %630 = vmatpush.bf16.msrb.mxu2 %v3044_v54  ;;  %v2976_v54 = vor.u32 %v3968_v45, %v2975_v43  ;;  %v2964_v56 = vor.u32 %v3962_v50, %v2961_v51  ;;  %v2959_v57 = vld [vmem:[#allocation5 + $0x28] sm:$0xf]  ;;  %v3964_v58 = vld [vmem:[#allocation5 + $0x34] sm:$0xf0]  ;;  %v3994_v59 = vld [vmem:[#allocation5 + $0x12c] sm:$0xf]  ;;  %v3088_v60 = vor.u32 %v3996_v53, %v3087_v52 }
  0x46   :  { %648 = vmatpush.bf16.msrb.mxu3 %v3172_v1  ;;  %v3089_v61 = vld [vmem:[#allocation5 + $0x138] sm:$0xf0]  ;;  %v3958_v62 = vld [vmem:[#allocation5 + $0xc] sm:$0xf]  ;;  %v3071_v0 = vld [vmem:[#allocation5 + $0x108] sm:$0xf] }
  0x47   :  { %595 = vmatpush.bf16.msrb.mxu0 %v3024_v12  ;;  %v2945_v63 = vld [vmem:[#allocation5 + $0x18] sm:$0xf0]  ;;  %v3992_v1 = vld [vmem:[#allocation5 + $0x114] sm:$0xf0]  ;;  %v3092_v3 = vor.u32 %v3994_v59, %v3089_v61  ;;  %v2943_v5 = vld [vmem:[#allocation5 + $0x8] sm:$0xf] }
  0x48   :  { %613 = vmatpush.bf16.msrb.mxu1 %v3152_v6  ;;  %v2948_v4 = vor.u32 %v3958_v62, %v2945_v63  ;;  %v3960_v6 = vld [vmem:[#allocation5 + $0x14] sm:$0xf0]  ;;  %v3072_v7 = vor.u32 %v3992_v1, %v3071_v0  ;;  %v3990_v8 = vld [vmem:[#allocation5 + $0x10c] sm:$0xf]  ;;  %v3073_v9 = vld [vmem:[#allocation5 + $0x118] sm:$0xf0] }
  0x49   :  { %631 = vmatpush.bf16.msrb.mxu2 %v3028_v2  ;;  %v2960_v2 = vor.u32 %v3964_v58, %v2959_v57  ;;  %v2944_v10 = vor.u32 %v3960_v6, %v2943_v5  ;;  %v3076_v11 = vor.u32 %v3990_v8, %v3073_v9  ;;  %v4602_v12 = vld [vmem:[#allocation7] sm:$0xf]  ;;  %v3431_v21 = vld [vmem:[#allocation8 + $0x1e0] sm:$0xf]  ;;  %v4083_v22 = vld [vmem:[#allocation8 + $0x1ec] sm:$0xf0] }
  0x4a   :  { %649 = vmatpush.bf16.msrb.mxu3 %v3156_v13  ;;  %v3303_v13 = vld [vmem:[#allocation8 + $0xe0] sm:$0xf]  ;;  %v193_v15 = vperm.slane %v4602_v12, 0  ;;  %v3432_v24 = vor.u32 %v4083_v22, %v3431_v21  ;;  %v4079_v31 = vld [vmem:[#allocation8 + $0x1cc] sm:$0xf0]  ;;  %v4641_v9 = vperm.slane %v4602_v12, 2 }
  0x4b   :  { %596 = vmatpush.bf16.msrb.mxu0 %v3008_v25  ;;  %v4606_v25 = vperm.slane %v4602_v12, 1  ;;  %v3271_v26 = vld [vmem:[#allocation8 + $0xa0] sm:$0xf]  ;;  %v4039_v50 = vld [vmem:[#allocation8 + $0x8c] sm:$0xf0] }
  0x4c   :  { %614 = vmatpush.bf16.msrb.mxu1 %v3136_v18  ;;  %v4047_v18 = vld [vmem:[#allocation8 + $0xcc] sm:$0xf0]  ;;  %v3415_v30 = vld [vmem:[#allocation8 + $0x1c0] sm:$0xf] }
  0x4d   :  { %632 = vmatpush.bf16.msrb.mxu2 %v3012_v14  ;;  %v4051_v14 = vld [vmem:[#allocation8 + $0xec] sm:$0xf0]  ;;  %v3416_v34 = vor.u32 %v4079_v31, %v3415_v30  ;;  %v3255_v48 = vld [vmem:[#allocation8 + $0x80] sm:$0xf] }
  0x4e   :  { %650 = vmatpush.bf16.msrb.mxu3 %v3140_v27  ;;  %534 = vmatmul.bf16.gmra.mxu0 %v4586_v32  ;;  %v3304_v16 = vor.u32 %v4051_v14, %v3303_v13  ;;  %v4043_v27 = vld [vmem:[#allocation8 + $0xac] sm:$0xf0]  ;;  %v3256_v61 = vor.u32 %v4039_v50, %v3255_v48  ;;  %v3399_v13 = vld [vmem:[#allocation8 + $0x1a0] sm:$0xf] }
  0x4f   :  { %552 = vmatmul.bf16.gmra.mxu1 %v4588_v37  ;;  %597 = vmatpush.bf16.msrb.mxu0 %v2992_v40  ;;  %v3272_v29 = vor.u32 %v4043_v27, %v3271_v26  ;;  %v4075_v14 = vld [vmem:[#allocation8 + $0x1ac] sm:$0xf0] }
  0x50   :  { %615 = vmatpush.bf16.msrb.mxu1 %v3120_v33  ;;  %570 = vmatmul.bf16.gmra.mxu2 %v4586_v32 }
  0x51   :  { %633 = vmatpush.bf16.msrb.mxu2 %v2996_v28  ;;  %588 = vmatmul.bf16.gmra.mxu3 %v4588_v37 }
  0x52   :  { %651 = vmatpush.bf16.msrb.mxu3 %v3124_v41 }
  0x53   :  { %598 = vmatpush.bf16.msrb.mxu0 %v2976_v54 }
  0x54   :  { %616 = vmatpush.bf16.msrb.mxu1 %v3104_v47 }
  0x55   :  { %634 = vmatpush.bf16.msrb.mxu2 %v2980_v42 }
  0x56   :  { %652 = vmatpush.bf16.msrb.mxu3 %v3108_v55 }
  0x57   :  { %599 = vmatpush.bf16.msrb.mxu0 %v2960_v2 }
  0x58   :  { %617 = vmatpush.bf16.msrb.mxu1 %v3088_v60 }
  0x59   :  { %635 = vmatpush.bf16.msrb.mxu2 %v2964_v56 }
  0x5a   :  { %653 = vmatpush.bf16.msrb.mxu3 %v3092_v3 }
  0x5b   :  { %600 = vmatpush.bf16.msrb.mxu0 %v2944_v10 }
  0x5c   :  { %618 = vmatpush.bf16.msrb.mxu1 %v3072_v7 }
  0x5d   :  { %636 = vmatpush.bf16.msrb.mxu2 %v2948_v4 }
  0x5e   :  { %654 = vmatpush.bf16.msrb.mxu3 %v3076_v11  ;;  %601 = vmatmul.bf16.vlgmr.msrb.gmra.mxu0 %v4578_v44 }
  0x5f   :  { %619 = vmatmul.bf16.vlgmr.msrb.gmra.mxu1 %v4580_v49  ;;  %1763 = vmatpush.bf16.msra.mxu0 %v3304_v16 }
  0x60   :  { %637 = vmatmul.bf16.vlgmr.msrb.gmra.mxu2 %v4578_v44  ;;  %v3287_v44 = vld [vmem:[#allocation8 + $0xc0] sm:$0xf]  ;;  %1781 = vmatpush.bf16.msra.mxu1 %v3432_v24 }
  0x61   :  { %655 = vmatmul.bf16.vlgmr.msrb.gmra.mxu3 %v4580_v49  ;;  %v3288_v20 = vor.u32 %v4047_v18, %v3287_v44 }
  0x63   :  { %1764 = vmatpush.bf16.msra.mxu0 %v3288_v20 }
  0x64   :  { %1782 = vmatpush.bf16.msra.mxu1 %v3416_v34  ;;  %v3239_v34 = vld [vmem:[#allocation8 + $0x60] sm:$0xf] }
  0x67   :  { %1765 = vmatpush.bf16.msra.mxu0 %v3272_v29  ;;  %v3400_v29 = vor.u32 %v4075_v14, %v3399_v13 }
  0x69   :  { %1783 = vmatpush.bf16.msra.mxu1 %v3400_v29 }
  0x6b   :  { %1766 = vmatpush.bf16.msra.mxu0 %v3256_v61 }
  0x6e   :  { %606 = vmatmul.bf16.gmra.mxu0 %v4586_v32 }
  0x6f   :  { %624 = vmatmul.bf16.gmra.mxu1 %v4588_v37 }
  0x70   :  { %642 = vmatmul.bf16.gmra.mxu2 %v4586_v32 }
  0x71   :  { %660 = vmatmul.bf16.gmra.mxu3 %v4588_v37 }
  0xbb   :  { %v530_v17 = vpop.f32.mrf.mxu0 }
  0xbc   :  { %v531_v49 = vadd.f32 %v530_v17, %v193_v15  ;;  %v548_v19 = vpop.f32.mrf.mxu1 }
  0xbe   :  { %v549_v23 = vadd.f32 %v548_v19, %v531_v49  ;;  %v4654_v19 = vperm.slane %v4602_v12, 3 }
  0xc0   :  { %v677_v28 = vmul.f32 0.70710677, %v549_v23  ;;  %v4635_v6 = vmul.f32 0.5, %v549_v23 }
  0xc2   :  { %v713_v32 = vand.u32 2147483647, %v677_v28  ;;  %vm689_vm0 = vcmp.ge.f32.partialorder %v677_v28, 0.0 }
  0xc3   :  { %v566_v33 = vpop.f32.mrf.mxu2  ;;  %v532_v37 = vpop.f32.mrf.mxu0 }
  0xc4   :  { %v567_v35 = vadd.f32 %v566_v33, %v4606_v25  ;;  %v584_v36 = vpop.f32.mrf.mxu3  ;;  %v725_v38 = vmul.f32 0.3275911, %v713_v32  ;;  %v533_v39 = vadd.f32 %v532_v37, %v193_v15  ;;  %v550_v40 = vpop.f32.mrf.mxu1  ;;  %v869_v57 = vsub.f32 0.0, %v713_v32 }
  0xc6   :  { %v585_v41 = vadd.f32 %v584_v36, %v567_v35  ;;  %v737_v42 = vadd.f32 1.0, %v725_v38  ;;  %v4609_v43 = vadd.f32 %v550_v40, %v533_v39  ;;  %v881_v4 = vmul.f32 %v869_v57, %v713_v32  ;;  %v4035_v38 = vld [vmem:[#allocation8 + $0x6c] sm:$0xf0]  ;;  %v3383_v40 = vld [vmem:[#allocation8 + $0x180] sm:$0xf] }
  0xc7   :  { %v4031_v57 = vld [vmem:[#allocation8 + $0x4c] sm:$0xf0] }
  0xc8   :  { %v4611_v45 = vmul.f32 0.70710677, %v585_v41  ;;  %4225 = vrcp.f32 %v737_v42  ;;  %v4614_v46 = vmul.f32 0.70710677, %v4609_v43  ;;  %v4656_v20 = vmul.f32 1.442695, %v881_v4 }
  0xc9   :  { %v4658_v21 = vmul.f32 0.5, %v585_v41  ;;  %v4071_v41 = vld [vmem:[#allocation8 + $0x18c] sm:$0xf0] }
  0xca   :  { %v4617_v47 = vand.u32 2147483647, %v4611_v45  ;;  %v4620_v51 = vand.u32 2147483647, %v4614_v46  ;;  %vm690_vm1 = vcmp.ge.f32.partialorder %v4611_v45, 0.0  ;;  %vm693_vm2 = vcmp.ge.f32.partialorder %v4614_v46, 0.0 }
  0xcb   :  { %v568_v52 = vpop.f32.mrf.mxu2  ;;  %v535_v56 = vpop.f32.mrf.mxu0 }
  0xcc   :  { %v726_v53 = vmul.f32 0.3275911, %v4617_v47  ;;  %v569_v54 = vadd.f32 %v568_v52, %v4606_v25  ;;  %v586_v55 = vpop.f32.mrf.mxu3  ;;  %v729_v58 = vmul.f32 0.3275911, %v4620_v51  ;;  %v536_v59 = vadd.f32 %v535_v56, %v193_v15  ;;  %v553_v60 = vpop.f32.mrf.mxu1  ;;  %v3223_v56 = vld [vmem:[#allocation8 + $0x40] sm:$0xf] }
  0xcd   :  { %v4509_v15 = vmov -1.0   ;;  %v870_v31 = vsub.f32 0.0, %v4617_v47  ;;  %v873_v36 = vsub.f32 0.0, %v4620_v51  ;;  %v3224_v13 = vor.u32 %v4031_v57, %v3223_v56 }
  0xce   :  { %v738_v62 = vadd.f32 1.0, %v726_v53  ;;  %v4625_v63 = vadd.f32 %v586_v55, %v569_v54  ;;  %v4627_v0 = vpop.eup %4225  ;;  %v741_v1 = vadd.f32 1.0, %v729_v58  ;;  %v4629_v2 = vadd.f32 %v553_v60, %v536_v59 }
  0xcf   :  { %v761_v3 = vmul.f32 1.0614054, %v4627_v0  ;;  %v4647_v16 = vsel %vm689_vm0, 1.0, %v4509_v15  ;;  %v882_v52 = vmul.f32 %v870_v31, %v4617_v47  ;;  %v3240_v55 = vor.u32 %v4035_v38, %v3239_v34 }
  0xd0   :  { %4227 = vrcp.f32 %v738_v62  ;;  %v4633_v5 = vmul.f32 0.70710677, %v4625_v63  ;;  %v4638_v8 = vmul.f32 0.70710677, %v4629_v2  ;;  %v4682_v58 = vmul.f32 0.5, %v4609_v43 }
  0xd1   :  { %4229 = vrcp.f32 %v741_v1  ;;  %v773_v7 = vadd.f32 -1.4531521, %v761_v3  ;;  %v885_v60 = vmul.f32 %v873_v36, %v4620_v51  ;;  %v3384_v62 = vor.u32 %v4071_v41, %v3383_v40  ;;  %v3367_v1 = vld [vmem:[#allocation8 + $0x160] sm:$0xf]  ;;  %v4067_v3 = vld [vmem:[#allocation8 + $0x16c] sm:$0xf0]  ;;  %1767 = vmatpush.bf16.msra.mxu0 %v3240_v55 }
  0xd2   :  { %v4644_v10 = vand.u32 2147483647, %v4633_v5  ;;  %v4651_v44 = vand.u32 2147483647, %v4638_v8  ;;  %v4689_v47 = vsel %vm690_vm1, 1.0, %v4509_v15  ;;  %v4698_v51 = vsel %vm693_vm2, 1.0, %v4509_v15 }
  0xd3   :  { %v571_v11 = vpop.f32.mrf.mxu2  ;;  %v785_v17 = vmul.f32 %v4627_v0, %v773_v7  ;;  %v537_v49 = vpop.f32.mrf.mxu0  ;;  %1784 = vmatpush.bf16.msra.mxu1 %v3384_v62  ;;  %v901_v29 = vmul.f32 1.442695, %v885_v60  ;;  %vm694_vm3 = vcmp.ge.f32.partialorder %v4633_v5, 0.0  ;;  %vm697_vm4 = vcmp.ge.f32.partialorder %v4638_v8, 0.0 }
  0xd4   :  { %v589_v18 = vpop.f32.mrf.mxu3  ;;  %v730_v22 = vmul.f32 0.3275911, %v4644_v10  ;;  %v572_v23 = vadd.f32 %v571_v11, %v4606_v25  ;;  %v555_v24 = vpop.f32.mrf.mxu1  ;;  %v733_v28 = vmul.f32 0.3275911, %v4651_v44 }
  0xd5   :  { %v797_v27 = vadd.f32 1.4214138, %v785_v17  ;;  %v3368_v24 = vor.u32 %v4067_v3, %v3367_v1  ;;  %1768 = vmatpush.bf16.msra.mxu0 %v3224_v13 }
  0xd6   :  { %v4662_v26 = vpop.eup %4227  ;;  %v742_v32 = vadd.f32 1.0, %v730_v22  ;;  %v4670_v33 = vadd.f32 %v589_v18, %v572_v23  ;;  %v745_v37 = vadd.f32 1.0, %v733_v28  ;;  %v895_v22 = vmul.f32 1.442695, %v882_v52 }
  0xd7   :  { %v4666_v30 = vpop.eup %4229  ;;  %v762_v12 = vmul.f32 1.0614054, %v4662_v26  ;;  %v809_v25 = vmul.f32 %v4627_v0, %v797_v27  ;;  %1785 = vmatpush.bf16.msra.mxu1 %v3368_v24  ;;  %v4747_v24 = vsel %vm697_vm4, 1.0, %v4509_v15 }
  0xd8   :  { %v765_v35 = vmul.f32 1.0614054, %v4666_v30  ;;  %4231 = vrcp.f32 %v742_v32  ;;  %v4679_v53 = vmul.f32 0.70710677, %v4670_v33  ;;  %v4712_v32 = vmul.f32 0.5, %v4625_v63 }
  0xd9   :  { %v774_v39 = vadd.f32 -1.4531521, %v762_v12  ;;  %v821_v42 = vadd.f32 -0.28449672, %v809_v25  ;;  %4233 = vrcp.f32 %v745_v37  ;;  %v4720_v63 = vmul.f32 0.5, %v4629_v2 }
  0xda   :  { %v777_v48 = vadd.f32 -1.4531521, %v765_v35  ;;  %v4692_v7 = vand.u32 2147483647, %v4679_v53  ;;  %4235 = vpow2.f32 %v4656_v20  ;;  %vm698_vm5 = vcmp.ge.f32.partialorder %v4679_v53, 0.0 }
  0xdb   :  { %v786_v50 = vmul.f32 %v4662_v26, %v774_v39  ;;  %v573_v54 = vpop.f32.mrf.mxu2  ;;  %v602_v11 = vpop.f32.mrf.mxu0  ;;  %v833_v14 = vmul.f32 %v4627_v0, %v821_v42  ;;  %v874_v39 = vsub.f32 0.0, %v4644_v10  ;;  %v877_v42 = vsub.f32 0.0, %v4651_v44 }
  0xdc   :  { %v789_v59 = vmul.f32 %v4666_v30, %v777_v48  ;;  %v591_v61 = vpop.f32.mrf.mxu3  ;;  %v620_v43 = vpop.f32.mrf.mxu1  ;;  %v603_v45 = vadd.f32 %v602_v11, %v4641_v9  ;;  %v734_v23 = vmul.f32 0.3275911, %v4692_v7 }
  0xdd   :  { %v798_v4 = vadd.f32 1.4214138, %v786_v50  ;;  %v845_v35 = vadd.f32 0.2548296, %v833_v14  ;;  %v886_v61 = vmul.f32 %v874_v39, %v4644_v10 }
  0xde   :  { %v801_v17 = vadd.f32 1.4214138, %v789_v59  ;;  %v4701_v18 = vpop.eup %4231  ;;  %v4709_v12 = vadd.f32 %v620_v43, %v603_v45  ;;  %v746_v25 = vadd.f32 1.0, %v734_v23 }
  0xdf   :  { %v810_v49 = vmul.f32 %v4662_v26, %v798_v4  ;;  %v4705_v27 = vpop.eup %4233  ;;  %v766_v46 = vmul.f32 1.0614054, %v4701_v18  ;;  %v857_v59 = vmul.f32 %v4627_v0, %v845_v35  ;;  %v4734_v4 = vsel %vm694_vm3, 1.0, %v4509_v15 }
  0xe0   :  { %v813_v28 = vmul.f32 %v4666_v30, %v801_v17  ;;  %v769_v34 = vmul.f32 1.0614054, %v4705_v27  ;;  %4237 = vrcp.f32 %v746_v25  ;;  %v4724_v48 = vmul.f32 0.70710677, %v4709_v12  ;;  %v4236_v3 = vpop.eup %4235 }
  0xe1   :  { %v822_v31 = vadd.f32 -0.28449672, %v810_v49  ;;  %v778_v37 = vadd.f32 -1.4531521, %v766_v46  ;;  %4239 = vpow2.f32 %v895_v22  ;;  %v889_v0 = vmul.f32 %v877_v42, %v4651_v44 }
  0xe2   :  { %v825_v36 = vadd.f32 -0.28449672, %v813_v28  ;;  %v781_v40 = vadd.f32 -1.4531521, %v769_v34  ;;  %4241 = vpow2.f32 %v901_v29  ;;  %v715_v1 = vand.u32 2147483647, %v4724_v48 }
  0xe3   :  { %v834_v38 = vmul.f32 %v4662_v26, %v822_v31  ;;  %v790_v41 = vmul.f32 %v4701_v18, %v778_v37  ;;  %v638_v20 = vpop.f32.mrf.mxu2  ;;  %v604_v56 = vpop.f32.mrf.mxu0  ;;  %v917_v17 = vmul.f32 %v4236_v3, %v857_v59  ;;  %v903_v23 = vmul.f32 1.442695, %v886_v61 }
  0xe4   :  { %v656_v50 = vpop.f32.mrf.mxu3  ;;  %v837_v54 = vmul.f32 %v4666_v30, %v825_v36  ;;  %v793_v55 = vmul.f32 %v4705_v27, %v781_v40  ;;  %v622_v57 = vpop.f32.mrf.mxu1  ;;  %v639_v60 = vadd.f32 %v638_v20, %v4654_v19  ;;  %v727_v14 = vmul.f32 0.3275911, %v715_v1 }
  0xe5   :  { %v846_v52 = vadd.f32 0.2548296, %v834_v38  ;;  %v802_v2 = vadd.f32 1.4214138, %v790_v41  ;;  %v929_v40 = vsub.f32 1.0, %v917_v17  ;;  %v878_v42 = vsub.f32 0.0, %v4692_v7 }
  0xe6   :  { %v805_v62 = vadd.f32 1.4214138, %v793_v55  ;;  %v4739_v11 = vpop.eup %4237  ;;  %v849_v13 = vadd.f32 0.2548296, %v837_v54  ;;  %v4744_v22 = vadd.f32 %v656_v50, %v639_v60  ;;  %v739_v44 = vadd.f32 1.0, %v727_v14 }
  0xe7   :  { %v814_v5 = vmul.f32 %v4701_v18, %v802_v2  ;;  %v858_v43 = vmul.f32 %v4662_v26, %v846_v52  ;;  %v770_v49 = vmul.f32 1.0614054, %v4739_v11  ;;  %v4240_v28 = vpop.eup %4239  ;;  %v909_v26 = vmul.f32 1.442695, %v889_v0 }
  0xe8   :  { %v817_v10 = vmul.f32 %v4705_v27, %v805_v62  ;;  %v4242_v25 = vpop.eup %4241  ;;  %v861_v36 = vmul.f32 %v4666_v30, %v849_v13  ;;  %4243 = vrcp.f32 %v739_v44  ;;  %v4760_v20 = vmul.f32 0.70710677, %v4744_v22 }
  0xe9   :  { %v826_v45 = vadd.f32 -0.28449672, %v814_v5  ;;  %v782_v46 = vadd.f32 -1.4531521, %v770_v49  ;;  %v918_v35 = vmul.f32 %v4240_v28, %v858_v43  ;;  %4245 = vpow2.f32 %v903_v23 }
  0xea   :  { %v829_v8 = vadd.f32 -0.28449672, %v817_v10  ;;  %v4763_v52 = vmul.f32 0.5, %v4670_v33  ;;  %v605_v30 = vadd.f32 %v604_v56, %v4641_v9  ;;  %4247 = vpow2.f32 %v909_v26 }
  0xeb   :  { %v838_v29 = vmul.f32 %v4701_v18, %v826_v45  ;;  %v640_v31 = vpop.f32.mrf.mxu2  ;;  %v4753_v38 = vpop.f32.mrf.mxu0  ;;  %v794_v41 = vmul.f32 %v4739_v11, %v782_v46  ;;  %v871_v59 = vsub.f32 0.0, %v715_v1  ;;  %v930_v2 = vsub.f32 1.0, %v918_v35 }
  0xec   :  { %v658_v34 = vpop.f32.mrf.mxu3  ;;  %v841_v37 = vmul.f32 %v4705_v27, %v829_v8  ;;  %v4755_v39 = vpop.f32.mrf.mxu1  ;;  %v921_v60 = vmul.f32 %v4242_v25, %v861_v36  ;;  %v4769_v61 = vsel %vm698_vm5, 1.0, %v4509_v15  ;;  %v716_v62 = vand.u32 2147483647, %v4760_v20 }
  0xed   :  { %v850_v54 = vadd.f32 0.2548296, %v838_v29  ;;  %v806_v55 = vadd.f32 1.4214138, %v794_v41  ;;  %v941_v3 = vmul.f32 %v929_v40, %v4647_v16  ;;  %v890_v5 = vmul.f32 %v878_v42, %v4692_v7 }
  0xee   :  { %v853_v50 = vadd.f32 0.2548296, %v841_v37  ;;  %v4775_v56 = vadd.f32 %v622_v57, %v605_v30  ;;  %v4777_v0 = vpop.eup %4243  ;;  %vm691_vm6 = vcmp.ge.f32.partialorder %v4724_v48, 0.0  ;;  %v728_v13 = vmul.f32 0.3275911, %v716_v62 }
  0xef   :  { %v818_v33 = vmul.f32 %v4739_v11, %v806_v55  ;;  %v641_v53 = vadd.f32 %v640_v31, %v4654_v19  ;;  %v862_v10 = vmul.f32 %v4701_v18, %v850_v54  ;;  %v763_v16 = vmul.f32 1.0614054, %v4777_v0  ;;  %v4246_v57 = vpop.eup %4245 }
  0xf0   :  { %v865_v43 = vmul.f32 %v4705_v27, %v853_v50  ;;  %v883_v17 = vmul.f32 %v871_v59, %v715_v1  ;;  %v942_v49 = vmul.f32 %v930_v2, %v4689_v47  ;;  %v933_v23 = vsub.f32 1.0, %v921_v60  ;;  %v4248_v29 = vpop.eup %4247 }
  0xf1   :  { %v830_v14 = vadd.f32 -0.28449672, %v818_v33  ;;  %v740_v27 = vadd.f32 1.0, %v728_v13  ;;  %v4790_v8 = vmul.f32 0.70710677, %v4775_v56  ;;  %v4793_v1 = vadd.f32 %v658_v34, %v641_v53 }
  0xf2   :  { %v911_v26 = vmul.f32 1.442695, %v890_v5  ;;  %v775_v46 = vadd.f32 -1.4531521, %v763_v16  ;;  %v953_v31 = vadd.f32 1.0, %v941_v3  ;;  %v925_v25 = vmul.f32 %v4248_v29, %v865_v43 }
  0xf3   :  { %v4784_v45 = vpop.f32.mrf.mxu2  ;;  %v609_v44 = vpop.f32.mrf.mxu0  ;;  %v842_v18 = vmul.f32 %v4739_v11, %v830_v14  ;;  %v4796_v35 = vmul.f32 0.5, %v4709_v12  ;;  %4249 = vrcp.f32 %v740_v27  ;;  %v922_v47 = vmul.f32 %v4246_v57, %v862_v10  ;;  %v3351_v27 = vld [vmem:[#allocation8 + $0x140] sm:$0xf] }
  0xf4   :  { %v4786_v7 = vpop.f32.mrf.mxu3  ;;  %v627_v28 = vpop.f32.mrf.mxu1  ;;  %v4801_v36 = vsel %vm691_vm6, 1.0, %v4509_v15  ;;  %v787_v37 = vmul.f32 %v4777_v0, %v775_v46  ;;  %v872_v40 = vsub.f32 0.0, %v716_v62  ;;  %v954_v41 = vadd.f32 1.0, %v942_v49  ;;  %v3191_v46 = vld [vmem:[#allocation8] sm:$0xf] }
  0xf5   :  { %v945_v42 = vmul.f32 %v933_v23, %v4698_v51  ;;  %v897_v34 = vmul.f32 1.442695, %v883_v17  ;;  %v719_v50 = vand.u32 2147483647, %v4790_v8  ;;  %v854_v30 = vadd.f32 0.2548296, %v842_v18 }
  0xf6   :  { %4251 = vpow2.f32 %v911_v26  ;;  %v799_v12 = vadd.f32 1.4214138, %v787_v37  ;;  %v4807_v54 = vmul.f32 0.70710677, %v4793_v1  ;;  %v4810_v55 = vmul.f32 %v953_v31, %v4635_v6  ;;  %v3207_v17 = vld [vmem:[#allocation8 + $0x20] sm:$0xf] }
  0xf7   :  { %v937_v48 = vsub.f32 1.0, %v925_v25  ;;  %v731_v59 = vmul.f32 0.3275911, %v719_v50  ;;  %v608_v2 = vadd.f32 %v4753_v38, %v4641_v9  ;;  %v934_v60 = vsub.f32 1.0, %v922_v47 }
  0xf8   :  { %v4815_v51 = vmul.f32 0.5, %v4744_v22  ;;  %v884_v3 = vmul.f32 %v872_v40, %v716_v62  ;;  %v4818_v33 = vand.u32 2147483647, %v4807_v54  ;;  %v957_v53 = vadd.f32 1.0, %v945_v42  ;;  %v4023_v40 = vld [vmem:[#allocation8 + $0xc] sm:$0xf0] }
  0xf9   :  { %v4820_v13 = vpop.eup %4249  ;;  %4253 = vpow2.f32 %v897_v34  ;;  %vm692_vm7 = vcmp.ge.f32.partialorder %v4760_v20, 0.0  ;;  %v743_v6 = vadd.f32 1.0, %v731_v59  ;;  %v4824_v10 = vmul.f32 %v954_v41, %v4658_v21  ;;  %v4027_v20 = vld [vmem:[#allocation8 + $0x2c] sm:$0xf0] }
  0xfa   :  { %v866_v9 = vmul.f32 %v4739_v11, %v854_v30  ;;  %v811_v22 = vmul.f32 %v4777_v0, %v799_v12  ;;  %v764_v38 = vmul.f32 1.0614054, %v4820_v13  ;;  %v949_v62 = vmul.f32 %v937_v48, %v4747_v24 }
  0xfb   :  { %v645_v5 = vpop.f32.mrf.mxu2  ;;  %4255 = vrcp.f32 %v743_v6  ;;  %v732_v14 = vmul.f32 0.3275911, %v4818_v33  ;;  %v4832_v16 = vadd.f32 %v4755_v39, %v608_v2  ;;  %v946_v21 = vmul.f32 %v934_v60, %v4734_v4  ;;  %v4063_v4 = vld [vmem:[#allocation8 + $0x14c] sm:$0xf0]  ;;  %v3335_v2 = vld [vmem:[#allocation8 + $0x120] sm:$0xf] }
  0xfc   :  { %v663_v43 = vpop.f32.mrf.mxu3  ;;  %v4252_v57 = vpop.eup %4251  ;;  %v4836_v49 = vsel %vm692_vm7, 1.0, %v4509_v15  ;;  %v776_v11 = vadd.f32 -1.4531521, %v764_v38  ;;  %v899_v23 = vmul.f32 1.442695, %v884_v3  ;;  %vm695_vm8 = vcmp.ge.f32.partialorder %v4790_v8, 0.0 }
  0xfd   :  { %v875_v24 = vsub.f32 0.0, %v719_v50  ;;  %v744_v44 = vadd.f32 1.0, %v732_v14  ;;  %v4840_v28 = vmul.f32 0.70710677, %v4832_v16  ;;  %v969_v39 = vmul.f32 %v957_v53, %v4682_v58  ;;  %v4059_v60 = vld [vmem:[#allocation8 + $0x12c] sm:$0xf0] }
  0xfe   :  { %v926_v29 = vmul.f32 %v4252_v57, %v866_v9  ;;  %v823_v18 = vadd.f32 -0.28449672, %v811_v22  ;;  %v788_v26 = vmul.f32 %v4820_v13, %v776_v11  ;;  %v961_v25 = vadd.f32 1.0, %v949_v62  ;;  %v3559_v8 = vld [vmem:[#allocation8 + $0x2e0] sm:$0xf] }
  0xff   :  { %v4844_v31 = vpop.eup %4253  ;;  %4257 = vrcp.f32 %v744_v44  ;;  %v4847_v47 = vand.u32 2147483647, %v4840_v28  ;;  %v3208_v37 = vor.u32 %v4027_v20, %v3207_v17  ;;  %v958_v41 = vadd.f32 1.0, %v946_v21  ;;  %v4115_v53 = vld [vmem:[#allocation8 + $0x2ec] sm:$0xf0] }
 0x100   :  { %v800_v42 = vadd.f32 1.4214138, %v788_v26  ;;  %v4850_v34 = vmul.f32 0.5, %v4775_v56  ;;  %v4855_v58 = vsel %vm695_vm8, 1.0, %v4509_v15  ;;  %4259 = vpow2.f32 %v899_v23  ;;  %v4049_v38 = vld [vmem:[#allocation8 + $0xe4] sm:$0xf] }
 0x101   :  { %v4857_v30 = vpop.eup %4255  ;;  %v887_v12 = vmul.f32 %v875_v24, %v719_v50  ;;  %v735_v48 = vmul.f32 0.3275911, %v4847_v47  ;;  %1769 = vmatpush.bf16.msra.mxu0 %v3208_v37  ;;  %v3352_v59 = vor.u32 %v4063_v4, %v3351_v27  ;;  %v938_v3 = vsub.f32 1.0, %v926_v29  ;;  %v3305_v62 = vld [vmem:[#allocation8 + $0xf0] sm:$0xf0] }
 0x102   :  { %v835_v5 = vmul.f32 %v4777_v0, %v823_v18  ;;  %v812_v56 = vmul.f32 %v4820_v13, %v800_v42  ;;  %v767_v43 = vmul.f32 1.0614054, %v4857_v30  ;;  %v973_v6 = vmul.f32 %v961_v25, %v4720_v63  ;;  %v3543_v18 = vld [vmem:[#allocation8 + $0x2c0] sm:$0xf]  ;;  %v4045_v42 = vld [vmem:[#allocation8 + $0xc4] sm:$0xf] }
 0x103   :  { %v747_v9 = vadd.f32 1.0, %v735_v48  ;;  %1786 = vmatpush.bf16.msra.mxu1 %v3352_v59  ;;  %v644_v50 = vadd.f32 %v4784_v45, %v4654_v19  ;;  %v3192_v22 = vor.u32 %v4023_v40, %v3191_v46  ;;  %v876_v20 = vsub.f32 0.0, %v4818_v33  ;;  %v3319_v19 = vld [vmem:[#allocation8 + $0x100] sm:$0xf]  ;;  %v4055_v45 = vld [vmem:[#allocation8 + $0x10c] sm:$0xf0] }
 0x104   :  { %v824_v14 = vadd.f32 -0.28449672, %v812_v56  ;;  %v779_v17 = vadd.f32 -1.4531521, %v767_v43  ;;  %v3336_v57 = vor.u32 %v4059_v60, %v3335_v2  ;;  %v905_v11 = vmul.f32 1.442695, %v887_v12 }
 0x105   :  { %v4867_v21 = vpop.eup %4257  ;;  %4261 = vrcp.f32 %v747_v9  ;;  %1770 = vmatpush.bf16.msra.mxu0 %v3192_v22  ;;  %v4870_v63 = vadd.f32 %v4786_v7, %v644_v50  ;;  %v4873_v23 = vpack.c.bf16 %v969_v39, %v4810_v55  ;;  %v950_v27 = vmul.f32 %v938_v3, %v4769_v61  ;;  %v4111_v46 = vld [vmem:[#allocation8 + $0x2cc] sm:$0xf0]  ;;  %v3289_v12 = vld [vmem:[#allocation8 + $0xd0] sm:$0xf0]  ;;  %v3687_v59 = vld [vmem:[#allocation8 + $0x3e0] sm:$0xf] }
 0x106   :  { %v847_v24 = vadd.f32 0.2548296, %v835_v5  ;;  %v791_v44 = vmul.f32 %v4857_v30, %v779_v17  ;;  %v768_v29 = vmul.f32 1.0614054, %v4867_v21  ;;  %v4878_v26 = vpop.eup %4259  ;;  %v970_v4 = vmul.f32 %v958_v41, %v4712_v32  ;;  %v4147_v2 = vld [vmem:[#allocation8 + $0x3ec] sm:$0xf0] }
 0x107   :  { %v4882_v7 = vmul.f32 0.5, %v4793_v1  ;;  %v4885_v55 = vmul.f32 0.70710677, %v4870_v63  ;;  %1787 = vmatpush.bf16.msra.mxu1 %v3336_v57  ;;  %v3560_v39 = vor.u32 %v4115_v53, %v3559_v8  ;;  %v4887_v61 = vpack.c.bf16 %v973_v6, %v973_v6  ;;  %v4081_v56 = vld [vmem:[#allocation8 + $0x1e4] sm:$0xf] }
 0x108   :  { %v836_v25 = vmul.f32 %v4820_v13, %v824_v14  ;;  %v803_v37 = vadd.f32 1.4214138, %v791_v44  ;;  %1771 = vmatmul.bf16.vlgmr.msra.gmra.mxu0 %v4873_v23  ;;  %v3308_v40 = vor.u32 %v4049_v38, %v3305_v62  ;;  %v780_v32 = vadd.f32 -1.4531521, %v768_v29  ;;  %v3433_v43 = vld [vmem:[#allocation8 + $0x1f0] sm:$0xf0] }
 0x109   :  { %v888_v1 = vmul.f32 %v876_v20, %v4818_v33  ;;  %v4893_v41 = vand.u32 2147483647, %v4885_v55  ;;  %1799 = vmatpush.bf16.msra.mxu2 %v3560_v39  ;;  %v3320_v48 = vor.u32 %v4055_v45, %v3319_v19  ;;  %v4895_v60 = vadd.f32 1.0, %v950_v27  ;;  %v3527_v50 = vld [vmem:[#allocation8 + $0x2a0] sm:$0xf] }
 0x10a   :  { %v859_v3 = vmul.f32 %v4777_v0, %v847_v24  ;;  %v815_v5 = vmul.f32 %v4857_v30, %v803_v37  ;;  %4263 = vpow2.f32 %v905_v11  ;;  %1835 = vmatpush.bf16.msrb.mxu0 %v3308_v40  ;;  %v792_v33 = vmul.f32 %v4867_v21, %v780_v32  ;;  %v4107_v22 = vld [vmem:[#allocation8 + $0x2ac] sm:$0xf0]  ;;  %v4041_v17 = vld [vmem:[#allocation8 + $0xa4] sm:$0xf]  ;;  %v3273_v20 = vld [vmem:[#allocation8 + $0xb0] sm:$0xf0] }
 0x10b   :  { %v4899_v8 = vpop.eup %4261  ;;  %v879_v53 = vsub.f32 0.0, %v4847_v47  ;;  %v736_v6 = vmul.f32 0.3275911, %v4893_v41  ;;  %1788 = vmatpush.bf16.msra.mxu1 %v3320_v48  ;;  %v3544_v9 = vor.u32 %v4111_v46, %v3543_v18  ;;  %v848_v38 = vadd.f32 0.2548296, %v836_v25 }
 0x10c   :  { %v827_v0 = vadd.f32 -0.28449672, %v815_v5  ;;  %v771_v62 = vmul.f32 1.0614054, %v4899_v8  ;;  %v3292_v14 = vor.u32 %v4045_v42, %v3289_v12  ;;  %v3671_v57 = vld [vmem:[#allocation8 + $0x3c0] sm:$0xf]  ;;  %v4906_v24 = vpack.c.bf16 %v970_v4, %v4824_v10 }
 0x10d   :  { %v4143_v11 = vld [vmem:[#allocation8 + $0x3cc] sm:$0xf0]  ;;  %v804_v19 = vadd.f32 1.4214138, %v792_v33  ;;  %v907_v45 = vmul.f32 1.442695, %v888_v1  ;;  %1800 = vmatpush.bf16.msra.mxu2 %v3544_v9  ;;  %v4909_v18 = vmul.f32 %v4844_v31, %v859_v3  ;;  %v3688_v25 = vor.u32 %v4147_v2, %v3687_v59 }
 0x10e   :  { %v748_v27 = vadd.f32 1.0, %v736_v6  ;;  %v4077_v44 = vld [vmem:[#allocation8 + $0x1c4] sm:$0xf]  ;;  %v3417_v29 = vld [vmem:[#allocation8 + $0x1d0] sm:$0xf0]  ;;  %v839_v39 = vmul.f32 %v4857_v30, %v827_v0  ;;  %1836 = vmatpush.bf16.msrb.mxu0 %v3292_v14  ;;  %v891_v32 = vmul.f32 %v879_v53, %v4847_v47  ;;  %1789 = vmatmul.bf16.vlgmr.msra.gmra.mxu1 %v4906_v24  ;;  %v3436_v10 = vor.u32 %v4081_v56, %v3433_v43 }
 0x10f   :  { %v783_v46 = vadd.f32 -1.4531521, %v771_v62  ;;  %v3511_v37 = vld [vmem:[#allocation8 + $0x280] sm:$0xf]  ;;  %v4103_v40 = vld [vmem:[#allocation8 + $0x28c] sm:$0xf0]  ;;  %v816_v12 = vmul.f32 %v4867_v21, %v804_v19  ;;  %v860_v3 = vmul.f32 %v4820_v13, %v848_v38  ;;  %1817 = vmatpush.bf16.msra.mxu3 %v3688_v25  ;;  %v3528_v2 = vor.u32 %v4107_v22, %v3527_v50 }
 0x110   :  { %v4037_v42 = vld [vmem:[#allocation8 + $0x84] sm:$0xf]  ;;  %4265 = vrcp.f32 %v748_v27  ;;  %v3257_v4 = vld [vmem:[#allocation8 + $0x90] sm:$0xf0]  ;;  %v3655_v1 = vld [vmem:[#allocation8 + $0x3a0] sm:$0xf]  ;;  %v4264_v48 = vpop.eup %4263  ;;  %1853 = vmatpush.bf16.msrb.mxu1 %v3436_v10  ;;  %v3276_v56 = vor.u32 %v4041_v17, %v3273_v20  ;;  %v3672_v43 = vor.u32 %v4143_v11, %v3671_v57  ;;  %v3420_v38 = vor.u32 %v4077_v44, %v3417_v29 }
 0x111   :  { %v4139_v31 = vld [vmem:[#allocation8 + $0x3ac] sm:$0xf0]  ;;  %v851_v5 = vadd.f32 0.2548296, %v839_v39  ;;  %vm696_vm9 = vcmp.ge.f32.partialorder %v4807_v54, 0.0  ;;  %v795_v59 = vmul.f32 %v4899_v8, %v783_v46  ;;  %v880_v53 = vsub.f32 0.0, %v4893_v41  ;;  %1801 = vmatpush.bf16.msra.mxu2 %v3528_v2 }
 0x112   :  { %v4073_v33 = vld [vmem:[#allocation8 + $0x1a4] sm:$0xf]  ;;  %v3401_v6 = vld [vmem:[#allocation8 + $0x1b0] sm:$0xf0]  ;;  %v828_v47 = vadd.f32 -0.28449672, %v816_v12  ;;  %4267 = vpow2.f32 %v907_v45  ;;  %1837 = vmatpush.bf16.msrb.mxu0 %v3276_v56  ;;  %v3512_v22 = vor.u32 %v4103_v40, %v3511_v37  ;;  %v3260_v27 = vor.u32 %v4037_v42, %v3257_v4 }
 0x113   :  { %v3495_v9 = vld [vmem:[#allocation8 + $0x260] sm:$0xf]  ;;  %v863_v0 = vmul.f32 %v4857_v30, %v851_v5  ;;  %v807_v13 = vadd.f32 1.4214138, %v795_v59  ;;  %v4099_v62 = vld [vmem:[#allocation8 + $0x26c] sm:$0xf0]  ;;  %1818 = vmatpush.bf16.msra.mxu3 %v3672_v43  ;;  %v3656_v30 = vor.u32 %v4139_v31, %v3655_v1  ;;  %v920_v29 = vmul.f32 %v4878_v26, %v860_v3 }
 0x114   :  { %v4033_v14 = vld [vmem:[#allocation8 + $0x64] sm:$0xf]  ;;  %v931_v19 = vsub.f32 1.0, %v4909_v18  ;;  %v840_v50 = vmul.f32 %v4867_v21, %v828_v47  ;;  %v3241_v39 = vld [vmem:[#allocation8 + $0x70] sm:$0xf0]  ;;  %v892_v25 = vmul.f32 %v880_v53, %v4893_v41  ;;  %1854 = vmatpush.bf16.msrb.mxu1 %v3420_v38  ;;  %v3404_v37 = vor.u32 %v4073_v33, %v3401_v6 }
 0x115   :  { %v3639_v46 = vld [vmem:[#allocation8 + $0x380] sm:$0xf]  ;;  %v923_v17 = vmul.f32 %v4264_v48, %v863_v0  ;;  %v819_v20 = vmul.f32 %v4899_v8, %v807_v13  ;;  %v913_v57 = vmul.f32 1.442695, %v891_v32  ;;  %v4135_v11 = vld [vmem:[#allocation8 + $0x38c] sm:$0xf0]  ;;  %1802 = vmatpush.bf16.msra.mxu2 %v3512_v22  ;;  %v3496_v32 = vor.u32 %v4099_v62, %v3495_v9 }
 0x116   :  { %v4069_v45 = vld [vmem:[#allocation8 + $0x184] sm:$0xf]  ;;  %v4923_v44 = vpop.eup %4265  ;;  %v852_v18 = vadd.f32 0.2548296, %v840_v50  ;;  %v3385_v40 = vld [vmem:[#allocation8 + $0x190] sm:$0xf0]  ;;  %v974_v1 = vmul.f32 %v4895_v60, %v4763_v52  ;;  %1838 = vmatpush.bf16.msrb.mxu0 %v3260_v27  ;;  %v3244_v26 = vor.u32 %v4033_v14, %v3241_v39  ;;  %v943_v59 = vmul.f32 %v931_v19, %v4801_v36 }
 0x117   :  { %v3479_v42 = vld [vmem:[#allocation8 + $0x240] sm:$0xf]  ;;  %v935_v12 = vsub.f32 1.0, %v923_v17  ;;  %v831_v10 = vadd.f32 -0.28449672, %v819_v20  ;;  %1819 = vmatpush.bf16.msra.mxu3 %v3656_v30  ;;  %v3640_v6 = vor.u32 %v4135_v11, %v3639_v46  ;;  %v932_v52 = vsub.f32 1.0, %v920_v29 }
 0x118   :  { %v772_v4 = vmul.f32 1.0614054, %v4923_v44  ;;  %v864_v31 = vmul.f32 %v4867_v21, %v852_v18  ;;  %v4095_v48 = vld [vmem:[#allocation8 + $0x24c] sm:$0xf0]  ;;  %v4029_v3 = vld [vmem:[#allocation8 + $0x44] sm:$0xf]  ;;  %v4268_v5 = vpop.eup %4267  ;;  %1776 = vmatmul.bf16.gmra.mxu0 %v4887_v61  ;;  %1855 = vmatpush.bf16.msrb.mxu1 %v3404_v37  ;;  %v3388_v56 = vor.u32 %v4069_v45, %v3385_v40  ;;  %4269 = vpow2.f32 %v913_v57 }
 0x119   :  { %v3225_v41 = vld [vmem:[#allocation8 + $0x50] sm:$0xf0]  ;;  %v843_v2 = vmul.f32 %v4899_v8, %v831_v10  ;;  %v3623_v47 = vld [vmem:[#allocation8 + $0x360] sm:$0xf]  ;;  %v4131_v53 = vld [vmem:[#allocation8 + $0x36c] sm:$0xf0]  ;;  %v947_v21 = vmul.f32 %v935_v12, %v4855_v58  ;;  %1803 = vmatpush.bf16.msra.mxu2 %v3496_v32  ;;  %v3480_v13 = vor.u32 %v4095_v48, %v3479_v42  ;;  %v4939_v20 = vpack.c.bf16 %v974_v1, %v974_v1 }
 0x11a   :  { %v784_v33 = vadd.f32 -1.4531521, %v772_v4  ;;  %v924_v60 = vmul.f32 %v4268_v5, %v864_v31  ;;  %v4065_v43 = vld [vmem:[#allocation8 + $0x164] sm:$0xf]  ;;  %v3369_v9 = vld [vmem:[#allocation8 + $0x170] sm:$0xf0]  ;;  %1839 = vmatpush.bf16.msrb.mxu0 %v3244_v26  ;;  %v3228_v58 = vor.u32 %v4029_v3, %v3225_v41  ;;  %v3624_v39 = vor.u32 %v4131_v53, %v3623_v47 }
 0x11b   :  { %v915_v36 = vmul.f32 1.442695, %v892_v25  ;;  %v3463_v38 = vld [vmem:[#allocation8 + $0x220] sm:$0xf]  ;;  %v4091_v62 = vld [vmem:[#allocation8 + $0x22c] sm:$0xf0]  ;;  %1820 = vmatpush.bf16.msra.mxu3 %v3640_v6  ;;  %v3372_v45 = vor.u32 %v4065_v43, %v3369_v9  ;;  %v944_v18 = vmul.f32 %v932_v52, %v4836_v49 }
 0x11c   :  { %v796_v0 = vmul.f32 %v4923_v44, %v784_v33  ;;  %v708_v14 = vsel %vm696_vm9, 1.0, %v4509_v15  ;;  %v936_v19 = vsub.f32 1.0, %v924_v60  ;;  %v855_v50 = vadd.f32 0.2548296, %v843_v2  ;;  %v4025_v22 = vld [vmem:[#allocation8 + $0x24] sm:$0xf]  ;;  %1856 = vmatpush.bf16.msrb.mxu1 %v3388_v56 }
 0x11d   :  { %v3209_v46 = vld [vmem:[#allocation8 + $0x30] sm:$0xf0]  ;;  %v3607_v17 = vld [vmem:[#allocation8 + $0x340] sm:$0xf]  ;;  %v955_v30 = vadd.f32 1.0, %v943_v59  ;;  %v959_v11 = vadd.f32 1.0, %v947_v21  ;;  %1804 = vmatpush.bf16.msra.mxu2 %v3480_v13  ;;  %v3464_v37 = vor.u32 %v4091_v62, %v3463_v38  ;;  %4271 = vpow2.f32 %v915_v36 }
 0x11e   :  { %v808_v27 = vadd.f32 1.4214138, %v796_v0  ;;  %v4127_v29 = vld [vmem:[#allocation8 + $0x34c] sm:$0xf0]  ;;  %v4061_v54 = vld [vmem:[#allocation8 + $0x144] sm:$0xf]  ;;  %v948_v12 = vmul.f32 %v936_v19, %v708_v14  ;;  %v867_v10 = vmul.f32 %v4899_v8, %v855_v50  ;;  %1840 = vmatpush.bf16.msrb.mxu0 %v3228_v58  ;;  %1794 = vmatmul.bf16.gmra.mxu1 %v4939_v20  ;;  %v3212_v4 = vor.u32 %v4025_v22, %v3209_v46  ;;  %v4270_v6 = vpop.eup %4269 }
 0x11f   :  { %v3353_v57 = vld [vmem:[#allocation8 + $0x150] sm:$0xf0]  ;;  %v3447_v40 = vld [vmem:[#allocation8 + $0x200] sm:$0xf]  ;;  %v4087_v42 = vld [vmem:[#allocation8 + $0x20c] sm:$0xf0]  ;;  %1821 = vmatpush.bf16.msra.mxu3 %v3624_v39  ;;  %v3608_v49 = vor.u32 %v4127_v29, %v3607_v17  ;;  %v967_v41 = vmul.f32 %v955_v30, %v4796_v35  ;;  %v971_v5 = vmul.f32 %v959_v11, %v4850_v34 }
 0x120   :  { %v820_v25 = vmul.f32 %v4923_v44, %v808_v27  ;;  %v4021_v32 = vld [vmem:[#allocation8 + $0x4] sm:$0xf]  ;;  %v3193_v1 = vld [vmem:[#allocation8 + $0x10] sm:$0xf0]  ;;  %v3591_v31 = vld [vmem:[#allocation8 + $0x320] sm:$0xf]  ;;  %1857 = vmatpush.bf16.msrb.mxu1 %v3372_v45  ;;  %v3356_v59 = vor.u32 %v4061_v54, %v3353_v57  ;;  %v3448_v52 = vor.u32 %v4087_v42, %v3447_v40  ;;  %v927_v43 = vmul.f32 %v4270_v6, %v867_v10 }
 0x121   :  { %v4113_v48 = vld [vmem:[#allocation8 + $0x2e4] sm:$0xf]  ;;  %v3561_v3 = vld [vmem:[#allocation8 + $0x2f0] sm:$0xf0]  ;;  %v4123_v2 = vld [vmem:[#allocation8 + $0x32c] sm:$0xf0]  ;;  %1805 = vmatpush.bf16.msra.mxu2 %v3464_v37  ;;  %v3196_v35 = vor.u32 %v4021_v32, %v3193_v1  ;;  %v4948_v36 = vpack.c.bf16 %v971_v5, %v967_v41 }
 0x122   :  { %v832_v26 = vadd.f32 -0.28449672, %v820_v25  ;;  %v3311_v8 = vld [vmem:[#allocation8 + $0xe8] sm:$0xf]  ;;  %v4052_v33 = vld [vmem:[#allocation8 + $0xf4] sm:$0xf0]  ;;  %1841 = vmatpush.bf16.msrb.mxu0 %v3212_v4  ;;  %v3564_v9 = vor.u32 %v4113_v48, %v3561_v3  ;;  %v3592_v38 = vor.u32 %v4123_v2, %v3591_v31 }
 0x123   :  { %v956_v47 = vadd.f32 1.0, %v944_v18  ;;  %v4057_v21 = vld [vmem:[#allocation8 + $0x124] sm:$0xf]  ;;  %v3337_v60 = vld [vmem:[#allocation8 + $0x130] sm:$0xf0]  ;;  %v960_v56 = vadd.f32 1.0, %v948_v12  ;;  %1822 = vmatpush.bf16.msra.mxu3 %v3608_v49  ;;  %v3312_v62 = vor.u32 %v4052_v33, %v3311_v8  ;;  %v4272_v25 = vpop.eup %4271 }
 0x124   :  { %v844_v53 = vmul.f32 %v4923_v44, %v832_v26  ;;  %v3575_v34 = vld [vmem:[#allocation8 + $0x300] sm:$0xf]  ;;  %v4119_v0 = vld [vmem:[#allocation8 + $0x30c] sm:$0xf0]  ;;  %v4109_v14 = vld [vmem:[#allocation8 + $0x2c4] sm:$0xf]  ;;  %1858 = vmatpush.bf16.msrb.mxu1 %v3356_v59  ;;  %v3340_v50 = vor.u32 %v4057_v21, %v3337_v60 }
 0x125   :  { %v3545_v19 = vld [vmem:[#allocation8 + $0x2d0] sm:$0xf0]  ;;  %v4053_v58 = vld [vmem:[#allocation8 + $0x104] sm:$0xf]  ;;  %v3295_v22 = vld [vmem:[#allocation8 + $0xc8] sm:$0xf]  ;;  %1806 = vmatpush.bf16.msra.mxu2 %v3448_v52  ;;  %v972_v11 = vmul.f32 %v960_v56, %v4882_v7  ;;  %v968_v37 = vmul.f32 %v956_v47, %v4815_v51 }
 0x126   :  { %v856_v13 = vadd.f32 0.2548296, %v844_v53  ;;  %v4048_v27 = vld [vmem:[#allocation8 + $0xd4] sm:$0xf0]  ;;  %v3321_v46 = vld [vmem:[#allocation8 + $0x110] sm:$0xf0]  ;;  %1842 = vmatpush.bf16.msrb.mxu0 %v3196_v35  ;;  %v3548_v29 = vor.u32 %v4109_v14, %v3545_v19 }
 0x127   :  { %v4145_v17 = vld [vmem:[#allocation8 + $0x3e4] sm:$0xf]  ;;  %v3689_v30 = vld [vmem:[#allocation8 + $0x3f0] sm:$0xf0]  ;;  %vm699_vm10 = vcmp.ge.f32.partialorder %v4840_v28, 0.0  ;;  %v939_v45 = vsub.f32 1.0, %v927_v43  ;;  %1823 = vmatpush.bf16.msra.mxu3 %v3592_v38  ;;  %v3296_v57 = vor.u32 %v4048_v27, %v3295_v22  ;;  %v3324_v7 = vor.u32 %v4053_v58, %v3321_v46 }
 0x128   :  { %v868_v39 = vmul.f32 %v4923_v44, %v856_v13  ;;  %v3439_v54 = vld [vmem:[#allocation8 + $0x1e8] sm:$0xf]  ;;  %v4084_v18 = vld [vmem:[#allocation8 + $0x1f4] sm:$0xf0]  ;;  %v3576_v44 = vor.u32 %v4119_v0, %v3575_v34  ;;  %v4105_v40 = vld [vmem:[#allocation8 + $0x2a4] sm:$0xf]  ;;  %1859 = vmatpush.bf16.msrb.mxu1 %v3340_v50  ;;  %1807 = vmatmul.bf16.vlgmr.msra.gmra.mxu2 %v4948_v36  ;;  %v3692_v10 = vor.u32 %v4145_v17, %v3689_v30 }
 0x129   :  { %1871 = vmatpush.bf16.msrb.mxu2 %v3564_v9  ;;  %v3529_v42 = vld [vmem:[#allocation8 + $0x2b0] sm:$0xf0]  ;;  %v3279_v4 = vld [vmem:[#allocation8 + $0xa8] sm:$0xf]  ;;  %v4044_v32 = vld [vmem:[#allocation8 + $0xb4] sm:$0xf0]  ;;  %1843 = vmatmul.bf16.vlgmr.msrb.gmra.mxu0 %v4873_v23  ;;  %v3440_v51 = vor.u32 %v4084_v18, %v3439_v54  ;;  %v4959_v48 = vpack.c.bf16 %v972_v11, %v968_v37 }
 0x12a   :  { %1907 = vmatpush.bf16.msra.mxu0 %v3312_v62  ;;  %v928_v12 = vmul.f32 %v4272_v25, %v868_v39  ;;  %v711_v1 = vsel %vm699_vm10, 1.0, %v4509_v15  ;;  %v4141_v31 = vld [vmem:[#allocation8 + $0x3c4] sm:$0xf]  ;;  %v3673_v26 = vld [vmem:[#allocation8 + $0x3d0] sm:$0xf0]  ;;  %v3532_v3 = vor.u32 %v4105_v40, %v3529_v42  ;;  %v3280_v59 = vor.u32 %v4044_v32, %v3279_v4 }
 0x12b   :  { %v951_v49 = vmul.f32 %v939_v45, %v711_v1  ;;  %v3423_v41 = vld [vmem:[#allocation8 + $0x1c8] sm:$0xf]  ;;  %v4080_v5 = vld [vmem:[#allocation8 + $0x1d4] sm:$0xf0]  ;;  %1824 = vmatpush.bf16.msra.mxu3 %v3576_v44  ;;  %v4101_v2 = vld [vmem:[#allocation8 + $0x284] sm:$0xf]  ;;  %v3676_v33 = vor.u32 %v4141_v31, %v3673_v26 }
 0x12c   :  { %v3513_v8 = vld [vmem:[#allocation8 + $0x290] sm:$0xf0]  ;;  %vm700_vm11 = vcmp.ge.f32.partialorder %v4885_v55, 0.0  ;;  %v940_v28 = vsub.f32 1.0, %v928_v12  ;;  %1860 = vmatpush.bf16.msrb.mxu1 %v3324_v7  ;;  %v3263_v6 = vld [vmem:[#allocation8 + $0x88] sm:$0xf]  ;;  %v3424_v53 = vor.u32 %v4080_v5, %v3423_v41 }
 0x12d   :  { %1872 = vmatpush.bf16.msrb.mxu2 %v3548_v29  ;;  %v4040_v47 = vld [vmem:[#allocation8 + $0x94] sm:$0xf0]  ;;  %v4137_v52 = vld [vmem:[#allocation8 + $0x3a4] sm:$0xf]  ;;  %v3657_v21 = vld [vmem:[#allocation8 + $0x3b0] sm:$0xf0]  ;;  %v3516_v56 = vor.u32 %v4101_v2, %v3513_v8 }
 0x12e   :  { %1908 = vmatpush.bf16.msra.mxu0 %v3296_v57  ;;  %v963_v60 = vadd.f32 1.0, %v951_v49  ;;  %1825 = vmatmul.bf16.vlgmr.msra.gmra.mxu3 %v4959_v48  ;;  %v3407_v43 = vld [vmem:[#allocation8 + $0x1a8] sm:$0xf]  ;;  %v4076_v35 = vld [vmem:[#allocation8 + $0x1b4] sm:$0xf0]  ;;  %v712_v9 = vsel %vm700_vm11, 1.0, %v4509_v15  ;;  %v3264_v34 = vor.u32 %v4040_v47, %v3263_v6  ;;  %v3660_v14 = vor.u32 %v4137_v52, %v3657_v21 }
 0x12f   :  { %1889 = vmatpush.bf16.msrb.mxu3 %v3692_v10  ;;  %1861 = vmatmul.bf16.vlgmr.msrb.gmra.mxu1 %v4906_v24  ;;  %v4097_v0 = vld [vmem:[#allocation8 + $0x264] sm:$0xf]  ;;  %v3497_v13 = vld [vmem:[#allocation8 + $0x270] sm:$0xf0]  ;;  %v675_v38 = vmul.f32 0.5, %v4832_v16  ;;  %v952_v62 = vmul.f32 %v940_v28, %v712_v9  ;;  %v3408_v58 = vor.u32 %v4076_v35, %v3407_v43  ;;  %v676_v40 = vmul.f32 0.5, %v4870_v63 }
 0x130   :  { %1925 = vmatpush.bf16.msra.mxu1 %v3440_v51  ;;  %v3247_v19 = vld [vmem:[#allocation8 + $0x68] sm:$0xf]  ;;  %v4036_v50 = vld [vmem:[#allocation8 + $0x74] sm:$0xf0]  ;;  %v4133_v22 = vld [vmem:[#allocation8 + $0x384] sm:$0xf]  ;;  %v3500_v55 = vor.u32 %v4097_v0, %v3497_v13 }
 0x131   :  { %1873 = vmatpush.bf16.msrb.mxu2 %v3532_v3  ;;  %v3641_v27 = vld [vmem:[#allocation8 + $0x390] sm:$0xf0]  ;;  %v975_v39 = vmul.f32 %v963_v60, %v675_v38  ;;  %v3391_v46 = vld [vmem:[#allocation8 + $0x188] sm:$0xf]  ;;  %v4072_v17 = vld [vmem:[#allocation8 + $0x194] sm:$0xf0]  ;;  %v3248_v30 = vor.u32 %v4036_v50, %v3247_v19 }
 0x132   :  { %1909 = vmatpush.bf16.msra.mxu0 %v3280_v59  ;;  %v4093_v11 = vld [vmem:[#allocation8 + $0x244] sm:$0xf]  ;;  %v3481_v45 = vld [vmem:[#allocation8 + $0x250] sm:$0xf0]  ;;  %v964_v29 = vadd.f32 1.0, %v952_v62  ;;  %v3644_v16 = vor.u32 %v4133_v22, %v3641_v27  ;;  %v3392_v25 = vor.u32 %v4072_v17, %v3391_v46 }
 0x133   :  { %1890 = vmatpush.bf16.msrb.mxu3 %v3676_v33  ;;  %v3231_v54 = vld [vmem:[#allocation8 + $0x48] sm:$0xf]  ;;  %v4032_v18 = vld [vmem:[#allocation8 + $0x54] sm:$0xf0]  ;;  %v4129_v37 = vld [vmem:[#allocation8 + $0x364] sm:$0xf]  ;;  %v4968_v57 = vpack.c.bf16 %v975_v39, %v975_v39  ;;  %v3484_v42 = vor.u32 %v4093_v11, %v3481_v45 }
 0x134   :  { %1926 = vmatpush.bf16.msra.mxu1 %v3424_v53  ;;  %v3625_v44 = vld [vmem:[#allocation8 + $0x370] sm:$0xf0]  ;;  %v3375_v12 = vld [vmem:[#allocation8 + $0x168] sm:$0xf]  ;;  %v4068_v7 = vld [vmem:[#allocation8 + $0x174] sm:$0xf0]  ;;  %v3232_v10 = vor.u32 %v4032_v18, %v3231_v54  ;;  %v976_v1 = vmul.f32 %v964_v29, %v676_v40 }
 0x135   :  { %1874 = vmatpush.bf16.msrb.mxu2 %v3516_v56  ;;  %v4089_v4 = vld [vmem:[#allocation8 + $0x224] sm:$0xf]  ;;  %v3465_v32 = vld [vmem:[#allocation8 + $0x230] sm:$0xf0]  ;;  %v3628_v51 = vor.u32 %v4129_v37, %v3625_v44  ;;  %v3215_v31 = vld [vmem:[#allocation8 + $0x28] sm:$0xf]  ;;  %v3376_v49 = vor.u32 %v4068_v7, %v3375_v12 }
 0x136   :  { %1910 = vmatpush.bf16.msra.mxu0 %v3264_v34  ;;  %v4028_v26 = vld [vmem:[#allocation8 + $0x34] sm:$0xf0]  ;;  %v4125_v63 = vld [vmem:[#allocation8 + $0x344] sm:$0xf]  ;;  %v3609_v3 = vld [vmem:[#allocation8 + $0x350] sm:$0xf0]  ;;  %v3468_v41 = vor.u32 %v4089_v4, %v3465_v32  ;;  %v4973_v47 = vpack.c.bf16 %v976_v1, %v976_v1 }
 0x137   :  { %1891 = vmatpush.bf16.msrb.mxu3 %v3660_v14  ;;  %v3359_v5 = vld [vmem:[#allocation8 + $0x148] sm:$0xf]  ;;  %v4064_v59 = vld [vmem:[#allocation8 + $0x154] sm:$0xf0]  ;;  %v4085_v2 = vld [vmem:[#allocation8 + $0x204] sm:$0xf]  ;;  %v3216_v8 = vor.u32 %v4028_v26, %v3215_v31  ;;  %v3612_v53 = vor.u32 %v4125_v63, %v3609_v3 }
 0x138   :  { %1927 = vmatpush.bf16.msra.mxu1 %v3408_v58  ;;  %1812 = vmatmul.bf16.gmra.mxu2 %v4968_v57  ;;  %v3449_v28 = vld [vmem:[#allocation8 + $0x210] sm:$0xf0]  ;;  %v3199_v33 = vld [vmem:[#allocation8 + $0x8] sm:$0xf]  ;;  %v4024_v6 = vld [vmem:[#allocation8 + $0x14] sm:$0xf0]  ;;  %v3360_v56 = vor.u32 %v4064_v59, %v3359_v5 }
 0x139   :  { %1875 = vmatpush.bf16.msrb.mxu2 %v3500_v55  ;;  %1848 = vmatmul.bf16.gmra.mxu0 %v4887_v61  ;;  %v4121_v52 = vld [vmem:[#allocation8 + $0x324] sm:$0xf]  ;;  %v3567_v21 = vld [vmem:[#allocation8 + $0x2e8] sm:$0xf]  ;;  %v4116_v60 = vld [vmem:[#allocation8 + $0x2f4] sm:$0xf0]  ;;  %v3452_v34 = vor.u32 %v4085_v2, %v3449_v28  ;;  %v3200_v38 = vor.u32 %v4024_v6, %v3199_v33 }
 0x13a   :  { %1911 = vmatpush.bf16.msra.mxu0 %v3248_v30  ;;  %v3593_v43 = vld [vmem:[#allocation8 + $0x330] sm:$0xf0]  ;;  %v4050_v35 = vld [vmem:[#allocation8 + $0xec] sm:$0xf]  ;;  %v3313_v9 = vld [vmem:[#allocation8 + $0xf8] sm:$0xf0]  ;;  %v3568_v62 = vor.u32 %v4116_v60, %v3567_v21 }
 0x13b   :  { %1892 = vmatpush.bf16.msrb.mxu3 %v3644_v16  ;;  %v3343_v0 = vld [vmem:[#allocation8 + $0x128] sm:$0xf]  ;;  %v4060_v13 = vld [vmem:[#allocation8 + $0x134] sm:$0xf0]  ;;  %v3596_v14 = vor.u32 %v4121_v52, %v3593_v43  ;;  %v3316_v19 = vor.u32 %v4050_v35, %v3313_v9  ;;  %v4117_v27 = vld [vmem:[#allocation8 + $0x304] sm:$0xf] }
 0x13c   :  { %1928 = vmatpush.bf16.msra.mxu1 %v3392_v25  ;;  %v3551_v50 = vld [vmem:[#allocation8 + $0x2c8] sm:$0xf]  ;;  %v4112_v58 = vld [vmem:[#allocation8 + $0x2d4] sm:$0xf0]  ;;  %v3344_v22 = vor.u32 %v4060_v13, %v3343_v0  ;;  %v3577_v39 = vld [vmem:[#allocation8 + $0x310] sm:$0xf0] }
 0x13d   :  { %1876 = vmatpush.bf16.msrb.mxu2 %v3484_v42  ;;  %v3327_v55 = vld [vmem:[#allocation8 + $0x108] sm:$0xf]  ;;  %v4056_v46 = vld [vmem:[#allocation8 + $0x114] sm:$0xf0]  ;;  %v4046_v17 = vld [vmem:[#allocation8 + $0xcc] sm:$0xf]  ;;  %v3552_v11 = vor.u32 %v4112_v58, %v3551_v50  ;;  %v3580_v54 = vor.u32 %v4117_v27, %v3577_v39 }
 0x13e   :  { %1912 = vmatpush.bf16.msra.mxu0 %v3232_v10  ;;  %1830 = vmatmul.bf16.gmra.mxu3 %v4973_v47  ;;  %v3297_v30 = vld [vmem:[#allocation8 + $0xd8] sm:$0xf0]  ;;  %v3695_v45 = vld [vmem:[#allocation8 + $0x3e8] sm:$0xf]  ;;  %v4148_v29 = vld [vmem:[#allocation8 + $0x3f4] sm:$0xf0]  ;;  %v3328_v44 = vor.u32 %v4056_v46, %v3327_v55 }
 0x13f   :  { %1893 = vmatpush.bf16.msrb.mxu3 %v3628_v51  ;;  %1866 = vmatmul.bf16.gmra.mxu1 %v4939_v20  ;;  %v4082_v16 = vld [vmem:[#allocation8 + $0x1ec] sm:$0xf]  ;;  %v3441_v18 = vld [vmem:[#allocation8 + $0x1f8] sm:$0xf0]  ;;  %v3535_v25 = vld [vmem:[#allocation8 + $0x2a8] sm:$0xf]  ;;  %v3300_v40 = vor.u32 %v4046_v17, %v3297_v30  ;;  %v3696_v42 = vor.u32 %v4148_v29, %v3695_v45 }
 0x140   :  { %1929 = vmatpush.bf16.msra.mxu1 %v3376_v49  ;;  %v4108_v37 = vld [vmem:[#allocation8 + $0x2b4] sm:$0xf0]  ;;  %v3444_v12 = vor.u32 %v4082_v16, %v3441_v18  ;;  %v4042_v10 = vld [vmem:[#allocation8 + $0xac] sm:$0xf]  ;;  %v3281_v4 = vld [vmem:[#allocation8 + $0xb8] sm:$0xf0] }
 0x141   :  { %1877 = vmatpush.bf16.msrb.mxu2 %v3468_v41  ;;  %v3536_v7 = vor.u32 %v4108_v37, %v3535_v25  ;;  %v3679_v32 = vld [vmem:[#allocation8 + $0x3c8] sm:$0xf]  ;;  %v4144_v1 = vld [vmem:[#allocation8 + $0x3d4] sm:$0xf0]  ;;  %v4078_v51 = vld [vmem:[#allocation8 + $0x1cc] sm:$0xf]  ;;  %v3284_v63 = vor.u32 %v4042_v10, %v3281_v4 }
 0x142   :  { %1913 = vmatpush.bf16.msra.mxu0 %v3216_v8  ;;  %v3425_v31 = vld [vmem:[#allocation8 + $0x1d8] sm:$0xf0]  ;;  %v3519_v26 = vld [vmem:[#allocation8 + $0x288] sm:$0xf]  ;;  %v4104_v49 = vld [vmem:[#allocation8 + $0x294] sm:$0xf0]  ;;  %v3680_v3 = vor.u32 %v4144_v1, %v3679_v32 }
 0x143   :  { %1894 = vmatpush.bf16.msrb.mxu3 %v3612_v53  ;;  %v4038_v41 = vld [vmem:[#allocation8 + $0x8c] sm:$0xf]  ;;  %v3265_v5 = vld [vmem:[#allocation8 + $0x98] sm:$0xf0]  ;;  %v3428_v59 = vor.u32 %v4078_v51, %v3425_v31  ;;  %v3520_v2 = vor.u32 %v4104_v49, %v3519_v26  ;;  %v3663_v8 = vld [vmem:[#allocation8 + $0x3a8] sm:$0xf] }
 0x144   :  { %1930 = vmatpush.bf16.msra.mxu1 %v3360_v56  ;;  %v4140_v28 = vld [vmem:[#allocation8 + $0x3b4] sm:$0xf0]  ;;  %v4074_v33 = vld [vmem:[#allocation8 + $0x1ac] sm:$0xf]  ;;  %v3409_v6 = vld [vmem:[#allocation8 + $0x1b8] sm:$0xf0]  ;;  %v3268_v21 = vor.u32 %v4038_v41, %v3265_v5 }
 0x145   :  { %1878 = vmatpush.bf16.msrb.mxu2 %v3452_v34  ;;  %v3503_v53 = vld [vmem:[#allocation8 + $0x268] sm:$0xf]  ;;  %v4100_v52 = vld [vmem:[#allocation8 + $0x274] sm:$0xf0]  ;;  %v3664_v60 = vor.u32 %v4140_v28, %v3663_v8  ;;  %v4034_v56 = vld [vmem:[#allocation8 + $0x6c] sm:$0xf]  ;;  %v3412_v35 = vor.u32 %v4074_v33, %v3409_v6 }
 0x146   :  { %1914 = vmatpush.bf16.msra.mxu0 %v3200_v38  ;;  %v3249_v43 = vld [vmem:[#allocation8 + $0x78] sm:$0xf0]  ;;  %v3504_v9 = vor.u32 %v4100_v52, %v3503_v53  ;;  %v3647_v34 = vld [vmem:[#allocation8 + $0x388] sm:$0xf]  ;;  %v4136_v0 = vld [vmem:[#allocation8 + $0x394] sm:$0xf0] }
 0x147   :  { %1895 = vmatpush.bf16.msrb.mxu3 %v3596_v14  ;;  %v4070_v13 = vld [vmem:[#allocation8 + $0x18c] sm:$0xf]  ;;  %v3393_v38 = vld [vmem:[#allocation8 + $0x198] sm:$0xf0]  ;;  %v3487_v14 = vld [vmem:[#allocation8 + $0x248] sm:$0xf]  ;;  %v3648_v50 = vor.u32 %v4136_v0, %v3647_v34 }
 0x148   :  { %1931 = vmatpush.bf16.msra.mxu1 %v3344_v22  ;;  %1879 = vmatmul.bf16.vlgmr.msrb.gmra.mxu2 %v4948_v36  ;;  %v4030_v58 = vld [vmem:[#allocation8 + $0x4c] sm:$0xf]  ;;  %v3233_v22 = vld [vmem:[#allocation8 + $0x58] sm:$0xf0]  ;;  %v3396_v27 = vor.u32 %v4070_v13, %v3393_v38  ;;  %v3631_v39 = vld [vmem:[#allocation8 + $0x368] sm:$0xf] }
 0x149   :  { %1943 = vmatpush.bf16.msra.mxu2 %v3568_v62  ;;  %1915 = vmatmul.bf16.vlgmr.msra.gmra.mxu0 %v4873_v23  ;;  %v3252_v62 = vor.u32 %v4034_v56, %v3249_v43  ;;  %v4132_v55 = vld [vmem:[#allocation8 + $0x374] sm:$0xf0]  ;;  %v4066_v17 = vld [vmem:[#allocation8 + $0x16c] sm:$0xf]  ;;  %v3377_v30 = vld [vmem:[#allocation8 + $0x178] sm:$0xf0] }
 0x14a   :  { %1979 = vmatpush.bf16.msrb.mxu0 %v3316_v19  ;;  %v4096_v19 = vld [vmem:[#allocation8 + $0x254] sm:$0xf0]  ;;  %v3471_v45 = vld [vmem:[#allocation8 + $0x228] sm:$0xf]  ;;  %v3632_v16 = vor.u32 %v4132_v55, %v3631_v39  ;;  %v3217_v18 = vld [vmem:[#allocation8 + $0x38] sm:$0xf0]  ;;  %v3380_v25 = vor.u32 %v4066_v17, %v3377_v30 }
 0x14b   :  { %1896 = vmatpush.bf16.msrb.mxu3 %v3580_v54  ;;  %v3488_v46 = vor.u32 %v4096_v19, %v3487_v14  ;;  %v4092_v29 = vld [vmem:[#allocation8 + $0x234] sm:$0xf0]  ;;  %v4026_v54 = vld [vmem:[#allocation8 + $0x2c] sm:$0xf]  ;;  %v3615_v37 = vld [vmem:[#allocation8 + $0x348] sm:$0xf] }
 0x14c   :  { %1932 = vmatpush.bf16.msra.mxu1 %v3328_v44  ;;  %v4128_v44 = vld [vmem:[#allocation8 + $0x354] sm:$0xf0]  ;;  %v3455_v10 = vld [vmem:[#allocation8 + $0x208] sm:$0xf]  ;;  %v4022_v32 = vld [vmem:[#allocation8 + $0xc] sm:$0xf] }
 0x14d   :  { %1944 = vmatpush.bf16.msra.mxu2 %v3552_v11  ;;  %v3236_v11 = vor.u32 %v4030_v58, %v3233_v22  ;;  %v4088_v4 = vld [vmem:[#allocation8 + $0x214] sm:$0xf0]  ;;  %v3616_v1 = vor.u32 %v4128_v44, %v3615_v37  ;;  %v3201_v51 = vld [vmem:[#allocation8 + $0x18] sm:$0xf0]  ;;  %v4114_v31 = vld [vmem:[#allocation8 + $0x2ec] sm:$0xf] }
 0x14e   :  { %1980 = vmatpush.bf16.msrb.mxu0 %v3300_v40  ;;  %1897 = vmatmul.bf16.vlgmr.msrb.gmra.mxu3 %v4959_v48  ;;  %v3472_v40 = vor.u32 %v4092_v29, %v3471_v45  ;;  %v3569_v26 = vld [vmem:[#allocation8 + $0x2f8] sm:$0xf0]  ;;  %v3456_v41 = vor.u32 %v4088_v4, %v3455_v10  ;;  %v4058_v5 = vld [vmem:[#allocation8 + $0x12c] sm:$0xf]  ;;  %v3583_v52 = vld [vmem:[#allocation8 + $0x308] sm:$0xf] }
 0x14f   :  { %1961 = vmatpush.bf16.msra.mxu3 %v3696_v42  ;;  %1933 = vmatmul.bf16.vlgmr.msra.gmra.mxu1 %v4906_v24  ;;  %v4062_v42 = vld [vmem:[#allocation8 + $0x14c] sm:$0xf]  ;;  %v3572_v8 = vor.u32 %v4114_v31, %v3569_v26  ;;  %v3553_v6 = vld [vmem:[#allocation8 + $0x2d8] sm:$0xf0] }
 0x150   :  { %1997 = vmatpush.bf16.msrb.mxu1 %v3444_v12  ;;  %v3361_v12 = vld [vmem:[#allocation8 + $0x158] sm:$0xf0]  ;;  %v4110_v33 = vld [vmem:[#allocation8 + $0x2cc] sm:$0xf] }
 0x151   :  { %1945 = vmatpush.bf16.msra.mxu2 %v3536_v7  ;;  %v3220_v7 = vor.u32 %v4026_v54, %v3217_v18  ;;  %v3364_v49 = vor.u32 %v4062_v42, %v3361_v12  ;;  %v3329_v56 = vld [vmem:[#allocation8 + $0x118] sm:$0xf0]  ;;  %v3556_v43 = vor.u32 %v4110_v33, %v3553_v6  ;;  %v4106_v0 = vld [vmem:[#allocation8 + $0x2ac] sm:$0xf] }
 0x152   :  { %1981 = vmatpush.bf16.msrb.mxu0 %v3284_v63  ;;  %v3599_v63 = vld [vmem:[#allocation8 + $0x328] sm:$0xf]  ;;  %v3537_v13 = vld [vmem:[#allocation8 + $0x2b8] sm:$0xf0]  ;;  %v4142_v19 = vld [vmem:[#allocation8 + $0x3cc] sm:$0xf] }
 0x153   :  { %1962 = vmatpush.bf16.msra.mxu3 %v3680_v3  ;;  %v4124_v3 = vld [vmem:[#allocation8 + $0x334] sm:$0xf0]  ;;  %v3540_v14 = vor.u32 %v4106_v0, %v3537_v13  ;;  %v4102_v58 = vld [vmem:[#allocation8 + $0x28c] sm:$0xf]  ;;  %v3521_v22 = vld [vmem:[#allocation8 + $0x298] sm:$0xf0] }
 0x154   :  { %1998 = vmatpush.bf16.msrb.mxu1 %v3428_v59  ;;  %v3345_v59 = vld [vmem:[#allocation8 + $0x138] sm:$0xf0]  ;;  %v3600_v28 = vor.u32 %v4124_v3, %v3599_v63  ;;  %v3524_v39 = vor.u32 %v4102_v58, %v3521_v22  ;;  %v4138_v55 = vld [vmem:[#allocation8 + $0x3ac] sm:$0xf]  ;;  %v3743_v13 = vld [vmem:[#allocation11 + $0x50] sm:$0xf] }
 0x155   :  { %1946 = vmatpush.bf16.msra.mxu2 %v3520_v2  ;;  %v3204_v2 = vor.u32 %v4022_v32, %v3201_v51  ;;  %v3348_v53 = vor.u32 %v4058_v5, %v3345_v59  ;;  %v4098_v17 = vld [vmem:[#allocation8 + $0x26c] sm:$0xf]  ;;  %v3505_v30 = vld [vmem:[#allocation8 + $0x278] sm:$0xf0] }
 0x156   :  { %1982 = vmatpush.bf16.msrb.mxu0 %v3268_v21  ;;  %v4120_v21 = vld [vmem:[#allocation8 + $0x314] sm:$0xf0]  ;;  %v3508_v45 = vor.u32 %v4098_v17, %v3505_v30  ;;  %v4134_v29 = vld [vmem:[#allocation8 + $0x38c] sm:$0xf]  ;;  %v3633_v44 = vld [vmem:[#allocation8 + $0x378] sm:$0xf0] }
 0x157   :  { %1963 = vmatpush.bf16.msra.mxu3 %v3664_v60  ;;  %v4054_v60 = vld [vmem:[#allocation8 + $0x10c] sm:$0xf]  ;;  %v3584_v34 = vor.u32 %v4120_v21, %v3583_v52  ;;  %v3473_v42 = vld [vmem:[#allocation8 + $0x238] sm:$0xf0] }
 0x158   :  { %1999 = vmatpush.bf16.msrb.mxu1 %v3412_v35  ;;  %1884 = vmatmul.bf16.gmra.mxu2 %v4968_v57  ;;  %v4146_v35 = vld [vmem:[#allocation8 + $0x3ec] sm:$0xf]  ;;  %v3332_v38 = vor.u32 %v4054_v60, %v3329_v56  ;;  %v3617_v4 = vld [vmem:[#allocation8 + $0x358] sm:$0xf0] }
 0x159   :  { %1947 = vmatpush.bf16.msra.mxu2 %v3504_v9  ;;  %1920 = vmatmul.bf16.gmra.mxu0 %v4887_v61  ;;  %v3697_v9 = vld [vmem:[#allocation8 + $0x3f8] sm:$0xf0]  ;;  %v4094_v54 = vld [vmem:[#allocation8 + $0x24c] sm:$0xf] }
 0x15a   :  { %1983 = vmatpush.bf16.msrb.mxu0 %v3252_v62  ;;  %v3700_v62 = vor.u32 %v4146_v35, %v3697_v9  ;;  %v4130_v37 = vld [vmem:[#allocation8 + $0x36c] sm:$0xf]  ;;  %v3601_v26 = vld [vmem:[#allocation8 + $0x338] sm:$0xf0] }
 0x15b   :  { %1964 = vmatpush.bf16.msra.mxu3 %v3648_v50  ;;  %v3681_v50 = vld [vmem:[#allocation8 + $0x3d8] sm:$0xf0]  ;;  %v3636_v12 = vor.u32 %v4130_v37, %v3633_v44  ;;  %v4126_v10 = vld [vmem:[#allocation8 + $0x34c] sm:$0xf] }
 0x15c   :  { %2000 = vmatpush.bf16.msrb.mxu1 %v3396_v27  ;;  %v3684_v27 = vor.u32 %v4142_v19, %v3681_v50  ;;  %v4086_v32 = vld [vmem:[#allocation8 + $0x20c] sm:$0xf]  ;;  %v3585_v3 = vld [vmem:[#allocation8 + $0x318] sm:$0xf0] }
 0x15d   :  { %1948 = vmatpush.bf16.msra.mxu2 %v3488_v46  ;;  %v3665_v46 = vld [vmem:[#allocation8 + $0x3b8] sm:$0xf0]  ;;  %v4122_v31 = vld [vmem:[#allocation8 + $0x32c] sm:$0xf] }
 0x15e   :  { %1984 = vmatpush.bf16.msrb.mxu0 %v3236_v11  ;;  %1902 = vmatmul.bf16.gmra.mxu3 %v4973_v47  ;;  %v3668_v11 = vor.u32 %v4138_v55, %v3665_v46  ;;  %v4118_v63 = vld [vmem:[#allocation8 + $0x30c] sm:$0xf]  ;;  %v4164_v21 = vld [vmem:[#allocation11 + $0x74] sm:$0xf0] }
 0x15f   :  { %1965 = vmatpush.bf16.msra.mxu3 %v3632_v16  ;;  %1938 = vmatmul.bf16.gmra.mxu1 %v4939_v20  ;;  %v3649_v16 = vld [vmem:[#allocation8 + $0x398] sm:$0xf0]  ;;  %v4162_v35 = vld [vmem:[#allocation11 + $0x64] sm:$0xf0] }
 0x160   :  { %2001 = vmatpush.bf16.msrb.mxu1 %v3380_v25  ;;  %v3652_v18 = vor.u32 %v4134_v29, %v3649_v16  ;;  %v4158_v55 = vld [vmem:[#allocation11 + $0x44] sm:$0xf0] }
 0x161   :  { %1949 = vmatpush.bf16.msra.mxu2 %v3472_v40  ;;  %v4090_v40 = vld [vmem:[#allocation8 + $0x22c] sm:$0xf] }
 0x162   :  { %1985 = vmatpush.bf16.msrb.mxu0 %v3220_v7  ;;  %v3476_v7 = vor.u32 %v4090_v40, %v3473_v42 }
 0x163   :  { %1966 = vmatpush.bf16.msra.mxu3 %v3616_v1  ;;  %v3457_v1 = vld [vmem:[#allocation8 + $0x218] sm:$0xf0] }
 0x164   :  { %2002 = vmatpush.bf16.msrb.mxu1 %v3364_v49  ;;  %v3460_v51 = vor.u32 %v4086_v32, %v3457_v1  ;;  %v3604_v49 = vor.u32 %v4122_v31, %v3601_v26 }
 0x165   :  { %1950 = vmatpush.bf16.msra.mxu2 %v3456_v41  ;;  %v3588_v41 = vor.u32 %v4118_v63, %v3585_v3  ;;  %v3711_v63 = vld [vmem:[#allocation11 + $0x10] sm:$0xf]  ;;  %v4152_v3 = vld [vmem:[#allocation11 + $0x14] sm:$0xf0] }
 0x166   :  { %1986 = vmatpush.bf16.msrb.mxu0 %v3204_v2 }
 0x167   :  { %1967 = vmatpush.bf16.msra.mxu3 %v3600_v28 }
 0x168   :  { %2003 = vmatpush.bf16.msrb.mxu1 %v3348_v53  ;;  %1951 = vmatmul.bf16.vlgmr.msra.gmra.mxu2 %v4948_v36 }
 0x169   :  { %2015 = vmatpush.bf16.msrb.mxu2 %v3572_v8  ;;  %1987 = vmatmul.bf16.vlgmr.msrb.gmra.mxu0 %v4873_v23  ;;  %v3489_v23 = vld [vmem:[#allocation8 + $0x258] sm:$0xf0] }
 0x16a   :  { %v3492_v25 = vor.u32 %v4094_v54, %v3489_v23  ;;  %v3727_v54 = vld [vmem:[#allocation11 + $0x30] sm:$0xf]  ;;  %v4156_v23 = vld [vmem:[#allocation11 + $0x34] sm:$0xf0] }
 0x16b   :  { %1968 = vmatpush.bf16.msra.mxu3 %v3584_v34  ;;  %v3728_v37 = vor.u32 %v4156_v23, %v3727_v54 }
 0x16c   :  { %2004 = vmatpush.bf16.msrb.mxu1 %v3332_v38  ;;  %v4160_v38 = vld [vmem:[#allocation11 + $0x54] sm:$0xf0] }
 0x16d   :  { %2016 = vmatpush.bf16.msrb.mxu2 %v3556_v43 }
 0x16e   :  { %1969 = vmatmul.bf16.vlgmr.msra.gmra.mxu3 %v4959_v48 }
 0x16f   :  { %2033 = vmatpush.bf16.msrb.mxu3 %v3700_v62  ;;  %2005 = vmatmul.bf16.vlgmr.msrb.gmra.mxu1 %v4906_v24  ;;  %v3620_v24 = vor.u32 %v4126_v10, %v3617_v4  ;;  %v4154_v10 = vld [vmem:[#allocation11 + $0x24] sm:$0xf0] }
 0x171   :  { %2017 = vmatpush.bf16.msrb.mxu2 %v3540_v14  ;;  %v3744_v14 = vor.u32 %v4160_v38, %v3743_v13 }
 0x173   :  { %2034 = vmatpush.bf16.msrb.mxu3 %v3684_v27 }
 0x175   :  { %2018 = vmatpush.bf16.msrb.mxu2 %v3524_v39  ;;  %v3735_v39 = vld [vmem:[#allocation11 + $0x40] sm:$0xf] }
 0x177   :  { %2035 = vmatpush.bf16.msrb.mxu3 %v3668_v11  ;;  %v3736_v11 = vor.u32 %v4158_v55, %v3735_v39  ;;  %v4163_v55 = vld [vmem:[#allocation11 + $0x74] sm:$0xf] }
 0x178   :  { %1956 = vmatmul.bf16.gmra.mxu2 %v4968_v57 }
 0x179   :  { %2019 = vmatpush.bf16.msrb.mxu2 %v3508_v45  ;;  %1992 = vmatmul.bf16.gmra.mxu0 %v4887_v61 }
 0x17b   :  { %2036 = vmatpush.bf16.msrb.mxu3 %v3652_v18 }
 0x17d   :  { %2020 = vmatpush.bf16.msrb.mxu2 %v3492_v25 }
 0x17e   :  { %1974 = vmatmul.bf16.gmra.mxu3 %v4973_v47 }
 0x17f   :  { %2037 = vmatpush.bf16.msrb.mxu3 %v3636_v12  ;;  %2010 = vmatmul.bf16.gmra.mxu1 %v4939_v20  ;;  %v4997_v20 = vld [vmem:[#allocation10] sm:$0xf] }
 0x180   :  { %v1115_v52 = vperm.slane %v4997_v20, 0 }
 0x181   :  { %2021 = vmatpush.bf16.msrb.mxu2 %v3476_v7  ;;  %v3719_v7 = vld [vmem:[#allocation11 + $0x20] sm:$0xf] }
 0x183   :  { %2038 = vmatpush.bf16.msrb.mxu3 %v3620_v24  ;;  %v3720_v24 = vor.u32 %v4154_v10, %v3719_v7  ;;  %v4178_v10 = vld [vmem:[#allocation11 + $0xe4] sm:$0xf0] }
 0x185   :  { %2022 = vmatpush.bf16.msrb.mxu2 %v3460_v51  ;;  %v1772_v5 = vpop.f32.mrf.mxu0 }
 0x187   :  { %2039 = vmatpush.bf16.msrb.mxu3 %v3604_v49 }
 0x188   :  { %2023 = vmatmul.bf16.vlgmr.msrb.gmra.mxu2 %v4948_v36  ;;  %v3759_v36 = vld [vmem:[#allocation11 + $0x70] sm:$0xf] }
 0x189   :  { %v3760_v60 = vor.u32 %v4164_v21, %v3759_v36  ;;  %v3703_v36 = vld [vmem:[#allocation11] sm:$0xf]  ;;  %v4150_v21 = vld [vmem:[#allocation11 + $0x4] sm:$0xf0] }
 0x18b   :  { %2040 = vmatpush.bf16.msrb.mxu3 %v3588_v41  ;;  %v1790_v61 = vpop.f32.mrf.mxu1  ;;  %2761 = vmatpush.bf16.msra.mxu0 %v3760_v60 }
 0x18d   :  { %v1774_v59 = vpop.f32.mrf.mxu0 }
 0x18e   :  { %2041 = vmatmul.bf16.vlgmr.msrb.gmra.mxu3 %v4959_v48  ;;  %v1773_v48 = vadd.f32 %v1772_v5, %v1115_v52  ;;  %v1775_v58 = vadd.f32 %v1774_v59, %v1115_v52  ;;  %v3712_v59 = vor.u32 %v4152_v3, %v3711_v63 }
 0x190   :  { %v1791_v34 = vadd.f32 %v1790_v61, %v1773_v48 }
 0x193   :  { %v1792_v2 = vpop.f32.mrf.mxu1 }
 0x194   :  { %v1793_v46 = vadd.f32 %v1792_v2, %v1775_v58 }
 0x195   :  { %v1777_v8 = vpop.f32.mrf.mxu0 }
 0x196   :  { %v1778_v40 = vadd.f32 %v1777_v8, %v1115_v52 }
 0x198   :  { %2028 = vmatmul.bf16.gmra.mxu2 %v4968_v57  ;;  %v3751_v57 = vld [vmem:[#allocation11 + $0x60] sm:$0xf] }
 0x199   :  { %v3752_v9 = vor.u32 %v4162_v35, %v3751_v57  ;;  %v3704_v57 = vor.u32 %v4150_v21, %v3703_v36  ;;  %v5039_v35 = vperm.slane %v4997_v20, 1 }
 0x19b   :  { %v1795_v28 = vpop.f32.mrf.mxu1  ;;  %2762 = vmatpush.bf16.msra.mxu0 %v3752_v9 }
 0x19c   :  { %v1796_v4 = vadd.f32 %v1795_v28, %v1778_v40 }
 0x19d   :  { %v1779_v33 = vpop.f32.mrf.mxu0 }
 0x19e   :  { %2046 = vmatmul.bf16.gmra.mxu3 %v4973_v47 }
 0x19f   :  { %2763 = vmatpush.bf16.msra.mxu0 %v3744_v14  ;;  %v4180_v14 = vld [vmem:[#allocation11 + $0xf4] sm:$0xf0] }
 0x1a3   :  { %v1797_v6 = vpop.f32.mrf.mxu1  ;;  %2764 = vmatpush.bf16.msra.mxu0 %v3736_v11 }
 0x1a6   :  { %v4999_v53 = vpop.f32.mrf.mxu0 }
 0x1a7   :  { %2765 = vmatpush.bf16.msra.mxu0 %v3728_v37 }
 0x1ab   :  { %v1808_v56 = vpop.f32.mrf.mxu2  ;;  %2766 = vmatpush.bf16.msra.mxu0 %v3720_v24 }
 0x1ac   :  { %v5002_v43 = vpop.f32.mrf.mxu1  ;;  %v1809_v0 = vadd.f32 %v1808_v56, %v1791_v34 }
 0x1ae   :  { %v5004_v47 = vpop.f32.mrf.mxu0 }
 0x1af   :  { %2767 = vmatpush.bf16.msra.mxu0 %v3712_v59 }
 0x1b1   :  { %v1826_v62 = vpop.f32.mrf.mxu3 }
 0x1b2   :  { %v5006_v19 = vadd.f32 %v1826_v62, %v1809_v0  ;;  %v3823_v62 = vld [vmem:[#allocation11 + $0xf0] sm:$0xf] }
 0x1b3   :  { %v1810_v50 = vpop.f32.mrf.mxu2  ;;  %2768 = vmatpush.bf16.msra.mxu0 %v3704_v57  ;;  %v3824_v39 = vor.u32 %v4180_v14, %v3823_v62 }
 0x1b4   :  { %v5009_v22 = vmul.f32 0.70710677, %v5006_v19  ;;  %v5011_v27 = vpop.f32.mrf.mxu1  ;;  %v1811_v29 = vadd.f32 %v1810_v50, %v1793_v46  ;;  %v3761_v46 = vld [vmem:[#allocation11 + $0x78] sm:$0xf0] }
 0x1b5   :  { %2779 = vmatpush.bf16.msra.mxu1 %v3824_v39 }
 0x1b6   :  { %v2099_v17 = vand.u32 2147483647, %v5009_v22  ;;  %v5014_v30 = vpop.f32.mrf.mxu0  ;;  %vm2075_vm12 = vcmp.ge.f32.partialorder %v5009_v22, 0.0 }
 0x1b8   :  { %v2111_v45 = vmul.f32 0.3275911, %v2099_v17  ;;  %v2255_v51 = vsub.f32 0.0, %v2099_v17 }
 0x1b9   :  { %v1828_v16 = vpop.f32.mrf.mxu3 }
 0x1ba   :  { %v2123_v18 = vadd.f32 1.0, %v2111_v45  ;;  %v5016_v25 = vadd.f32 %v1828_v16, %v1811_v29  ;;  %v2267_v28 = vmul.f32 %v2255_v51, %v2099_v17  ;;  %v3764_v29 = vor.u32 %v4163_v55, %v3761_v46 }
 0x1bb   :  { %v1813_v44 = vpop.f32.mrf.mxu2  ;;  %v1845_v16 = vadd.f32 %v4999_v53, %v5039_v35 }
 0x1bc   :  { %4273 = vrcp.f32 %v2123_v18  ;;  %v5019_v42 = vmul.f32 0.70710677, %v5016_v25  ;;  %v5021_v12 = vpop.f32.mrf.mxu1  ;;  %v1814_v26 = vadd.f32 %v1813_v44, %v1796_v4  ;;  %v2279_v9 = vmul.f32 1.442695, %v2267_v28  ;;  %2833 = vmatpush.bf16.msrb.mxu0 %v3764_v29  ;;  %v3815_v44 = vld [vmem:[#allocation11 + $0xe0] sm:$0xf] }
 0x1bd   :  { %v1863_v40 = vadd.f32 %v5002_v43, %v1845_v16  ;;  %v4161_v4 = vld [vmem:[#allocation11 + $0x64] sm:$0xf]  ;;  %v3807_v43 = vld [vmem:[#allocation11 + $0xd0] sm:$0xf]  ;;  %v4159_v28 = vld [vmem:[#allocation11 + $0x54] sm:$0xf] }
 0x1be   :  { %v2103_v32 = vand.u32 2147483647, %v5019_v42  ;;  %v1851_v1 = vpop.f32.mrf.mxu0  ;;  %v4157_v29 = vld [vmem:[#allocation11 + $0x44] sm:$0xf]  ;;  %v3737_v16 = vld [vmem:[#allocation11 + $0x48] sm:$0xf0] }
 0x1bf   :  { %v3753_v1 = vld [vmem:[#allocation11 + $0x68] sm:$0xf0]  ;;  %vm2079_vm13 = vcmp.ge.f32.partialorder %v5019_v42, 0.0 }
 0x1c0   :  { %v2115_v31 = vmul.f32 0.3275911, %v2103_v32  ;;  %v2259_v34 = vsub.f32 0.0, %v2103_v32 }
 0x1c1   :  { %v1831_v49 = vpop.f32.mrf.mxu3 }
 0x1c2   :  { %v5024_v41 = vpop.eup %4273  ;;  %v2127_v5 = vadd.f32 1.0, %v2115_v31  ;;  %v5026_v61 = vadd.f32 %v1831_v49, %v1814_v26  ;;  %v2271_v54 = vmul.f32 %v2259_v34, %v2103_v32  ;;  %v3816_v32 = vor.u32 %v4178_v10, %v3815_v44 }
 0x1c3   :  { %v2147_v2 = vmul.f32 1.0614054, %v5024_v41  ;;  %v1815_v8 = vpop.f32.mrf.mxu2  ;;  %v3756_v49 = vor.u32 %v4161_v4, %v3753_v1  ;;  %v1847_v34 = vadd.f32 %v5004_v47, %v5039_v35  ;;  %v3740_v10 = vor.u32 %v4157_v29, %v3737_v16  ;;  %v3791_v4 = vld [vmem:[#allocation11 + $0xb0] sm:$0xf]  ;;  %v4168_v16 = vld [vmem:[#allocation11 + $0x94] sm:$0xf0] }
 0x1c4   :  { %4275 = vrcp.f32 %v2127_v5  ;;  %v5030_v33 = vmul.f32 0.70710677, %v5026_v61  ;;  %v1869_v6 = vpop.f32.mrf.mxu1  ;;  %v2287_v51 = vmul.f32 1.442695, %v2271_v54  ;;  %2780 = vmatpush.bf16.msra.mxu1 %v3816_v32  ;;  %v4176_v8 = vld [vmem:[#allocation11 + $0xd4] sm:$0xf0] }
 0x1c5   :  { %v2159_v52 = vadd.f32 -1.4531521, %v2147_v2  ;;  %2834 = vmatpush.bf16.msrb.mxu0 %v3756_v49  ;;  %v3745_v6 = vld [vmem:[#allocation11 + $0x58] sm:$0xf0]  ;;  %v3808_v57 = vor.u32 %v4176_v8, %v3807_v43  ;;  %v1865_v39 = vadd.f32 %v5011_v27, %v1847_v34  ;;  %v2087_v1 = vsel %vm2075_vm12, 1.0, %v4509_v15 }
 0x1c6   :  { %v5033_v60 = vand.u32 2147483647, %v5030_v33  ;;  %v5035_v56 = vpop.f32.mrf.mxu0  ;;  %v4172_v32 = vld [vmem:[#allocation11 + $0xb4] sm:$0xf0]  ;;  %v3775_v29 = vld [vmem:[#allocation11 + $0x90] sm:$0xf] }
 0x1c7   :  { %v2171_v48 = vmul.f32 %v5024_v41, %v2159_v52  ;;  %v3792_v49 = vor.u32 %v4172_v32, %v3791_v4  ;;  %vm2083_vm14 = vcmp.ge.f32.partialorder %v5030_v33, 0.0 }
 0x1c8   :  { %v2119_v0 = vmul.f32 0.3275911, %v5033_v60  ;;  %v2263_v31 = vsub.f32 0.0, %v5033_v60  ;;  %2781 = vmatpush.bf16.msra.mxu1 %v3808_v57 }
 0x1c9   :  { %v2183_v13 = vadd.f32 1.4214138, %v2171_v48  ;;  %v1833_v38 = vpop.f32.mrf.mxu3 }
 0x1ca   :  { %v5042_v50 = vpop.eup %4275  ;;  %v2131_v58 = vadd.f32 1.0, %v2119_v0  ;;  %v3748_v38 = vor.u32 %v4159_v28, %v3745_v6  ;;  %v2275_v55 = vmul.f32 %v2263_v31, %v5033_v60  ;;  %v4155_v28 = vld [vmem:[#allocation11 + $0x34] sm:$0xf]  ;;  %v3729_v6 = vld [vmem:[#allocation11 + $0x38] sm:$0xf0] }
 0x1cb   :  { %v2195_v17 = vmul.f32 %v5024_v41, %v2183_v13  ;;  %v2151_v11 = vmul.f32 1.0614054, %v5042_v50  ;;  %v1880_v45 = vpop.f32.mrf.mxu2 }
 0x1cc   :  { %4277 = vrcp.f32 %v2131_v58  ;;  %v5048_v23 = vpop.f32.mrf.mxu1  ;;  %v1881_v26 = vadd.f32 %v1880_v45, %v1863_v40  ;;  %2835 = vmatpush.bf16.msrb.mxu0 %v3748_v38 }
 0x1cd   :  { %v2207_v18 = vadd.f32 -0.28449672, %v2195_v17  ;;  %v2163_v37 = vadd.f32 -1.4531521, %v2151_v11  ;;  %4279 = vpow2.f32 %v2279_v9  ;;  %v4174_v17 = vld [vmem:[#allocation11 + $0xc4] sm:$0xf0] }
 0x1ce   :  { %v5051_v7 = vpop.f32.mrf.mxu0  ;;  %4281 = vpow2.f32 %v2287_v51 }
 0x1cf   :  { %v2219_v24 = vmul.f32 %v5024_v41, %v2207_v18  ;;  %v2175_v53 = vmul.f32 %v5042_v50, %v2163_v37 }
 0x1d0   :  { %2836 = vmatpush.bf16.msrb.mxu0 %v3740_v10 }
 0x1d1   :  { %v2231_v63 = vadd.f32 0.2548296, %v2219_v24  ;;  %v2187_v3 = vadd.f32 1.4214138, %v2175_v53  ;;  %v1898_v5 = vpop.f32.mrf.mxu3  ;;  %v2295_v24 = vmul.f32 1.442695, %v2275_v55 }
 0x1d2   :  { %v5056_v59 = vpop.eup %4277  ;;  %v5058_v2 = vadd.f32 %v1898_v5, %v1881_v26  ;;  %v1850_v5 = vadd.f32 %v5014_v30, %v5039_v35 }
 0x1d3   :  { %v2243_v52 = vmul.f32 %v5024_v41, %v2231_v63  ;;  %v2199_v36 = vmul.f32 %v5042_v50, %v2187_v3  ;;  %v2155_v21 = vmul.f32 1.0614054, %v5056_v59  ;;  %v1882_v48 = vpop.f32.mrf.mxu2  ;;  %v4280_v9 = vpop.eup %4279  ;;  %v3799_v41 = vld [vmem:[#allocation11 + $0xc0] sm:$0xf] }
 0x1d4   :  { %v5066_v0 = vmul.f32 0.70710677, %v5058_v2  ;;  %v5068_v13 = vpop.f32.mrf.mxu1  ;;  %v1883_v18 = vadd.f32 %v1882_v48, %v1865_v39  ;;  %v3800_v60 = vor.u32 %v4174_v17, %v3799_v41  ;;  %v4282_v63 = vpop.eup %4281  ;;  %v2091_v48 = vsel %vm2079_vm13, 1.0, %v4509_v15 }
 0x1d5   :  { %v2303_v62 = vmul.f32 %v4280_v9, %v2243_v52  ;;  %v2211_v14 = vadd.f32 -0.28449672, %v2199_v36  ;;  %v2167_v58 = vadd.f32 -1.4531521, %v2155_v21  ;;  %v3783_v36 = vld [vmem:[#allocation11 + $0xa0] sm:$0xf]  ;;  %v1868_v57 = vadd.f32 %v5021_v12, %v1850_v5 }
 0x1d6   :  { %v5073_v46 = vand.u32 2147483647, %v5066_v0  ;;  %v5075_v47 = vpop.f32.mrf.mxu0  ;;  %2782 = vmatpush.bf16.msra.mxu1 %v3800_v60  ;;  %v4170_v21 = vld [vmem:[#allocation11 + $0xa4] sm:$0xf0]  ;;  %v4153_v9 = vld [vmem:[#allocation11 + $0x24] sm:$0xf] }
 0x1d7   :  { %v2223_v11 = vmul.f32 %v5042_v50, %v2211_v14  ;;  %v2179_v45 = vmul.f32 %v5056_v59, %v2167_v58  ;;  %v2315_v54 = vsub.f32 1.0, %v2303_v62  ;;  %v3732_v14 = vor.u32 %v4155_v28, %v3729_v6  ;;  %v3721_v58 = vld [vmem:[#allocation11 + $0x28] sm:$0xf0] }
 0x1d8   :  { %v2112_v27 = vmul.f32 0.3275911, %v5073_v46  ;;  %v2256_v62 = vsub.f32 0.0, %v5073_v46  ;;  %v3784_v55 = vor.u32 %v4170_v21, %v3783_v36  ;;  %vm2076_vm15 = vcmp.ge.f32.partialorder %v5066_v0, 0.0 }
 0x1d9   :  { %v2235_v37 = vadd.f32 0.2548296, %v2223_v11  ;;  %v2191_v44 = vadd.f32 1.4214138, %v2179_v45  ;;  %v1900_v40 = vpop.f32.mrf.mxu3  ;;  %v2327_v3 = vmul.f32 %v2315_v54, %v2087_v1  ;;  %2837 = vmatpush.bf16.msrb.mxu0 %v3732_v14  ;;  %v3724_v45 = vor.u32 %v4153_v9, %v3721_v58 }
 0x1da   :  { %v2124_v22 = vadd.f32 1.0, %v2112_v27  ;;  %v5082_v53 = vadd.f32 %v1900_v40, %v1883_v18  ;;  %2783 = vmatpush.bf16.msra.mxu1 %v3792_v49  ;;  %v2051_v27 = vmul.f32 0.5, %v5006_v19  ;;  %v2055_v40 = vmul.f32 0.5, %v5016_v25 }
 0x1db   :  { %v2247_v51 = vmul.f32 %v5042_v50, %v2235_v37  ;;  %v2203_v31 = vmul.f32 %v5056_v59, %v2191_v44  ;;  %v1885_v26 = vpop.f32.mrf.mxu2  ;;  %v2339_v41 = vadd.f32 1.0, %v2327_v3  ;;  %v3776_v37 = vor.u32 %v4168_v16, %v3775_v29  ;;  %v4151_v44 = vld [vmem:[#allocation11 + $0x14] sm:$0xf]  ;;  %v4166_v3 = vld [vmem:[#allocation11 + $0x84] sm:$0xf0] }
 0x1dc   :  { %4283 = vrcp.f32 %v2124_v22  ;;  %v5090_v43 = vmul.f32 0.70710677, %v5082_v53  ;;  %v5092_v8 = vpop.f32.mrf.mxu1  ;;  %v1886_v39 = vadd.f32 %v1885_v26, %v1868_v57  ;;  %v3713_v22 = vld [vmem:[#allocation11 + $0x18] sm:$0xf0]  ;;  %v2268_v19 = vmul.f32 %v2256_v62, %v5073_v46  ;;  %v3705_v57 = vld [vmem:[#allocation11 + $0x8] sm:$0xf0] }
 0x1dd   :  { %v2307_v52 = vmul.f32 %v4282_v63, %v2247_v51  ;;  %v2215_v50 = vadd.f32 -0.28449672, %v2203_v31  ;;  %4285 = vpow2.f32 %v2295_v24  ;;  %v2351_v26 = vmul.f32 %v2339_v41, %v2051_v27  ;;  %2838 = vmatpush.bf16.msrb.mxu0 %v3724_v45  ;;  %v3887_v41 = vld [vmem:[#allocation11 + $0x170] sm:$0xf] }
 0x1de   :  { %v5099_v30 = vand.u32 2147483647, %v5090_v43  ;;  %v1923_v35 = vpop.f32.mrf.mxu0  ;;  %2784 = vmatpush.bf16.msra.mxu1 %v3784_v55  ;;  %v3716_v6 = vor.u32 %v4151_v44, %v3713_v22  ;;  %v5130_v9 = vperm.slane %v4997_v20, 2  ;;  %vm2080_vm0 = vcmp.ge.f32.partialorder %v5090_v43, 0.0 }
 0x1df   :  { %v2319_v34 = vsub.f32 1.0, %v2307_v52  ;;  %v2227_v38 = vmul.f32 %v5056_v59, %v2215_v50  ;;  %v2095_v35 = vsel %vm2083_vm14, 1.0, %v4509_v15 }
 0x1e0   :  { %v2116_v42 = vmul.f32 0.3275911, %v5099_v30  ;;  %v2260_v21 = vsub.f32 0.0, %v5099_v30  ;;  %v1922_v0 = vadd.f32 %v5075_v47, %v5130_v9 }
 0x1e1   :  { %v2331_v12 = vmul.f32 %v2319_v34, %v2091_v48  ;;  %v2239_v17 = vadd.f32 0.2548296, %v2227_v38  ;;  %v1903_v11 = vpop.f32.mrf.mxu3  ;;  %v4149_v48 = vld [vmem:[#allocation11 + $0x4] sm:$0xf]  ;;  %v2281_v34 = vmul.f32 1.442695, %v2268_v19  ;;  %2839 = vmatpush.bf16.msrb.mxu0 %v3716_v6 }
 0x1e2   :  { %v5104_v54 = vpop.eup %4283  ;;  %v2128_v18 = vadd.f32 1.0, %v2116_v42  ;;  %v5107_v60 = vadd.f32 %v1903_v11, %v1886_v39  ;;  %2785 = vmatpush.bf16.msra.mxu1 %v3776_v37  ;;  %v4196_v42 = vld [vmem:[#allocation11 + $0x174] sm:$0xf0]  ;;  %v3708_v33 = vor.u32 %v4149_v48, %v3705_v57  ;;  %v3825_v11 = vld [vmem:[#allocation11 + $0xf8] sm:$0xf0]  ;;  %v2272_v16 = vmul.f32 %v2260_v21, %v5099_v30 }
 0x1e3   :  { %v2343_v10 = vadd.f32 1.0, %v2331_v12  ;;  %v2251_v4 = vmul.f32 %v5056_v59, %v2239_v17  ;;  %v2148_v1 = vmul.f32 1.0614054, %v5104_v54  ;;  %v1887_v24 = vpop.f32.mrf.mxu2  ;;  %v4286_v32 = vpop.eup %4285  ;;  %v3767_v59 = vld [vmem:[#allocation11 + $0x80] sm:$0xf]  ;;  %v3888_v12 = vor.u32 %v4196_v42, %v3887_v41 }
 0x1e4   :  { %4287 = vrcp.f32 %v2128_v18  ;;  %v5115_v51 = vmul.f32 0.70710677, %v5107_v60  ;;  %v1941_v31 = vpop.f32.mrf.mxu1  ;;  %v3768_v46 = vor.u32 %v4166_v3, %v3767_v59  ;;  %v4179_v17 = vld [vmem:[#allocation11 + $0xf4] sm:$0xf]  ;;  %v1917_v37 = vadd.f32 %v5035_v56, %v5130_v9  ;;  %v4194_v30 = vld [vmem:[#allocation11 + $0x164] sm:$0xf0] }
 0x1e5   :  { %v2355_v49 = vmul.f32 %v2343_v10, %v2055_v40  ;;  %v2311_v25 = vmul.f32 %v4286_v32, %v2251_v4  ;;  %v2160_v63 = vadd.f32 -1.4531521, %v2148_v1  ;;  %v3828_v18 = vor.u32 %v4179_v17, %v3825_v11  ;;  %2797 = vmatpush.bf16.msra.mxu2 %v3888_v12  ;;  %v3879_v1 = vld [vmem:[#allocation11 + $0x160] sm:$0xf]  ;;  %2840 = vmatpush.bf16.msrb.mxu0 %v3708_v33  ;;  %v4177_v32 = vld [vmem:[#allocation11 + $0xe4] sm:$0xf] }
 0x1e6   :  { %v5118_v5 = vand.u32 2147483647, %v5115_v51  ;;  %v5120_v28 = vpop.f32.mrf.mxu0  ;;  %2786 = vmatpush.bf16.msra.mxu1 %v3768_v46  ;;  %v1935_v24 = vadd.f32 %v5048_v23, %v1917_v37  ;;  %v3817_v19 = vld [vmem:[#allocation11 + $0xe8] sm:$0xf0]  ;;  %v2059_v56 = vmul.f32 0.5, %v5026_v61  ;;  %v3880_v59 = vor.u32 %v4194_v30, %v3879_v1 }
 0x1e7   :  { %v5122_v52 = vpack.c.bf16 %v2355_v49, %v2351_v26  ;;  %v2323_v50 = vsub.f32 1.0, %v2311_v25  ;;  %v2172_v36 = vmul.f32 %v5104_v54, %v2160_v63  ;;  %v2289_v49 = vmul.f32 1.442695, %v2272_v16  ;;  %v4192_v61 = vld [vmem:[#allocation11 + $0x154] sm:$0xf0] }
 0x1e8   :  { %v2120_v38 = vmul.f32 0.3275911, %v5118_v5  ;;  %v2264_v25 = vsub.f32 0.0, %v5118_v5  ;;  %v3820_v3 = vor.u32 %v4177_v32, %v3817_v19  ;;  %v4175_v57 = vld [vmem:[#allocation11 + $0xd4] sm:$0xf]  ;;  %v1919_v42 = vadd.f32 %v5051_v7, %v5130_v9 }
 0x1e9   :  { %v2335_v62 = vmul.f32 %v2323_v50, %v2095_v35  ;;  %v2184_v14 = vadd.f32 1.4214138, %v2172_v36  ;;  %v1905_v58 = vpop.f32.mrf.mxu3  ;;  %2769 = vmatmul.bf16.vlgmr.msra.gmra.mxu0 %v5122_v52  ;;  %v3871_v50 = vld [vmem:[#allocation11 + $0x150] sm:$0xf]  ;;  %2798 = vmatpush.bf16.msra.mxu2 %v3880_v59  ;;  %v3809_v35 = vld [vmem:[#allocation11 + $0xd8] sm:$0xf0] }
 0x1ea   :  { %v5134_v39 = vpop.eup %4287  ;;  %v2132_v55 = vadd.f32 1.0, %v2120_v38  ;;  %2851 = vmatpush.bf16.msrb.mxu1 %v3828_v18  ;;  %v3872_v58 = vor.u32 %v4192_v61, %v3871_v50  ;;  %v3812_v12 = vor.u32 %v4175_v57, %v3809_v35  ;;  %v2276_v16 = vmul.f32 %v2264_v25, %v5118_v5  ;;  %v4190_v7 = vld [vmem:[#allocation11 + $0x144] sm:$0xf0] }
 0x1eb   :  { %v2196_v45 = vmul.f32 %v5104_v54, %v2184_v14  ;;  %v2152_v29 = vmul.f32 1.0614054, %v5134_v39  ;;  %v1952_v27 = vpop.f32.mrf.mxu2  ;;  %v2347_v40 = vadd.f32 1.0, %v2335_v62  ;;  %vm2084_vm1 = vcmp.ge.f32.partialorder %v5115_v51, 0.0 }
 0x1ec   :  { %4289 = vrcp.f32 %v2132_v55  ;;  %v5141_v44 = vpop.f32.mrf.mxu1  ;;  %v1953_v63 = vadd.f32 %v1952_v27, %v1935_v24  ;;  %v2297_v25 = vmul.f32 1.442695, %v2276_v16 }
 0x1ed   :  { %v2208_v10 = vadd.f32 -0.28449672, %v2196_v45  ;;  %v2164_v4 = vadd.f32 -1.4531521, %v2152_v29  ;;  %4291 = vpow2.f32 %v2281_v34  ;;  %v2359_v48 = vmul.f32 %v2347_v40, %v2059_v56  ;;  %2799 = vmatpush.bf16.msra.mxu2 %v3872_v58  ;;  %v4186_v58 = vld [vmem:[#allocation11 + $0x124] sm:$0xf0] }
 0x1ee   :  { %v5144_v22 = vpop.f32.mrf.mxu0  ;;  %2852 = vmatpush.bf16.msrb.mxu1 %v3820_v3  ;;  %v1937_v29 = vadd.f32 %v5068_v13, %v1919_v42  ;;  %4293 = vpow2.f32 %v2289_v49  ;;  %v4173_v13 = vld [vmem:[#allocation11 + $0xc4] sm:$0xf]  ;;  %v2088_v49 = vsel %vm2076_vm15, 1.0, %v4509_v15  ;;  %v4188_v3 = vld [vmem:[#allocation11 + $0x134] sm:$0xf0]  ;;  %v1940_v42 = vadd.f32 %v5092_v8, %v1922_v0 }
 0x1ef   :  { %v2220_v31 = vmul.f32 %v5104_v54, %v2208_v10  ;;  %v2176_v26 = vmul.f32 %v5134_v39, %v2164_v4  ;;  %v5174_v10 = vpack.c.bf16 %v2359_v48, %v2359_v48  ;;  %v3801_v4 = vld [vmem:[#allocation11 + $0xc8] sm:$0xf0] }
 0x1f1   :  { %v2232_v23 = vadd.f32 0.2548296, %v2220_v31  ;;  %v2188_v6 = vadd.f32 1.4214138, %v2176_v26  ;;  %v1970_v46 = vpop.f32.mrf.mxu3  ;;  %v3804_v31 = vor.u32 %v4173_v13, %v3801_v4  ;;  %v3855_v26 = vld [vmem:[#allocation11 + $0x130] sm:$0xf] }
 0x1f2   :  { %v5150_v36 = vpop.eup %4289  ;;  %v5152_v21 = vadd.f32 %v1970_v46, %v1953_v63  ;;  %2853 = vmatpush.bf16.msrb.mxu1 %v3812_v12  ;;  %v3856_v50 = vor.u32 %v4188_v3, %v3855_v26  ;;  %v4169_v12 = vld [vmem:[#allocation11 + $0xa4] sm:$0xf]  ;;  %v2056_v26 = vmul.f32 0.5, %v5082_v53 }
 0x1f3   :  { %v2244_v34 = vmul.f32 %v5104_v54, %v2232_v23  ;;  %v2200_v38 = vmul.f32 %v5134_v39, %v2188_v6  ;;  %v2156_v62 = vmul.f32 1.0614054, %v5150_v36  ;;  %v1954_v14 = vpop.f32.mrf.mxu2  ;;  %v4292_v41 = vpop.eup %4291  ;;  %v3863_v54 = vld [vmem:[#allocation11 + $0x140] sm:$0xf] }
 0x1f4   :  { %v5160_v55 = vmul.f32 0.70710677, %v5152_v21  ;;  %v5162_v33 = vpop.f32.mrf.mxu1  ;;  %v1955_v24 = vadd.f32 %v1954_v14, %v1937_v29  ;;  %v3864_v30 = vor.u32 %v4190_v7, %v3863_v54  ;;  %v4294_v48 = vpop.eup %4293  ;;  %v3847_v14 = vld [vmem:[#allocation11 + $0x120] sm:$0xf]  ;;  %v3785_v29 = vld [vmem:[#allocation11 + $0xa8] sm:$0xf0] }
 0x1f5   :  { %v2304_v17 = vmul.f32 %v4292_v41, %v2244_v34  ;;  %v2212_v11 = vadd.f32 -0.28449672, %v2200_v38  ;;  %v2168_v45 = vadd.f32 -1.4531521, %v2156_v62  ;;  %v4171_v34 = vld [vmem:[#allocation11 + $0xb4] sm:$0xf]  ;;  %v3788_v4 = vor.u32 %v4169_v12, %v3785_v29 }
 0x1f6   :  { %v5167_v27 = vand.u32 2147483647, %v5160_v55  ;;  %v5169_v18 = vpop.f32.mrf.mxu0  ;;  %2800 = vmatpush.bf16.msra.mxu2 %v3864_v30  ;;  %2854 = vmatpush.bf16.msrb.mxu1 %v3804_v31  ;;  %v3793_v38 = vld [vmem:[#allocation11 + $0xb8] sm:$0xf0]  ;;  %v2092_v41 = vsel %vm2080_vm0, 1.0, %v4509_v15  ;;  %v2052_v30 = vmul.f32 0.5, %v5058_v2 }
 0x1f7   :  { %v2224_v37 = vmul.f32 %v5134_v39, %v2212_v11  ;;  %v2180_v40 = vmul.f32 %v5150_v36, %v2168_v45  ;;  %v2316_v1 = vsub.f32 1.0, %v2304_v17  ;;  %v3796_v54 = vor.u32 %v4171_v34, %v3793_v38  ;;  %v4167_v31 = vld [vmem:[#allocation11 + $0x94] sm:$0xf]  ;;  %v4182_v34 = vld [vmem:[#allocation11 + $0x104] sm:$0xf0] }
 0x1f8   :  { %v2113_v5 = vmul.f32 0.3275911, %v5167_v27  ;;  %v2257_v45 = vsub.f32 0.0, %v5167_v27  ;;  %v2096_v12 = vsel %vm2084_vm1, 1.0, %v4509_v15  ;;  %vm2077_vm2 = vcmp.ge.f32.partialorder %v5160_v55, 0.0 }
 0x1f9   :  { %v2236_v32 = vadd.f32 0.2548296, %v2224_v37  ;;  %v2192_v19 = vadd.f32 1.4214138, %v2180_v40  ;;  %v1972_v56 = vpop.f32.mrf.mxu3  ;;  %2774 = vmatmul.bf16.gmra.mxu0 %v5174_v10  ;;  %v2328_v61 = vmul.f32 %v2316_v1, %v2088_v49  ;;  %v3848_v37 = vor.u32 %v4186_v58, %v3847_v14  ;;  %v3839_v1 = vld [vmem:[#allocation11 + $0x110] sm:$0xf] }
 0x1fa   :  { %v2125_v63 = vadd.f32 1.0, %v2113_v5  ;;  %v5181_v59 = vadd.f32 %v1972_v56, %v1955_v24  ;;  %2801 = vmatpush.bf16.msra.mxu2 %v3856_v50  ;;  %2855 = vmatpush.bf16.msrb.mxu1 %v3796_v54  ;;  %v4184_v5 = vld [vmem:[#allocation11 + $0x114] sm:$0xf0]  ;;  %v2269_v2 = vmul.f32 %v2257_v45, %v5167_v27  ;;  %v5222_v58 = vperm.slane %v4997_v20, 3  ;;  %v3951_v20 = vld [vmem:[#allocation11 + $0x1f0] sm:$0xf] }
 0x1fb   :  { %v2248_v23 = vmul.f32 %v5134_v39, %v2236_v32  ;;  %v2204_v6 = vmul.f32 %v5150_v36, %v2192_v19  ;;  %v1957_v46 = vpop.f32.mrf.mxu2  ;;  %v2340_v16 = vadd.f32 1.0, %v2328_v61  ;;  %v3840_v56 = vor.u32 %v4184_v5, %v3839_v1 }
 0x1fc   :  { %4295 = vrcp.f32 %v2125_v63  ;;  %v5189_v57 = vmul.f32 0.70710677, %v5181_v59  ;;  %v5191_v35 = vpop.f32.mrf.mxu1  ;;  %v1958_v7 = vadd.f32 %v1957_v46, %v1940_v42  ;;  %v4165_v42 = vld [vmem:[#allocation11 + $0x84] sm:$0xf] }
 0x1fd   :  { %v2308_v62 = vmul.f32 %v4294_v48, %v2248_v23  ;;  %v2216_v39 = vadd.f32 -0.28449672, %v2204_v6  ;;  %4297 = vpow2.f32 %v2297_v25  ;;  %v3777_v23 = vld [vmem:[#allocation11 + $0x98] sm:$0xf0]  ;;  %v2352_v48 = vmul.f32 %v2340_v16, %v2052_v30 }
 0x1fe   :  { %v5198_v47 = vand.u32 2147483647, %v5189_v57  ;;  %v1995_v9 = vpop.f32.mrf.mxu0  ;;  %2802 = vmatpush.bf16.msra.mxu2 %v3848_v37  ;;  %2856 = vmatpush.bf16.msrb.mxu1 %v3788_v4  ;;  %v2060_v4 = vmul.f32 0.5, %v5107_v60  ;;  %vm2081_vm3 = vcmp.ge.f32.partialorder %v5189_v57, 0.0 }
 0x1ff   :  { %v2320_v17 = vsub.f32 1.0, %v2308_v62  ;;  %v2228_v11 = vmul.f32 %v5150_v36, %v2216_v39  ;;  %v3780_v62 = vor.u32 %v4167_v31, %v3777_v23  ;;  %v3769_v9 = vld [vmem:[#allocation11 + $0x88] sm:$0xf0] }
 0x200   :  { %v2117_v43 = vmul.f32 0.3275911, %v5198_v47  ;;  %v3772_v51 = vor.u32 %v4165_v42, %v3769_v9  ;;  %v3881_v23 = vld [vmem:[#allocation11 + $0x168] sm:$0xf0]  ;;  %v4191_v42 = vld [vmem:[#allocation11 + $0x154] sm:$0xf] }
 0x201   :  { %v2332_v8 = vmul.f32 %v2320_v17, %v2092_v41  ;;  %v2240_v40 = vadd.f32 0.2548296, %v2228_v11  ;;  %v1975_v13 = vpop.f32.mrf.mxu3  ;;  %v2283_v17 = vmul.f32 1.442695, %v2269_v2  ;;  %v2261_v11 = vsub.f32 0.0, %v5198_v47 }
 0x202   :  { %v5203_v24 = vpop.eup %4295  ;;  %v2129_v32 = vadd.f32 1.0, %v2117_v43  ;;  %v5206_v19 = vadd.f32 %v1975_v13, %v1958_v7  ;;  %2803 = vmatpush.bf16.msra.mxu2 %v3840_v56  ;;  %v4212_v43 = vld [vmem:[#allocation11 + $0x1f4] sm:$0xf0]  ;;  %2857 = vmatpush.bf16.msrb.mxu1 %v3780_v62  ;;  %v3889_v13 = vld [vmem:[#allocation11 + $0x178] sm:$0xf0]  ;;  %v1991_v62 = vadd.f32 %v5144_v22, %v5222_v58 }
 0x203   :  { %v2344_v49 = vadd.f32 1.0, %v2332_v8  ;;  %v2252_v25 = vmul.f32 %v5150_v36, %v2240_v40  ;;  %v2149_v63 = vmul.f32 1.0614054, %v5203_v24  ;;  %v1959_v3 = vpop.f32.mrf.mxu2  ;;  %v4298_v6 = vpop.eup %4297  ;;  %v3831_v36 = vld [vmem:[#allocation11 + $0x100] sm:$0xf]  ;;  %v3952_v8 = vor.u32 %v4212_v43, %v3951_v20 }
 0x204   :  { %4299 = vrcp.f32 %v2129_v32  ;;  %v5214_v46 = vmul.f32 0.70710677, %v5206_v19  ;;  %v2013_v50 = vpop.f32.mrf.mxu1  ;;  %v3832_v39 = vor.u32 %v4182_v34, %v3831_v36  ;;  %v4195_v40 = vld [vmem:[#allocation11 + $0x174] sm:$0xf]  ;;  %v2273_v56 = vmul.f32 %v2261_v11, %v5198_v47  ;;  %v4193_v3 = vld [vmem:[#allocation11 + $0x164] sm:$0xf] }
 0x205   :  { %v2356_v61 = vmul.f32 %v2344_v49, %v2056_v26  ;;  %v2312_v53 = vmul.f32 %v4298_v6, %v2252_v25  ;;  %v2161_v0 = vadd.f32 -1.4531521, %v2149_v63  ;;  %v3892_v32 = vor.u32 %v4195_v40, %v3889_v13  ;;  %2815 = vmatpush.bf16.msra.mxu3 %v3952_v8  ;;  %v3943_v25 = vld [vmem:[#allocation11 + $0x1e0] sm:$0xf]  ;;  %v4210_v63 = vld [vmem:[#allocation11 + $0x1e4] sm:$0xf0] }
 0x206   :  { %v5217_v38 = vand.u32 2147483647, %v5214_v46  ;;  %2804 = vmatpush.bf16.msra.mxu2 %v3832_v39  ;;  %2858 = vmatpush.bf16.msrb.mxu1 %v3772_v51  ;;  %v3944_v6 = vor.u32 %v4210_v63, %v3943_v25  ;;  %v2291_v2 = vmul.f32 1.442695, %v2273_v56  ;;  %v3935_v36 = vld [vmem:[#allocation11 + $0x1d0] sm:$0xf]  ;;  %v2009_v43 = vadd.f32 %v5162_v33, %v1991_v62 }
 0x207   :  { %v5219_v14 = vpack.c.bf16 %v2356_v61, %v2352_v48  ;;  %v2324_v27 = vsub.f32 1.0, %v2312_v53  ;;  %v2173_v41 = vmul.f32 %v5203_v24, %v2161_v0  ;;  %v3884_v61 = vor.u32 %v4193_v3, %v3881_v23  ;;  %v3873_v9 = vld [vmem:[#allocation11 + $0x158] sm:$0xf0]  ;;  %v3927_v8 = vld [vmem:[#allocation11 + $0x1c0] sm:$0xf] }
 0x208   :  { %v2121_v45 = vmul.f32 0.3275911, %v5217_v38  ;;  %v2265_v50 = vsub.f32 0.0, %v5217_v38  ;;  %v3876_v22 = vor.u32 %v4191_v42, %v3873_v9  ;;  %v1994_v63 = vadd.f32 %v5169_v18, %v5222_v58  ;;  %v4185_v9 = vld [vmem:[#allocation11 + $0x124] sm:$0xf] }
 0x209   :  { %v2336_v54 = vmul.f32 %v2324_v27, %v2096_v12  ;;  %v2185_v29 = vadd.f32 1.4214138, %v2173_v41  ;;  %v1977_v16 = vpop.f32.mrf.mxu3  ;;  %2787 = vmatmul.bf16.vlgmr.msra.gmra.mxu1 %v5219_v14  ;;  %2841 = vmatmul.bf16.vlgmr.msrb.gmra.mxu0 %v5122_v52  ;;  %v1989_v52 = vadd.f32 %v5120_v28, %v5222_v58  ;;  %v4208_v41 = vld [vmem:[#allocation11 + $0x1d4] sm:$0xf0]  ;;  %v2053_v18 = vmul.f32 0.5, %v5152_v21 }
 0x20a   :  { %v5232_v7 = vpop.eup %4299  ;;  %v2133_v37 = vadd.f32 1.0, %v2121_v45  ;;  %2869 = vmatpush.bf16.msrb.mxu2 %v3892_v32  ;;  %2816 = vmatpush.bf16.msra.mxu3 %v3944_v6  ;;  %v2277_v40 = vmul.f32 %v2265_v50, %v5217_v38  ;;  %v4189_v32 = vld [vmem:[#allocation11 + $0x144] sm:$0xf]  ;;  %vm2085_vm4 = vcmp.ge.f32.partialorder %v5214_v46, 0.0 }
 0x20b   :  { %v2197_v1 = vmul.f32 %v5203_v24, %v2185_v29  ;;  %v2153_v5 = vmul.f32 1.0614054, %v5232_v7  ;;  %v2024_v30 = vpop.f32.mrf.mxu2  ;;  %v2348_v31 = vadd.f32 1.0, %v2336_v54  ;;  %v2007_v60 = vadd.f32 %v5141_v44, %v1989_v52  ;;  %v3865_v52 = vld [vmem:[#allocation11 + $0x148] sm:$0xf0] }
 0x20c   :  { %4301 = vrcp.f32 %v2133_v37  ;;  %v3936_v54 = vor.u32 %v4208_v41, %v3935_v36  ;;  %v2299_v3 = vmul.f32 1.442695, %v2277_v40  ;;  %v2012_v36 = vadd.f32 %v5191_v35, %v1994_v63  ;;  %v4209_v46 = vld [vmem:[#allocation11 + $0x1e4] sm:$0xf] }
 0x20d   :  { %v2209_v26 = vadd.f32 -0.28449672, %v2197_v1  ;;  %v2165_v49 = vadd.f32 -1.4531521, %v2153_v5  ;;  %4303 = vpow2.f32 %v2283_v17  ;;  %v2025_v48 = vadd.f32 %v2024_v30, %v2007_v60  ;;  %v3919_v60 = vld [vmem:[#allocation11 + $0x1b0] sm:$0xf] }
 0x20e   :  { %v2360_v27 = vmul.f32 %v2348_v31, %v2060_v4  ;;  %2870 = vmatpush.bf16.msrb.mxu2 %v3884_v61  ;;  %2817 = vmatpush.bf16.msra.mxu3 %v3936_v54  ;;  %4305 = vpow2.f32 %v2291_v2  ;;  %v4206_v4 = vld [vmem:[#allocation11 + $0x1c4] sm:$0xf0]  ;;  %v3857_v61 = vld [vmem:[#allocation11 + $0x138] sm:$0xf0]  ;;  %v2093_v41 = vsel %vm2081_vm3, 1.0, %v4509_v15  ;;  %v2057_v40 = vmul.f32 0.5, %v5181_v59 }
 0x20f   :  { %v2221_v28 = vmul.f32 %v5203_v24, %v2209_v26  ;;  %v2177_v47 = vmul.f32 %v5232_v7, %v2165_v49  ;;  %v3928_v31 = vor.u32 %v4206_v4, %v3927_v8  ;;  %v3868_v26 = vor.u32 %v4189_v32, %v3865_v52  ;;  %v4200_v8 = vld [vmem:[#allocation11 + $0x194] sm:$0xf0]  ;;  %v3841_v32 = vld [vmem:[#allocation11 + $0x118] sm:$0xf0] }
 0x210   :  { %v5267_v30 = vpack.c.bf16 %v2360_v27, %v2360_v27  ;;  %v3911_v27 = vld [vmem:[#allocation11 + $0x1a0] sm:$0xf] }
 0x211   :  { %v2233_v53 = vadd.f32 0.2548296, %v2221_v28  ;;  %v2189_v0 = vadd.f32 1.4214138, %v2177_v47  ;;  %v2042_v44 = vpop.f32.mrf.mxu3  ;;  %v4204_v47 = vld [vmem:[#allocation11 + $0x1b4] sm:$0xf0] }
 0x212   :  { %v5245_v34 = vpop.eup %4301  ;;  %v5249_v39 = vadd.f32 %v2042_v44, %v2025_v48  ;;  %2871 = vmatpush.bf16.msrb.mxu2 %v3876_v22  ;;  %2818 = vmatpush.bf16.msra.mxu3 %v3928_v31  ;;  %v3920_v48 = vor.u32 %v4204_v47, %v3919_v60  ;;  %v4198_v47 = vld [vmem:[#allocation11 + $0x184] sm:$0xf0] }
 0x213   :  { %v2245_v12 = vmul.f32 %v5203_v24, %v2233_v53  ;;  %v2201_v17 = vmul.f32 %v5232_v7, %v2189_v0  ;;  %v2157_v11 = vmul.f32 1.0614054, %v5245_v34  ;;  %v2026_v45 = vpop.f32.mrf.mxu2  ;;  %v4304_v29 = vpop.eup %4303  ;;  %v2089_v24 = vsel %vm2077_vm2, 1.0, %v4509_v15 }
 0x214   :  { %v5255_v16 = vmul.f32 0.70710677, %v5249_v39  ;;  %v2027_v5 = vadd.f32 %v2026_v45, %v2009_v43  ;;  %v4306_v53 = vpop.eup %4305  ;;  %v3849_v45 = vld [vmem:[#allocation11 + $0x128] sm:$0xf0] }
 0x215   :  { %v2305_v20 = vmul.f32 %v4304_v29, %v2245_v12  ;;  %v2213_v37 = vadd.f32 -0.28449672, %v2201_v17  ;;  %v2169_v51 = vadd.f32 -1.4531521, %v2157_v11  ;;  %v3852_v57 = vor.u32 %v4185_v9, %v3849_v45 }
 0x216   :  { %v5263_v13 = vand.u32 2147483647, %v5255_v16  ;;  %2872 = vmatpush.bf16.msrb.mxu2 %v3868_v26  ;;  %2819 = vmatpush.bf16.msra.mxu3 %v3920_v48  ;;  %vm2078_vm5 = vcmp.ge.f32.partialorder %v5255_v16, 0.0 }
 0x217   :  { %v2225_v1 = vmul.f32 %v5232_v7, %v2213_v37  ;;  %v2181_v33 = vmul.f32 %v5245_v34, %v2169_v51  ;;  %v2317_v56 = vsub.f32 1.0, %v2305_v20  ;;  %v3903_v51 = vld [vmem:[#allocation11 + $0x190] sm:$0xf] }
 0x218   :  { %v2114_v55 = vmul.f32 0.3275911, %v5263_v13  ;;  %v2258_v11 = vsub.f32 0.0, %v5263_v13 }
 0x219   :  { %v2237_v38 = vadd.f32 0.2548296, %v2225_v1  ;;  %v2193_v49 = vadd.f32 1.4214138, %v2181_v33  ;;  %v2044_v25 = vpop.f32.mrf.mxu3  ;;  %2792 = vmatmul.bf16.gmra.mxu1 %v5267_v30  ;;  %2846 = vmatmul.bf16.gmra.mxu0 %v5174_v10  ;;  %v4187_v10 = vld [vmem:[#allocation11 + $0x134] sm:$0xf]  ;;  %v2329_v58 = vmul.f32 %v2317_v56, %v2089_v24  ;;  %v3904_v33 = vor.u32 %v4200_v8, %v3903_v51 }
 0x21a   :  { %v2126_v23 = vadd.f32 1.0, %v2114_v55  ;;  %v5274_v28 = vadd.f32 %v2044_v25, %v2027_v5  ;;  %v3860_v21 = vor.u32 %v4187_v10, %v3857_v61  ;;  %v4183_v5 = vld [vmem:[#allocation11 + $0x114] sm:$0xf]  ;;  %v3833_v10 = vld [vmem:[#allocation11 + $0x108] sm:$0xf0]  ;;  %v2097_v61 = vsel %vm2085_vm4, 1.0, %v4509_v15 }
 0x21b   :  { %v2249_v6 = vmul.f32 %v5232_v7, %v2237_v38  ;;  %v2205_v2 = vmul.f32 %v5245_v34, %v2193_v49  ;;  %v2029_v50 = vpop.f32.mrf.mxu2  ;;  %v4202_v7 = vld [vmem:[#allocation11 + $0x1a4] sm:$0xf0]  ;;  %v2341_v54 = vadd.f32 1.0, %v2329_v58  ;;  %v2270_v38 = vmul.f32 %v2258_v11, %v5263_v13 }
 0x21c   :  { %4307 = vrcp.f32 %v2126_v23  ;;  %v5281_v0 = vmul.f32 0.70710677, %v5274_v28  ;;  %v3912_v35 = vor.u32 %v4202_v7, %v3911_v27  ;;  %v2030_v22 = vadd.f32 %v2029_v50, %v2012_v36  ;;  %2873 = vmatpush.bf16.msrb.mxu2 %v3860_v21  ;;  %v3895_v23 = vld [vmem:[#allocation11 + $0x180] sm:$0xf]  ;;  %v3953_v27 = vld [vmem:[#allocation11 + $0x1f8] sm:$0xf0] }
 0x21d   :  { %v2309_v44 = vmul.f32 %v4306_v53, %v2249_v6  ;;  %v2217_v62 = vadd.f32 -0.28449672, %v2205_v2  ;;  %4309 = vpow2.f32 %v2299_v3  ;;  %v3844_v49 = vor.u32 %v4183_v5, %v3841_v32  ;;  %v4181_v2 = vld [vmem:[#allocation11 + $0x104] sm:$0xf]  ;;  %v3929_v32 = vld [vmem:[#allocation11 + $0x1c8] sm:$0xf0] }
 0x21e   :  { %v5288_v42 = vand.u32 2147483647, %v5281_v0  ;;  %2820 = vmatpush.bf16.msra.mxu3 %v3912_v35  ;;  %v2353_v25 = vmul.f32 %v2341_v54, %v2053_v18  ;;  %v3896_v6 = vor.u32 %v4198_v47, %v3895_v23  ;;  %v2285_v53 = vmul.f32 1.442695, %v2270_v38  ;;  %v4207_v54 = vld [vmem:[#allocation11 + $0x1d4] sm:$0xf] }
 0x21f   :  { %v2321_v12 = vsub.f32 1.0, %v2309_v44  ;;  %v2229_v17 = vmul.f32 %v5245_v34, %v2217_v62  ;;  %v3836_v58 = vor.u32 %v4181_v2, %v3833_v10  ;;  %v4211_v62 = vld [vmem:[#allocation11 + $0x1f4] sm:$0xf]  ;;  %v2061_v51 = vmul.f32 0.5, %v5206_v19  ;;  %v4201_v10 = vld [vmem:[#allocation11 + $0x1a4] sm:$0xf] }
 0x220   :  { %v2118_v29 = vmul.f32 0.3275911, %v5288_v42  ;;  %2874 = vmatpush.bf16.msrb.mxu2 %v3852_v57  ;;  %v3956_v9 = vor.u32 %v4211_v62, %v3953_v27  ;;  %vm2082_vm6 = vcmp.ge.f32.partialorder %v5281_v0, 0.0  ;;  %v2058_v0 = vmul.f32 0.5, %v5274_v28 }
 0x221   :  { %v2333_v20 = vmul.f32 %v2321_v12, %v2093_v41  ;;  %v2241_v43 = vadd.f32 0.2548296, %v2229_v17  ;;  %v2047_v37 = vpop.f32.mrf.mxu3  ;;  %v2262_v41 = vsub.f32 0.0, %v5288_v42  ;;  %v3945_v12 = vld [vmem:[#allocation11 + $0x1e8] sm:$0xf0] }
 0x222   :  { %v5293_v24 = vpop.eup %4307  ;;  %v2130_v4 = vadd.f32 1.0, %v2118_v29  ;;  %v5296_v1 = vadd.f32 %v2047_v37, %v2030_v22  ;;  %2821 = vmatpush.bf16.msra.mxu3 %v3904_v33  ;;  %v3948_v45 = vor.u32 %v4209_v46, %v3945_v12  ;;  %v3937_v22 = vld [vmem:[#allocation11 + $0x1d8] sm:$0xf0] }
 0x223   :  { %v2345_v52 = vadd.f32 1.0, %v2333_v20  ;;  %v2253_v56 = vmul.f32 %v5245_v34, %v2241_v43  ;;  %v2150_v55 = vmul.f32 1.0614054, %v5293_v24  ;;  %v2031_v31 = vpop.f32.mrf.mxu2  ;;  %v4310_v26 = vpop.eup %4309  ;;  %v2274_v57 = vmul.f32 %v2262_v41, %v5288_v42 }
 0x224   :  { %4311 = vrcp.f32 %v2130_v4  ;;  %v5303_v59 = vmul.f32 0.70710677, %v5296_v1  ;;  %2875 = vmatpush.bf16.msrb.mxu2 %v3844_v49  ;;  %v4205_v4 = vld [vmem:[#allocation11 + $0x1c4] sm:$0xf] }
 0x225   :  { %v2357_v60 = vmul.f32 %v2345_v52, %v2057_v40  ;;  %v2313_v63 = vmul.f32 %v4310_v26, %v2253_v56  ;;  %v2162_v3 = vadd.f32 -1.4531521, %v2150_v55  ;;  %v3940_v40 = vor.u32 %v4207_v54, %v3937_v22  ;;  %v3897_v22 = vld [vmem:[#allocation11 + $0x188] sm:$0xf0] }
 0x226   :  { %v2110_v34 = vand.u32 2147483647, %v5303_v59  ;;  %2822 = vmatpush.bf16.msra.mxu3 %v3896_v6  ;;  %v2293_v56 = vmul.f32 1.442695, %v2274_v57  ;;  %vm2086_vm7 = vcmp.ge.f32.partialorder %v5303_v59, 0.0 }
 0x227   :  { %v5306_v50 = vpack.c.bf16 %v2357_v60, %v2353_v25  ;;  %v2325_v13 = vsub.f32 1.0, %v2313_v63  ;;  %v2174_v48 = vmul.f32 %v5293_v24, %v2162_v3  ;;  %v3932_v25 = vor.u32 %v4205_v4, %v3929_v32  ;;  %v2435_v59 = vld [vmem:[%s5348_s6] sm:$0x3]  ;;  %s4510_s6 = smov [#allocation13]  }
 0x228   :  { %v2122_v18 = vmul.f32 0.3275911, %v2110_v34  ;;  %2876 = vmatpush.bf16.msrb.mxu2 %v3836_v58  ;;  %v2266_v8 = vsub.f32 0.0, %v2110_v34  ;;  %s2915_s8 = sshll.u32 %s4510_s6, 4  ;;  %s2916_s8 = int_to_ptr.vmem [resolvable:$true] %s2915_s8 }
 0x229   :  { %v2186_v44 = vadd.f32 1.4214138, %v2174_v48  ;;  %v2049_v36 = vpop.f32.mrf.mxu3  ;;  %2805 = vmatmul.bf16.vlgmr.msra.gmra.mxu2 %v5306_v50  ;;  %2859 = vmatmul.bf16.vlgmr.msrb.gmra.mxu1 %v5219_v14  ;;  %v2337_v17 = vmul.f32 %v2325_v13, %v2097_v61  ;;  %v3921_v48 = vld [vmem:[#allocation11 + $0x1b8] sm:$0xf0]  ;;  %v3913_v61 = vld [vmem:[#allocation11 + $0x1a8] sm:$0xf0] }
 0x22a   :  { %v4312_v7 = vpop.eup %4311  ;;  %v2134_v21 = vadd.f32 1.0, %v2122_v18  ;;  %2887 = vmatpush.bf16.msrb.mxu3 %v3956_v9  ;;  %v2278_v49 = vmul.f32 %v2266_v8, %v2110_v34  ;;  %v4203_v34 = vld [vmem:[#allocation11 + $0x1b4] sm:$0xf]  ;;  %v2090_v36 = vsel %vm2078_vm5, 1.0, %v4509_v15  ;;  %v3905_v9 = vld [vmem:[#allocation11 + $0x198] sm:$0xf0] }
 0x22b   :  { %v2198_v11 = vmul.f32 %v5293_v24, %v2186_v44  ;;  %v2154_v35 = vmul.f32 1.0614054, %v4312_v7  ;;  %v2349_v37 = vadd.f32 1.0, %v2337_v17  ;;  %v3924_v58 = vor.u32 %v4203_v34, %v3921_v48 }
 0x22c   :  { %4313 = vrcp.f32 %v2134_v21  ;;  %v2301_v2 = vmul.f32 1.442695, %v2278_v49  ;;  %v3916_v21 = vor.u32 %v4201_v10, %v3913_v61 }
 0x22d   :  { %v2210_v14 = vadd.f32 -0.28449672, %v2198_v11  ;;  %v2166_v29 = vadd.f32 -1.4531521, %v2154_v35  ;;  %4315 = vpow2.f32 %v2285_v53  ;;  %v2361_v42 = vmul.f32 %v2349_v37, %v2061_v51 }
 0x22e   :  { %2888 = vmatpush.bf16.msrb.mxu3 %v3948_v45  ;;  %4317 = vpow2.f32 %v2293_v56  ;;  %v2054_v45 = vmul.f32 0.5, %v5249_v39  ;;  %v2098_v39 = vsel %vm2086_vm7, 1.0, %v4509_v15 }
 0x22f   :  { %v2222_v20 = vmul.f32 %v5293_v24, %v2210_v14  ;;  %v2178_v43 = vmul.f32 %v4312_v7, %v2166_v29  ;;  %v2369_v47 = vpack.c.bf16 %v2361_v42, %v2361_v42  ;;  %4319 = vpow2.f32 %v2301_v2  ;;  %v4197_v29 = vld [vmem:[#allocation11 + $0x184] sm:$0xf] }
 0x230   :  { %v3900_v51 = vor.u32 %v4197_v29, %v3897_v22  ;;  %v2438_v2 = vperm.slane %v2435_v59, 1 }
 0x231   :  { %v2234_v33 = vadd.f32 0.2548296, %v2222_v20  ;;  %v2190_v5 = vadd.f32 1.4214138, %v2178_v43 }
 0x232   :  { %v4314_v52 = vpop.eup %4313  ;;  %2889 = vmatpush.bf16.msrb.mxu3 %v3940_v40 }
 0x233   :  { %v2246_v55 = vmul.f32 %v5293_v24, %v2234_v33  ;;  %v2202_v31 = vmul.f32 %v4312_v7, %v2190_v5  ;;  %v2158_v26 = vmul.f32 1.0614054, %v4314_v52  ;;  %v4316_v38 = vpop.eup %4315  ;;  %v2062_v33 = vmul.f32 0.5, %v5296_v1 }
 0x234   :  { %v4318_v44 = vpop.eup %4317 }
 0x235   :  { %v2306_v60 = vmul.f32 %v4316_v38, %v2246_v55  ;;  %v2214_v19 = vadd.f32 -0.28449672, %v2202_v31  ;;  %v2170_v63 = vadd.f32 -1.4531521, %v2158_v26  ;;  %v4320_v57 = vpop.eup %4319 }
 0x236   :  { %2890 = vmatpush.bf16.msrb.mxu3 %v3932_v25 }
 0x237   :  { %v2226_v3 = vmul.f32 %v4312_v7, %v2214_v19  ;;  %v2182_v23 = vmul.f32 %v4314_v52, %v2170_v63  ;;  %v2318_v6 = vsub.f32 1.0, %v2306_v60 }
 0x239   :  { %v2238_v24 = vadd.f32 0.2548296, %v2226_v3  ;;  %v2194_v13 = vadd.f32 1.4214138, %v2182_v23  ;;  %2810 = vmatmul.bf16.gmra.mxu2 %v2369_v47  ;;  %2864 = vmatmul.bf16.gmra.mxu1 %v5267_v30  ;;  %v2330_v62 = vmul.f32 %v2318_v6, %v2090_v36  ;;  %v4199_v30 = vld [vmem:[#allocation11 + $0x194] sm:$0xf] }
 0x23a   :  { %2891 = vmatpush.bf16.msrb.mxu3 %v3924_v58  ;;  %v3908_v16 = vor.u32 %v4199_v30, %v3905_v9 }
 0x23b   :  { %v2250_v53 = vmul.f32 %v4312_v7, %v2238_v24  ;;  %v2206_v18 = vmul.f32 %v4314_v52, %v2194_v13  ;;  %v2094_v7 = vsel %vm2082_vm6, 1.0, %v4509_v15  ;;  %v2342_v17 = vadd.f32 1.0, %v2330_v62 }
 0x23c   :  { %v2437_v15 = vperm.slane %v2435_v59, 0 }
 0x23d   :  { %v2310_v27 = vmul.f32 %v4318_v44, %v2250_v53  ;;  %v2218_v41 = vadd.f32 -0.28449672, %v2206_v18  ;;  %v2354_v20 = vmul.f32 %v2342_v17, %v2054_v45 }
 0x23e   :  { %2892 = vmatpush.bf16.msrb.mxu3 %v3916_v21 }
 0x23f   :  { %v2322_v46 = vsub.f32 1.0, %v2310_v27  ;;  %v2230_v12 = vmul.f32 %v4314_v52, %v2218_v41 }
 0x241   :  { %v2334_v11 = vmul.f32 %v2322_v46, %v2094_v7  ;;  %v2242_v35 = vadd.f32 0.2548296, %v2230_v12 }
 0x242   :  { %2893 = vmatpush.bf16.msrb.mxu3 %v3908_v16 }
 0x243   :  { %v2346_v54 = vadd.f32 1.0, %v2334_v11  ;;  %v2254_v14 = vmul.f32 %v4314_v52, %v2242_v35 }
 0x245   :  { %v2358_v43 = vmul.f32 %v2346_v54, %v2058_v0  ;;  %v2314_v37 = vmul.f32 %v4320_v57, %v2254_v14 }
 0x246   :  { %2894 = vmatpush.bf16.msrb.mxu3 %v3900_v51 }
 0x247   :  { %v2366_v8 = vpack.c.bf16 %v2358_v43, %v2354_v20  ;;  %v2326_v40 = vsub.f32 1.0, %v2314_v37 }
 0x249   :  { %2823 = vmatmul.bf16.vlgmr.msra.gmra.mxu3 %v2366_v8  ;;  %2877 = vmatmul.bf16.vlgmr.msrb.gmra.mxu2 %v5306_v50  ;;  %v2338_v28 = vmul.f32 %v2326_v40, %v2098_v39 }
 0x24b   :  { %v2350_v4 = vadd.f32 1.0, %v2338_v28 }
 0x24d   :  { %v2362_v5 = vmul.f32 %v2350_v4, %v2062_v33 }
 0x24f   :  { %v2370_v32 = vpack.c.bf16 %v2362_v5, %v2362_v5 }
 0x259   :  { %2828 = vmatmul.bf16.gmra.mxu3 %v2370_v32  ;;  %2882 = vmatmul.bf16.gmra.mxu2 %v2369_v47 }
 0x266   :  { %v2770_v52 = vpop.f32.mrf.mxu0 }
 0x267   :  { %v2771_v31 = vadd.f32 %v2770_v52, %v2437_v15 }
 0x269   :  { %2895 = vmatmul.bf16.vlgmr.msrb.gmra.mxu3 %v2366_v8 }
 0x26e   :  { %v2772_v56 = vpop.f32.mrf.mxu0 }
 0x26f   :  { %v2773_v1 = vadd.f32 %v2772_v56, %v2437_v15 }
 0x276   :  { %v2775_v55 = vpop.f32.mrf.mxu0 }
 0x277   :  { %v2776_v19 = vadd.f32 %v2775_v55, %v2437_v15 }
 0x279   :  { %2900 = vmatmul.bf16.gmra.mxu3 %v2370_v32 }
 0x27e   :  { %v2777_v50 = vpop.f32.mrf.mxu0 }
 0x286   :  { %v2788_v26 = vpop.f32.mrf.mxu1  ;;  %v2842_v42 = vpop.f32.mrf.mxu0 }
 0x287   :  { %v2789_v38 = vadd.f32 %v2788_v26, %v2771_v31  ;;  %v2843_v24 = vadd.f32 %v2842_v42, %v2438_v2 }
 0x28e   :  { %v2790_v49 = vpop.f32.mrf.mxu1  ;;  %v2844_v25 = vpop.f32.mrf.mxu0 }
 0x28f   :  { %v2791_v60 = vadd.f32 %v2790_v49, %v2773_v1  ;;  %v2845_v10 = vadd.f32 %v2844_v25, %v2438_v2 }
 0x296   :  { %v2793_v63 = vpop.f32.mrf.mxu1  ;;  %v2847_v3 = vpop.f32.mrf.mxu0 }
 0x297   :  { %v2794_v23 = vadd.f32 %v2793_v63, %v2776_v19  ;;  %v2848_v58 = vadd.f32 %v2847_v3, %v2438_v2 }
 0x29e   :  { %v2795_v47 = vpop.f32.mrf.mxu1  ;;  %v2849_v6 = vpop.f32.mrf.mxu0 }
 0x2a6   :  { %v2860_v13 = vpop.f32.mrf.mxu1 }
 0x2a7   :  { %v2861_v34 = vadd.f32 %v2860_v13, %v2843_v24 }
 0x2ac   :  { %v2806_v48 = vpop.f32.mrf.mxu2 }
 0x2ad   :  { %v2807_v21 = vadd.f32 %v2806_v48, %v2789_v38 }
 0x2ae   :  { %v2862_v61 = vpop.f32.mrf.mxu1 }
 0x2af   :  { %v2863_v53 = vadd.f32 %v2862_v61, %v2845_v10 }
 0x2b4   :  { %v2808_v18 = vpop.f32.mrf.mxu2 }
 0x2b5   :  { %v2809_v12 = vadd.f32 %v2808_v18, %v2791_v60 }
 0x2b6   :  { %v2865_v44 = vpop.f32.mrf.mxu1 }
 0x2b7   :  { %v2866_v36 = vadd.f32 %v2865_v44, %v2848_v58 }
 0x2bc   :  { %v2811_v62 = vpop.f32.mrf.mxu2 }
 0x2bd   :  { %v2812_v35 = vadd.f32 %v2811_v62, %v2794_v23 }
 0x2be   :  { %v2867_v27 = vpop.f32.mrf.mxu1 }
 0x2c4   :  { %v2813_v41 = vpop.f32.mrf.mxu2 }
 0x2cc   :  { %v2824_v30 = vpop.f32.mrf.mxu3  ;;  %v2878_v9 = vpop.f32.mrf.mxu2 }
 0x2cd   :  { %v2825_v46 = vadd.f32 %v2824_v30, %v2807_v21  ;;  %v2879_v29 = vadd.f32 %v2878_v9, %v2861_v34 }
 0x2cf   :  { %2905 = vst [vmem:[#allocation13] sm:$0xff] %v2825_v46 }
 0x2d4   :  { %v2826_v7 = vpop.f32.mrf.mxu3  ;;  %v2880_v17 = vpop.f32.mrf.mxu2 }
 0x2d5   :  { %v2827_v11 = vadd.f32 %v2826_v7, %v2809_v12  ;;  %v2881_v20 = vadd.f32 %v2880_v17, %v2863_v53 }
 0x2d7   :  { %2907 = vst [vmem:[#allocation13 + $0x10] sm:$0xff] %v2827_v11 }
 0x2dc   :  { %v2829_v16 = vpop.f32.mrf.mxu3  ;;  %v2883_v45 = vpop.f32.mrf.mxu2 }
 0x2dd   :  { %v2830_v0 = vadd.f32 %v2829_v16, %v2812_v35  ;;  %v2884_v51 = vadd.f32 %v2883_v45, %v2866_v36 }
 0x2df   :  { %2909 = vst [vmem:[#allocation13 + $0x20] sm:$0xff] %v2830_v0 }
 0x2e4   :  { %v2831_v54 = vpop.f32.mrf.mxu3  ;;  %v2885_v14 = vpop.f32.mrf.mxu2 }
 0x2ec   :  { %v2896_v22 = vpop.f32.mrf.mxu3 }
 0x2ed   :  { %v2897_v57 = vadd.f32 %v2896_v22, %v2879_v29 }
 0x2ef   :  { %2906 = vst [vmem:[#allocation13 + $0x8] sm:$0xff] %v2897_v57 }
 0x2f4   :  { %v2898_v43 = vpop.f32.mrf.mxu3 }
 0x2f5   :  { %v2899_v37 = vadd.f32 %v2898_v43, %v2881_v20 }
 0x2f7   :  { %2908 = vst [vmem:[#allocation13 + $0x18] sm:$0xff] %v2899_v37 }
 0x2fc   :  { %v2901_v8 = vpop.f32.mrf.mxu3 }
 0x2fd   :  { %v2902_v40 = vadd.f32 %v2901_v8, %v2884_v51 }
 0x2ff   :  { %2910 = vst [vmem:[#allocation13 + $0x28] sm:$0xff] %v2902_v40 }
 0x300   :  { %2923 = dma.vmem_to_hbm [thread:$0]  %s2916_s8, 768, %s2918_s13, [#allocation4], %s4500_s9, %s4500_s9, %s4501_s10  }
 0x304   :  { %v2903_v39 = vpop.f32.mrf.mxu3 }
 0x305   :  { %4497 = dma.done.wait [#allocation4], 768  }
 0x306   :  { %4498 = vsyncadd [#allocation4], 4294966528 }
 0x307   :  { %2928 = vsyncpa [#allocation3], 1 }
 0x308   :  { %2929 = vsyncpa [#allocation6], 1 }
 0x309   :  { %2930 = vsyncpa [#allocation9], 1 }
 0x30a   :  { %2931 = vsyncpa [#allocation12], 1 }
 0x30b   :  { %2932 = vsyncpa [#allocation4], 1 }

</bundles_post_ra>
